<compile_context>
chip_gen: v5e
topology: v5e:2x2
jax: 0.10.0
libtpu: 0.0.40
codegen_flags: <defaults>
</compile_context>

<pallas_src>
import functools

import jax
import jax.numpy as jnp
from jax import lax
from jax.experimental import pallas as pl
from jax.experimental.pallas import tpu as pltpu


def _spatial_attention_kernel(t_ref, x_ref, o_ref, *, C, K, pad):
    """One grid step: NB samples -> one fused bf16 MXU matmul -> sigmoid.

    t_ref: (K*2*HW, HW) bf16   conv taps + H/W zero padding baked in (Toeplitz)
    x_ref: (NB, C, D, HW)      input block (batch tile, spatial plane flattened)
    o_ref: (NB, D, HW)         spatial-attention map block
    """
    NB, _, D, HW = x_ref.shape

    # Channel reductions on the VPU (f32), then cast to bf16 for the MXU.
    # TODO(synk): for large C, stream this with a fori_loop over channel slabs
    # instead of materializing the whole f32 block.
    x = x_ref[...].astype(jnp.float32)                     # (NB, C, D, HW)
    avg = jnp.sum(x, axis=1) * (1.0 / C)                   # channel mean
    mx = jnp.max(x, axis=1)                                # channel max
    feats = jnp.concatenate([avg, mx], axis=-1).astype(jnp.bfloat16)  # (NB, D, 2*HW)

    # Zero-pad the depth axis and stack the K depth shifts along the contraction
    # axis: the whole 2*K*K*K-tap conv becomes ONE bf16 matmul with f32 accum.
    zpad = jnp.zeros((NB, pad, 2 * HW), jnp.bfloat16)
    padded = jnp.concatenate([zpad, feats, zpad], axis=1)  # (NB, D + 2*pad, 2*HW)
    stacked = jnp.concatenate(
        [padded[:, kd:kd + D, :] for kd in range(K)], axis=-1
    ).reshape(NB * D, K * 2 * HW)                          # (M, K*2*HW) bf16

    acc = jnp.dot(stacked, t_ref[...],
                  preferred_element_type=jnp.float32)      # (M, HW) f32
    o_ref[...] = jax.nn.sigmoid(acc).reshape(NB, D, HW).astype(o_ref.dtype)


def build_conv_toeplitz(w, H, W, kernel_size=7):
    """Bake Conv3d(2->1, k, pad, bias=False) taps + H/W zero padding into a bf16
    (K*2*HW, HW) matrix.  Row index = kd*2*HW + c*HW + p (p = input plane index),
    column index = q (output plane index).  Weights are static: build once, reuse.
    """
    K = kernel_size
    pad = 3 if K == 7 else 1
    HW = H * W
    wt = w.reshape(2, K, K, K).astype(jnp.float32)         # (c, kd, kh, kw)
    p = jnp.arange(HW)
    hp, wp = p // W, p % W
    kh = hp[:, None] - hp[None, :] + pad                   # (HW, HW)
    kw = wp[:, None] - wp[None, :] + pad
    valid = (kh >= 0) & (kh < K) & (kw >= 0) & (kw < K)
    khc = jnp.clip(kh, 0, K - 1)
    kwc = jnp.clip(kw, 0, K - 1)
    T = jnp.where(valid[None, None], wt[:, :, khc, kwc], 0.0)   # (2, K, HW, HW)
    # -> (kd, c, p, q) row-major = kd*2*HW + c*HW + p, matching `stacked` above.
    return T.transpose(1, 0, 2, 3).reshape(K * 2 * HW, HW).astype(jnp.bfloat16)


def _pick_block_batch(N, D, target_rows=256):
    """Samples per grid step: fill the MXU M dim (NB*D ~ target_rows) but keep
    >= 2 grid steps whenever N >= 2 so v7x megacore feeds both TensorCores."""
    nb = max(1, target_rows // max(D, 1))
    if N >= 2:
        nb = min(nb, max(1, N // 2))
    return max(1, min(nb, N))


def spatial_attention_from_toeplitz(x, t_flat, kernel_size=7):
    """x: (N, C, D, H, W); t_flat: bf16 output of build_conv_toeplitz."""
    assert kernel_size in (3, 7), "kernel size must be 3 or 7"
    K = kernel_size
    pad = 3 if K == 7 else 1
    N, C, D, H, W = x.shape
    HW = H * W
    assert t_flat.shape == (K * 2 * HW, HW)

    # Scaling guard (tightest budget: v7x 64 MiB physical / 32 MiB scoped VMEM).
    # TODO(synk): beyond this, use a W-banded matrix + H/D halo tiling instead.
    if 2 * (K * 2 * HW * HW * 2) > 24 * 1024 * 1024:
        raise NotImplementedError(
            "H*W too large for the dense-Toeplitz scheme; needs banded/halo tiling.")

    NB = _pick_block_batch(N, D)
    num_blocks = -(-N // NB)
    N_pad = num_blocks * NB
    x_flat = x.reshape(N, C, D, HW)
    if N_pad != N:
        x_flat = jnp.pad(x_flat, ((0, N_pad - N), (0, 0), (0, 0), (0, 0)))

    kernel = functools.partial(_spatial_attention_kernel, C=C, K=K, pad=pad)
    out = pl.pallas_call(
        kernel,
        out_shape=jax.ShapeDtypeStruct((N_pad, D, HW), x.dtype),
        grid_spec=pltpu.PrefetchScalarGridSpec(
            num_scalar_prefetch=0,
            grid=(num_blocks,),
            in_specs=[
                # Grid-invariant Toeplitz (constant block index -> DMA'd once).
                pl.BlockSpec((K * 2 * HW, HW), lambda n: (0, 0)),
                # One batch tile of x, spatial plane flattened to lane-dense HW.
                pl.BlockSpec((NB, C, D, HW), lambda n: (n, 0, 0, 0)),
            ],
            out_specs=pl.BlockSpec((NB, D, HW), lambda n: (n, 0, 0)),
        ),
        compiler_params=pltpu.CompilerParams(
            dimension_semantics=("parallel",),     # megacore-shard batch on v7x
        ),
    )(t_flat, x_flat)
    return out[:N].reshape(N, 1, D, H, W)


def spatial_attention(x, w, kernel_size=7):
    """Convenience wrapper matching the PyTorch module.  Prefer building the
    Toeplitz once (build_conv_toeplitz) and calling spatial_attention_from_toeplitz."""
    H, W = x.shape[3], x.shape[4]
    t_flat = build_conv_toeplitz(w, H, W, kernel_size)
    return spatial_attention_from_toeplitz(x, t_flat, kernel_size)


def _reference(x, w, kernel_size=7):
    pad = 3 if kernel_size == 7 else 1
    avg = jnp.mean(x, axis=1, keepdims=True)
    mx = jnp.max(x, axis=1, keepdims=True)
    cat = jnp.concatenate([avg, mx], axis=1)
    out = lax.conv_general_dilated(
        cat, w, window_strides=(1, 1, 1), padding=[(pad, pad)] * 3,
        dimension_numbers=("NCDHW", "OIDHW", "NCDHW"),
        precision=lax.Precision.HIGHEST,
    )
    return jax.nn.sigmoid(out)


if __name__ == "__main__":
    K = 7
    N, C, D, H, W = 2, 4, 8, 16, 16

    key = jax.random.PRNGKey(0)
    kx, kwkey = jax.random.split(key)
    x = jax.random.normal(kx, (N, C, D, H, W), dtype=jnp.float32)

    # Deterministic Conv3d-style init (kaiming-uniform bound = 1/sqrt(fan_in)).
    fan_in = 2 * K * K * K
    bound = 1.0 / (fan_in ** 0.5)
    w = jax.random.uniform(kwkey, (1, 2, K, K, K), jnp.float32, -bound, bound)

    # Hoist the static weight -> Toeplitz transformation out of the call path.
    t_flat = jax.block_until_ready(build_conv_toeplitz(w, H, W, K))

    out = spatial_attention_from_toeplitz(x, t_flat, kernel_size=K)
    out = jax.block_until_ready(out)

    ref = _reference(x, w, kernel_size=K)
    assert out.shape == (N, 1, D, H, W)
    max_diff = jnp.max(jnp.abs(out - ref))
    # bf16 MXU operands (f32 accumulation) introduce ~1e-3-level rounding before
    # the sigmoid; 2e-3 rtol/atol leaves comfortable headroom.
    assert jnp.allclose(out, ref, rtol=2e-3, atol=2e-3), f"max abs diff = {max_diff}"

    print("KERNEL_OK")
</pallas_src>

<mosaic_0001>
module attributes {stable_mosaic.version = 11 : i64} {
  func.func @_spatial_attention_kernel(%arg0: i32, %arg1: memref<3584x256xbf16, #tpu.memory_space<vmem>>, %arg2: memref<1x4x8x256xf32, #tpu.memory_space<vmem>>, %arg3: memref<1x8x256xf32, #tpu.memory_space<vmem>>) attributes {dimension_semantics = [#tpu.dimension_semantics<parallel>], iteration_bounds = array<i64: 2>, scalar_prefetch = 0 : i64, scratch_operands = 0 : i64, tpu.core_type = #tpu.core_type<tc>, window_params = [{pipeline_mode = #tpu.pipeline_mode<synchronous>, transform_indices = @transform_0, window_bounds = array<i64: 3584, 256>}, {transform_indices = @transform_1, window_bounds = array<i64: 1, 4, 8, 256>}, {transform_indices = @transform_2, window_bounds = array<i64: 1, 8, 256>}]} {
    %c0 = arith.constant 0 : index
    %c0_0 = arith.constant 0 : index
    %c0_1 = arith.constant 0 : index
    %c0_2 = arith.constant 0 : index
    %0 = vector.load %arg2[%c0, %c0_0, %c0_1, %c0_2] : memref<1x4x8x256xf32, #tpu.memory_space<vmem>>, vector<1x4x8x256xf32>
    %cst = arith.constant dense<0.000000e+00> : vector<1x8x256xf32>
    %1 = vector.multi_reduction <add>, %0, %cst [1] : vector<1x4x8x256xf32> to vector<1x8x256xf32>
    %cst_3 = arith.constant 2.500000e-01 : f32
    %2 = vector.broadcast %cst_3 : f32 to vector<1x8x256xf32>
    %3 = arith.mulf %1, %2 : vector<1x8x256xf32>
    %cst_4 = arith.constant dense<0xFF800000> : vector<1x8x256xf32>
    %4 = vector.multi_reduction <maximumf>, %0, %cst_4 [1] : vector<1x4x8x256xf32> to vector<1x8x256xf32>
    %5 = tpu.concatenate %3, %4 in 2 : vector<1x8x256xf32>, vector<1x8x256xf32> -> vector<1x8x512xf32>
    %6 = arith.truncf %5 : vector<1x8x512xf32> to vector<1x8x512xbf16>
    %cst_5 = arith.constant 0.000000e+00 : bf16
    %7 = vector.broadcast %cst_5 : bf16 to vector<1x3x512xbf16>
    %8 = tpu.concatenate %7, %6, %7 in 1 : vector<1x3x512xbf16>, vector<1x8x512xbf16>, vector<1x3x512xbf16> -> vector<1x14x512xbf16>
    %9 = vector.extract_strided_slice %8 {offsets = [0, 0, 0], sizes = [1, 8, 512], strides = [1, 1, 1]} : vector<1x14x512xbf16> to vector<1x8x512xbf16>
    %10 = vector.extract_strided_slice %8 {offsets = [0, 1, 0], sizes = [1, 8, 512], strides = [1, 1, 1]} : vector<1x14x512xbf16> to vector<1x8x512xbf16>
    %11 = vector.extract_strided_slice %8 {offsets = [0, 2, 0], sizes = [1, 8, 512], strides = [1, 1, 1]} : vector<1x14x512xbf16> to vector<1x8x512xbf16>
    %12 = vector.extract_strided_slice %8 {offsets = [0, 3, 0], sizes = [1, 8, 512], strides = [1, 1, 1]} : vector<1x14x512xbf16> to vector<1x8x512xbf16>
    %13 = vector.extract_strided_slice %8 {offsets = [0, 4, 0], sizes = [1, 8, 512], strides = [1, 1, 1]} : vector<1x14x512xbf16> to vector<1x8x512xbf16>
    %14 = vector.extract_strided_slice %8 {offsets = [0, 5, 0], sizes = [1, 8, 512], strides = [1, 1, 1]} : vector<1x14x512xbf16> to vector<1x8x512xbf16>
    %15 = vector.extract_strided_slice %8 {offsets = [0, 6, 0], sizes = [1, 8, 512], strides = [1, 1, 1]} : vector<1x14x512xbf16> to vector<1x8x512xbf16>
    %16 = tpu.concatenate %9, %10, %11, %12, %13, %14, %15 in 2 : vector<1x8x512xbf16>, vector<1x8x512xbf16>, vector<1x8x512xbf16>, vector<1x8x512xbf16>, vector<1x8x512xbf16>, vector<1x8x512xbf16>, vector<1x8x512xbf16> -> vector<1x8x3584xbf16>
    %17 = vector.shape_cast %16 : vector<1x8x3584xbf16> to vector<8x3584xbf16>
    %c0_6 = arith.constant 0 : index
    %c0_7 = arith.constant 0 : index
    %18 = vector.load %arg1[%c0_6, %c0_7] : memref<3584x256xbf16, #tpu.memory_space<vmem>>, vector<3584x256xbf16>
    %cst_8 = arith.constant dense<0.000000e+00> : vector<8x256xf32>
    %19 = tpu.matmul %17, %18, %cst_8 {dimension_numbers = #tpu.dot_dimension_numbers<[1], [0], [0], [1], [0, 0, 1, 1], [], []>} : vector<8x3584xbf16>, vector<3584x256xbf16>, vector<8x256xf32> -> vector<8x256xf32>
    %20 = arith.negf %19 : vector<8x256xf32>
    %21 = math.exp %20 : vector<8x256xf32>
    %cst_9 = arith.constant 1.000000e+00 : f32
    %22 = vector.broadcast %cst_9 : f32 to vector<8x256xf32>
    %23 = arith.addf %22, %21 : vector<8x256xf32>
    %24 = arith.divf %22, %23 : vector<8x256xf32>
    %25 = vector.shape_cast %24 : vector<8x256xf32> to vector<1x8x256xf32>
    %c0_10 = arith.constant 0 : index
    %c0_11 = arith.constant 0 : index
    %c0_12 = arith.constant 0 : index
    %26 = vector.load %arg3[%c0_10, %c0_11, %c0_12] : memref<1x8x256xf32, #tpu.memory_space<vmem>>, vector<1x8x256xf32>
    tpu.vector_store %arg3[%c0_10, %c0_11, %c0_12], %25 {strides = array<i32>} : memref<1x8x256xf32, #tpu.memory_space<vmem>>, vector<1x8x256xf32>,
    return
  }
  func.func @transform_0(%arg0: i32) -> (i32, i32) {
    %c0_i32 = arith.constant 0 : i32
    %c0_i32_0 = arith.constant 0 : i32
    %c0_i32_1 = arith.constant 0 : i32
    return %c0_i32, %c0_i32_0 : i32, i32
  }
  func.func @transform_1(%arg0: i32) -> (i32, i32, i32, i32) {
    %c0_i32 = arith.constant 0 : i32
    %c0_i32_0 = arith.constant 0 : i32
    %c0_i32_1 = arith.constant 0 : i32
    %c0_i32_2 = arith.constant 0 : i32
    return %arg0, %c0_i32, %c0_i32_0, %c0_i32_1 : i32, i32, i32, i32
  }
  func.func @transform_2(%arg0: i32) -> (i32, i32, i32) {
    %c0_i32 = arith.constant 0 : i32
    %c0_i32_0 = arith.constant 0 : i32
    %c0_i32_1 = arith.constant 0 : i32
    return %arg0, %c0_i32, %c0_i32_0 : i32, i32, i32
  }
}

</mosaic_0001>

<bundles_post_ra>
// kernel: tpu_custom_call.1
= control target key start
LH: loop header
LB: loop body
LE: loop exit
PB: predicated region body
PF: predicated region fallthrough
CT: control target
= control target key end

     0   :  { %7 = vsyncpa [#allocation3], 0  ;;  %s6821_s0 = inlined_call_operand.hbm [shape: bf16[3584,256], index: 0, kind: input, shape index: {}]   ;;  %s6822_s1 = inlined_call_operand.hbm [shape: f32[2,4,8,256], index: 1, kind: input, shape index: {}]   ;;  %s6823_s2 = inlined_call_operand.hbm [shape: f32[2,8,256], index: 2, kind: output, shape index: {}]  }
   0x1   :  { %8 = vsyncpa [#allocation6], 0 }
   0x2   :  { %10 = vsyncpa [#allocation6 + $0x1], 0 }
   0x3   :  { %11 = vsyncpa [#allocation4], 0 }
   0x4   :  { %13 = vsyncpa [#allocation4 + $0x1], 0  ;;  %s6394_s9 = smov 0   ;;  %s6396_s10 = smov 0  }
   0x5   :  { %s6398_s11 = smov 0   ;;  %s6400_s12 = smov 0  }
   0x6 LB: > { %s6415_s13 = sadd.s32 4294967295, %s6372_s12   ;;  %s3913_s14 = sadd.s32 4294967294, %s6372_s12   ;;  %s6372_s12 = sphi %s6400_s12, %s6837_s12   ;;  %s6368_s11 = sphi %s6398_s11, %s6836_s11   ;;  %s6364_s10 = sphi %s6396_s10, %s6835_s10   ;;  %s6360_s9 = sphi %s6394_s9, %s6834_s9  }
   0x7   : > { %p60_p0 = scmp.ne.s32.totalorder %s6364_s10, %s6360_s9  ;;  %p61_p1 = scmp.eq.s32.totalorder %s6415_s13, 0 }
   0x8   : > { %p84_p2 = scmp.eq.s32.totalorder %s6415_s13, 1  ;;  %p90_p3 = scmp.eq.s32.totalorder %s3913_s14, 1 }
   0x9   : > { %p6424_p4 = por %p61_p1, %p60_p0  ;;  %p3914_p5 = scmp.ge.s32.totalorder %s6372_s12, 1 }
   0xa   : > { %p6429_p6 = por %p90_p3, %p60_p0  ;;  %p97_p7 = scmp.lt.s32.totalorder %s6372_s12, 3 }
   0xb   : > { %s108_s19 = sshll.u32 %s6821_s0, 4  ;;  %s6374_s21 = smov [#allocation2]   ;;  %s109_s19 = int_to_ptr.hbm [resolvable:$true] %s108_s19 }
   0xc   : > { %p6437_p8 = pnand %p3914_p5, %p97_p7  ;;  %s110_s22 = sshll.u32 %s6374_s21, 4  ;;  %s111_s22 = int_to_ptr.vmem [resolvable:$true] %s110_s22 }
   0xd   : > { %s6447_s23 = sadd.s32 1, %s6372_s12   ;;  %s6375_s24 = smov 128  }
   0xe   : > { %p6181_p9 = pneg %p6437_p8  ;;  %s6376_s25 = smov 8  }
   0xf   : > { %s44_s26 = ssub.s32 %s6372_s12, %s6447_s23  ;;  %s47_s27 = sadd.s32 1, %s6368_s11 }
  0x10   : > { %p6182_p10 = pnand %p6181_p9, %p61_p1  ;;  %p45_p12 = scmp.eq.s32.totalorder %s44_s26, 0 }
  0x11   : > { %p54_p13 = scmp.ne.s32.totalorder %s6368_s11, %s6364_s10  ;;  %p55_p0 = scmp.eq.s32.totalorder %s6372_s12, 0 }
  0x12   : > { %6184 = dma.hbm_to_vmem [thread:$0]  (!%p6182_p10), %s109_s19, 57344, %s111_s22, [#allocation3], %s6375_s24, %s6375_s24, %s6376_s25  }
  0x13   : > { %p6194_p3 = scmp.lt.s32.totalorder %s6372_s12, 2  ;;  %p56_p5 = por %p55_p0, %p54_p13 }
  0x14   : > { %s6457_s28 = scalar_select %p45_p12, %s6368_s11, %s47_s27  }
  0x15   : > { %p6461_p7 = por %p84_p2, %p54_p13  ;;  %s124_s30 = sand.u32 1, %s6368_s11  }
  0x16   : > { %s5723_s3 = sshll.u32 %s6372_s12, 6  ;;  %s3917_s4 = sshll.u32 %s124_s30, 6 }
  0x17   : > { %s133_s7 = scalar_lea.hbm %s6822_s1, %s5723_s3  ;;  %s128_s14 = scalar_lea.vmem [#allocation5], %s3917_s4 }
  0x18   : > { %s134_s8 = sshll.u32 %s133_s7, 4  ;;  %s136_s17 = sshll.u32 %s128_s14, 4  ;;  %s135_s8 = int_to_ptr.hbm [resolvable:$true] %s134_s8  ;;  %s137_s17 = int_to_ptr.vmem [resolvable:$true] %s136_s17 }
  0x19   : > { %p6472_p9 = pnand %p6194_p3, %p56_p5  ;;  %s125_s19 = scalar_lea.sflag [#allocation6], %s124_s30 }
  0x1a   : > { %s6272_s21 = sshra.s32 %s135_s8, 4  ;;  %s6279_s26 = scalar_lea.hbm %s6822_s1, 128  ;;  %s6273_s21 = int_to_ptr.hbm [resolvable:$true] %s6272_s21 }
  0x1b   : > { %s6274_s22 = scalar_lea.hbm %s6273_s21, 64  ;;  %p6276_p10 = pneg %p6472_p9 }
  0x1c   : > { %p6275_p2 = scmp.ne.s32.totalorder %s6273_s21, %s6274_s22  ;;  %p6280_p0 = scmp.lt.s32.totalorder %s6273_s21, %s6822_s1 }
  0x1d   : > { %p6281_p3 = scmp.lt.s32.totalorder %s6279_s26, %s6274_s22 }
  0x1e   : > { %p6277_p12 = pnand %p6276_p10, %p6275_p2 }
  0x1f   : > { %p6282_p5 = por %p6281_p3, %p6280_p0 }
  0x20   : > { %p6278_p13 = pneg %p6277_p12 }
  0x22   : > { %p6283_p11 = pnand %p6282_p5, %p6278_p13 }
  0x24   : > { %6286 = shalt.err (!%p6283_p11)
}
  0x25   : > { %s6377_s30 = smov 256   ;;  %s6378_s4 = smov 16  }
  0x26   : > { %6188 = dma.hbm_to_vmem [thread:$0]  (!%p6472_p9), %s135_s8, 1024, %s137_s17, %s125_s19, %s6377_s30, %s6377_s30, %s6378_s4  }
  0x27   : > { %148 = sbr.rel (%p6437_p8) target bundleno = 668 (0x29c), region = 28 }
  0x2c   : > { %6347 = dma.done.wait (%p61_p1), [#allocation3], 57344  }
  0x2d   : > { %6349 = vsyncadd (%p61_p1), [#allocation3], 4294909952  ;;  %s6493_s5 = sand.u32 1, %s6364_s10  }
  0x2e   : > { %s3922_s6 = sshll.u32 %s6493_s5, 6  ;;  %s156_s7 = scalar_lea.sflag [#allocation6], %s6493_s5 }
  0x2f   : > { %s6497_s14 = scalar_lea.vmem [#allocation5], %s3922_s6 }
  0x30   : > { %6351 = dma.done.wait (%p6424_p4), %s156_s7, 1024  }
  0x31   : > { %6353 = vsyncadd (%p6424_p4), %s156_s7, 4294966272  ;;  %v3982_v0 = vld [vmem:[#allocation2 + $0x70] sm:$0xf]  ;;  %v5739_v1 = vld [vmem:[#allocation2 + $0x74] sm:$0xf0]  ;;  %vm252_vm1 = vcmask 1041408  }
  0x32   : > { %v4046_v2 = vld [vmem:[#allocation2 + $0xf0] sm:$0xf]  ;;  %v3983_v3 = vor.u32 %v5739_v1, %v3982_v0  ;;  %v5755_v4 = vld [vmem:[#allocation2 + $0xf4] sm:$0xf0]  ;;  %v3974_v11 = vld [vmem:[#allocation2 + $0x60] sm:$0xf] }
  0x33   : > { %v4110_v5 = vld [vmem:[#allocation2 + $0x170] sm:$0xf]  ;;  %v5771_v6 = vld [vmem:[#allocation2 + $0x174] sm:$0xf0]  ;;  %v4047_v7 = vor.u32 %v5755_v4, %v4046_v2  ;;  %v5737_v13 = vld [vmem:[#allocation2 + $0x64] sm:$0xf0] }
  0x34   : > { %v4111_v8 = vor.u32 %v5771_v6, %v4110_v5  ;;  %v4174_v9 = vld [vmem:[#allocation2 + $0x1f0] sm:$0xf]  ;;  %v5787_v10 = vld [vmem:[#allocation2 + $0x1f4] sm:$0xf0]  ;;  %3046 = vmatpush.bf16.msra.mxu0 %v3983_v3  ;;  %v4038_v14 = vld [vmem:[#allocation2 + $0xe0] sm:$0xf]  ;;  %v3975_v16 = vor.u32 %v5737_v13, %v3974_v11 }
  0x35   : > { %v4175_v12 = vor.u32 %v5787_v10, %v4174_v9  ;;  %v5753_v15 = vld [vmem:[#allocation2 + $0xe4] sm:$0xf0]  ;;  %3059 = vmatpush.bf16.msra.mxu1 %v4047_v7  ;;  %v4102_v18 = vld [vmem:[#allocation2 + $0x160] sm:$0xf]  ;;  %v3966_v23 = vld [vmem:[#allocation2 + $0x50] sm:$0xf] }
  0x36   : > { %3072 = vmatpush.bf16.msra.mxu2 %v4111_v8  ;;  %v4039_v17 = vor.u32 %v5753_v15, %v4038_v14  ;;  %v5769_v19 = vld [vmem:[#allocation2 + $0x164] sm:$0xf0]  ;;  %v4166_v20 = vld [vmem:[#allocation2 + $0x1e0] sm:$0xf]  ;;  %v5735_v24 = vld [vmem:[#allocation2 + $0x54] sm:$0xf0] }
  0x37   : > { %3085 = vmatpush.bf16.msra.mxu3 %v4175_v12  ;;  %v4103_v21 = vor.u32 %v5769_v19, %v4102_v18  ;;  %v5785_v22 = vld [vmem:[#allocation2 + $0x1e4] sm:$0xf0]  ;;  %v4030_v26 = vld [vmem:[#allocation2 + $0xd0] sm:$0xf]  ;;  %v5751_v27 = vld [vmem:[#allocation2 + $0xd4] sm:$0xf0]  ;;  %v3967_v29 = vor.u32 %v5735_v24, %v3966_v23 }
  0x38   : > { %v4167_v25 = vor.u32 %v5785_v22, %v4166_v20  ;;  %v4094_v28 = vld [vmem:[#allocation2 + $0x150] sm:$0xf]  ;;  %3047 = vmatpush.bf16.msra.mxu0 %v3975_v16  ;;  %v5767_v30 = vld [vmem:[#allocation2 + $0x154] sm:$0xf0]  ;;  %v4031_v33 = vor.u32 %v5751_v27, %v4030_v26  ;;  %v3958_v35 = vld [vmem:[#allocation2 + $0x40] sm:$0xf] }
  0x39   : > { %v4158_v31 = vld [vmem:[#allocation2 + $0x1d0] sm:$0xf]  ;;  %v5783_v32 = vld [vmem:[#allocation2 + $0x1d4] sm:$0xf0]  ;;  %3060 = vmatpush.bf16.msra.mxu1 %v4039_v17  ;;  %v4095_v34 = vor.u32 %v5767_v30, %v4094_v28  ;;  %v5733_v36 = vld [vmem:[#allocation2 + $0x44] sm:$0xf0] }
  0x3a   : > { %3073 = vmatpush.bf16.msra.mxu2 %v4103_v21  ;;  %v4022_v37 = vld [vmem:[#allocation2 + $0xc0] sm:$0xf]  ;;  %v4159_v38 = vor.u32 %v5783_v32, %v4158_v31  ;;  %v5749_v39 = vld [vmem:[#allocation2 + $0xc4] sm:$0xf0]  ;;  %v3959_v44 = vor.u32 %v5733_v36, %v3958_v35  ;;  %v3950_v47 = vld [vmem:[#allocation2 + $0x30] sm:$0xf] }
  0x3b   : > { %3086 = vmatpush.bf16.msra.mxu3 %v4167_v25  ;;  %v4086_v40 = vld [vmem:[#allocation2 + $0x140] sm:$0xf]  ;;  %v5765_v41 = vld [vmem:[#allocation2 + $0x144] sm:$0xf0]  ;;  %v4023_v45 = vor.u32 %v5749_v39, %v4022_v37  ;;  %v5731_v48 = vld [vmem:[#allocation2 + $0x34] sm:$0xf0] }
  0x3c   : > { %v4150_v42 = vld [vmem:[#allocation2 + $0x1c0] sm:$0xf]  ;;  %v5781_v43 = vld [vmem:[#allocation2 + $0x1c4] sm:$0xf0]  ;;  %3048 = vmatpush.bf16.msra.mxu0 %v3967_v29  ;;  %v4087_v46 = vor.u32 %v5765_v41, %v4086_v40  ;;  %v4014_v49 = vld [vmem:[#allocation2 + $0xb0] sm:$0xf]  ;;  %v3951_v56 = vor.u32 %v5731_v48, %v3950_v47 }
  0x3d   : > { %3061 = vmatpush.bf16.msra.mxu1 %v4031_v33  ;;  %v4151_v50 = vor.u32 %v5781_v43, %v4150_v42  ;;  %v5747_v51 = vld [vmem:[#allocation2 + $0xb4] sm:$0xf0]  ;;  %v4078_v52 = vld [vmem:[#allocation2 + $0x130] sm:$0xf]  ;;  %v3942_v59 = vld [vmem:[#allocation2 + $0x20] sm:$0xf] }
  0x3e   : > { %3074 = vmatpush.bf16.msra.mxu2 %v4095_v34  ;;  %v5763_v53 = vld [vmem:[#allocation2 + $0x134] sm:$0xf0]  ;;  %v4142_v54 = vld [vmem:[#allocation2 + $0x1b0] sm:$0xf]  ;;  %v4015_v57 = vor.u32 %v5747_v51, %v4014_v49  ;;  %v5729_v60 = vld [vmem:[#allocation2 + $0x24] sm:$0xf0] }
  0x3f   : > { %3087 = vmatpush.bf16.msra.mxu3 %v4159_v38  ;;  %v5779_v55 = vld [vmem:[#allocation2 + $0x1b4] sm:$0xf0]  ;;  %v4079_v58 = vor.u32 %v5763_v53, %v4078_v52  ;;  %v4006_v61 = vld [vmem:[#allocation2 + $0xa0] sm:$0xf]  ;;  %v5745_v63 = vld [vmem:[#allocation2 + $0xa4] sm:$0xf0]  ;;  %v3943_v4 = vor.u32 %v5729_v60, %v3942_v59 }
  0x40   : > { %3049 = vmatpush.bf16.msra.mxu0 %v3959_v44  ;;  %v4143_v62 = vor.u32 %v5779_v55, %v4142_v54  ;;  %v4070_v0 = vld [vmem:[#allocation2 + $0x120] sm:$0xf]  ;;  %v5761_v1 = vld [vmem:[#allocation2 + $0x124] sm:$0xf0]  ;;  %v4007_v5 = vor.u32 %v5745_v63, %v4006_v61  ;;  %v3934_v7 = vld [vmem:[#allocation2 + $0x10] sm:$0xf] }
  0x41   : > { %3062 = vmatpush.bf16.msra.mxu1 %v4023_v45  ;;  %v4134_v2 = vld [vmem:[#allocation2 + $0x1a0] sm:$0xf]  ;;  %v5777_v3 = vld [vmem:[#allocation2 + $0x1a4] sm:$0xf0]  ;;  %v4071_v6 = vor.u32 %v5761_v1, %v4070_v0  ;;  %v5727_v8 = vld [vmem:[#allocation2 + $0x14] sm:$0xf0] }
  0x42   : > { %3075 = vmatpush.bf16.msra.mxu2 %v4087_v46  ;;  %v3998_v9 = vld [vmem:[#allocation2 + $0x90] sm:$0xf]  ;;  %v4135_v10 = vor.u32 %v5777_v3, %v4134_v2  ;;  %v5743_v11 = vld [vmem:[#allocation2 + $0x94] sm:$0xf0]  ;;  %v3935_v16 = vor.u32 %v5727_v8, %v3934_v7  ;;  %v3926_v17 = vld [vmem:[#allocation2] sm:$0xf] }
  0x43   : > { %3088 = vmatpush.bf16.msra.mxu3 %v4151_v50  ;;  %v4062_v12 = vld [vmem:[#allocation2 + $0x110] sm:$0xf]  ;;  %v5759_v13 = vld [vmem:[#allocation2 + $0x114] sm:$0xf0]  ;;  %v5725_v18 = vld [vmem:[#allocation2 + $0x4] sm:$0xf0]  ;;  %v3999_v19 = vor.u32 %v5743_v11, %v3998_v9 }
  0x44   : > { %3050 = vmatpush.bf16.msra.mxu0 %v3951_v56  ;;  %v4126_v14 = vld [vmem:[#allocation2 + $0x190] sm:$0xf]  ;;  %v5775_v15 = vld [vmem:[#allocation2 + $0x194] sm:$0xf0]  ;;  %v4063_v20 = vor.u32 %v5759_v13, %v4062_v12  ;;  %v3990_v21 = vld [vmem:[#allocation2 + $0x80] sm:$0xf]  ;;  %v3927_v31 = vor.u32 %v5725_v18, %v3926_v17 }
  0x45   : > { %3063 = vmatpush.bf16.msra.mxu1 %v4015_v57  ;;  %v5741_v22 = vld [vmem:[#allocation2 + $0x84] sm:$0xf0]  ;;  %v4054_v23 = vld [vmem:[#allocation2 + $0x100] sm:$0xf]  ;;  %v4127_v24 = vor.u32 %v5775_v15, %v4126_v14  ;;  %v4238_v28 = vld [vmem:[#allocation2 + $0x270] sm:$0xf] }
  0x46   : > { %3076 = vmatpush.bf16.msra.mxu2 %v4079_v58  ;;  %v5757_v25 = vld [vmem:[#allocation2 + $0x104] sm:$0xf0]  ;;  %v4118_v26 = vld [vmem:[#allocation2 + $0x180] sm:$0xf]  ;;  %v5803_v29 = vld [vmem:[#allocation2 + $0x274] sm:$0xf0]  ;;  %v3991_v35 = vor.u32 %v5741_v22, %v3990_v21 }
  0x47   : > { %3089 = vmatpush.bf16.msra.mxu3 %v4143_v62  ;;  %v5773_v27 = vld [vmem:[#allocation2 + $0x184] sm:$0xf0]  ;;  %v4302_v30 = vld [vmem:[#allocation2 + $0x2f0] sm:$0xf]  ;;  %v5819_v32 = vld [vmem:[#allocation2 + $0x2f4] sm:$0xf0]  ;;  %v4055_v36 = vor.u32 %v5757_v25, %v4054_v23  ;;  %v4239_v40 = vor.u32 %v5803_v29, %v4238_v28 }
  0x48   : > { %3051 = vmatpush.bf16.msra.mxu0 %v3943_v4  ;;  %v4366_v33 = vld [vmem:[#allocation2 + $0x370] sm:$0xf]  ;;  %v5835_v34 = vld [vmem:[#allocation2 + $0x374] sm:$0xf0]  ;;  %v4119_v39 = vor.u32 %v5773_v27, %v4118_v26  ;;  %v4230_v41 = vld [vmem:[#allocation2 + $0x260] sm:$0xf]  ;;  %v4303_v43 = vor.u32 %v5819_v32, %v4302_v30 }
  0x49   : > { %3064 = vmatpush.bf16.msra.mxu1 %v4007_v5  ;;  %v4430_v37 = vld [vmem:[#allocation2 + $0x3f0] sm:$0xf]  ;;  %v5851_v38 = vld [vmem:[#allocation2 + $0x3f4] sm:$0xf0]  ;;  %v5801_v42 = vld [vmem:[#allocation2 + $0x264] sm:$0xf0]  ;;  %v4367_v44 = vor.u32 %v5835_v34, %v4366_v33 }
  0x4a   : > { %3077 = vmatpush.bf16.msra.mxu2 %v4071_v6  ;;  %v4294_v45 = vld [vmem:[#allocation2 + $0x2e0] sm:$0xf]  ;;  %v5817_v46 = vld [vmem:[#allocation2 + $0x2e4] sm:$0xf0]  ;;  %v4431_v48 = vor.u32 %v5851_v38, %v4430_v37  ;;  %v4222_v52 = vld [vmem:[#allocation2 + $0x250] sm:$0xf]  ;;  %v4231_v55 = vor.u32 %v5801_v42, %v4230_v41 }
  0x4b   : > { %3090 = vmatpush.bf16.msra.mxu3 %v4135_v10  ;;  %v4358_v47 = vld [vmem:[#allocation2 + $0x360] sm:$0xf]  ;;  %v5833_v49 = vld [vmem:[#allocation2 + $0x364] sm:$0xf0]  ;;  %v5799_v53 = vld [vmem:[#allocation2 + $0x254] sm:$0xf0]  ;;  %v4295_v59 = vor.u32 %v5817_v46, %v4294_v45 }
  0x4c   : > { %3052 = vmatpush.bf16.msra.mxu0 %v3935_v16  ;;  %v4422_v50 = vld [vmem:[#allocation2 + $0x3e0] sm:$0xf]  ;;  %v5849_v51 = vld [vmem:[#allocation2 + $0x3e4] sm:$0xf0]  ;;  %v4286_v54 = vld [vmem:[#allocation2 + $0x2d0] sm:$0xf]  ;;  %v4359_v60 = vor.u32 %v5833_v49, %v4358_v47  ;;  %v4223_v4 = vor.u32 %v5799_v53, %v4222_v52 }
  0x4d   : > { %3065 = vmatpush.bf16.msra.mxu1 %v3999_v19  ;;  %v5815_v56 = vld [vmem:[#allocation2 + $0x2d4] sm:$0xf0]  ;;  %v4350_v57 = vld [vmem:[#allocation2 + $0x350] sm:$0xf]  ;;  %v182_v63 = vld [vmem:[%s6497_s14] sm:$0xff]  ;;  %v4423_v0 = vor.u32 %v5849_v51, %v4422_v50  ;;  %vm259_vm2 = vcmask 1045504  }
  0x4e   : > { %3078 = vmatpush.bf16.msra.mxu2 %v4063_v20  ;;  %v5831_v58 = vld [vmem:[#allocation2 + $0x354] sm:$0xf0]  ;;  %v4414_v61 = vld [vmem:[#allocation2 + $0x3d0] sm:$0xf]  ;;  %v183_v1 = vld [vmem:[%s6497_s14 + $0x8] sm:$0xff]  ;;  %v4287_v5 = vor.u32 %v5815_v56, %v4286_v54  ;;  %s3923_s15 = sshll.u32 %s6493_s5, 4 }
  0x4f   : > { %3091 = vmatpush.bf16.msra.mxu3 %v4127_v24  ;;  %v5847_v62 = vld [vmem:[#allocation2 + $0x3d4] sm:$0xf0]  ;;  %v184_v2 = vld [vmem:[%s6497_s14 + $0x10] sm:$0xff]  ;;  %v186_v6 = vld [vmem:[%s6497_s14 + $0x20] sm:$0xff]  ;;  %v4351_v11 = vor.u32 %v5831_v58, %v4350_v57  ;;  %vm253_vm0 = vsmask.f32 1280 }
  0x50   : > { %3053 = vmatpush.bf16.msra.mxu0 %v3927_v31  ;;  %v185_v3 = vld [vmem:[%s6497_s14 + $0x18] sm:$0xff]  ;;  %v187_v7 = vld [vmem:[%s6497_s14 + $0x28] sm:$0xff]  ;;  %v188_v8 = vld [vmem:[%s6497_s14 + $0x30] sm:$0xff]  ;;  %v190_v9 = vadd.f32 %v184_v2, %v182_v63  ;;  %v198_v15 = vmax.f32 %v182_v63, %v186_v6  ;;  %v4415_v24 = vor.u32 %v5847_v62, %v4414_v61  ;;  %vm260_vm3 = vsmask.f32 5376  ;;  %s6770_s20 = scalar_lea.vmem [#allocation7], %s3923_s15 }
  0x51   : > { %3066 = vmatpush.bf16.msra.mxu1 %v3991_v35  ;;  %v193_v10 = vadd.f32 %v185_v3, %v183_v1  ;;  %v4214_v12 = vld [vmem:[#allocation2 + $0x240] sm:$0xf]  ;;  %v5797_v13 = vld [vmem:[#allocation2 + $0x244] sm:$0xf0]  ;;  %v189_v14 = vld [vmem:[%s6497_s14 + $0x38] sm:$0xff]  ;;  %v199_v16 = vmax.f32 %v184_v2, %v188_v8  ;;  %v201_v17 = vmax.f32 %v183_v1, %v187_v7  ;;  %s6172_s8 = sshll.u32 %s6415_s13, 4 }
  0x52   : > { %3079 = vmatpush.bf16.msra.mxu2 %v4055_v36  ;;  %v4278_v18 = vld [vmem:[#allocation2 + $0x2c0] sm:$0xf]  ;;  %v5813_v19 = vld [vmem:[#allocation2 + $0x2c4] sm:$0xf0]  ;;  %v202_v21 = vmax.f32 %v185_v3, %v189_v14  ;;  %v191_v22 = vadd.f32 %v190_v9, %v186_v6  ;;  %v4206_v29 = vld [vmem:[#allocation2 + $0x230] sm:$0xf]  ;;  %v4215_v34 = vor.u32 %v5797_v13, %v4214_v12  ;;  %s3826_s19 = scalar_lea.hbm %s6823_s2, %s6172_s8 }
  0x53   : > { %3092 = vmatpush.bf16.msra.mxu3 %v4119_v39  ;;  %v4342_v20 = vld [vmem:[#allocation2 + $0x340] sm:$0xf]  ;;  %v194_v23 = vadd.f32 %v193_v10, %v187_v7  ;;  %v5829_v25 = vld [vmem:[#allocation2 + $0x344] sm:$0xf0]  ;;  %v200_v28 = vmax.f32 %v198_v15, %v199_v16  ;;  %v5795_v30 = vld [vmem:[#allocation2 + $0x234] sm:$0xf0]  ;;  %v4279_v39 = vor.u32 %v5813_v19, %v4278_v18 }
  0x54   : > { %3098 = vmatpush.bf16.msrb.mxu0 %v4239_v40  ;;  %v4406_v26 = vld [vmem:[#allocation2 + $0x3c0] sm:$0xf]  ;;  %v5845_v27 = vld [vmem:[#allocation2 + $0x3c4] sm:$0xf0]  ;;  %v6511_v31 = vld [vmem:[#allocation2 + $0x2b0] sm:$0xf]  ;;  %v203_v32 = vmax.f32 %v201_v17, %v202_v21  ;;  %v192_v33 = vadd.f32 %v191_v22, %v188_v8  ;;  %v4343_v40 = vor.u32 %v5829_v25, %v4342_v20  ;;  %v4207_v46 = vor.u32 %v5795_v30, %v4206_v29 }
  0x55   : > { %3111 = vmatpush.bf16.msrb.mxu1 %v4303_v43  ;;  %v5811_v35 = vld [vmem:[#allocation2 + $0x2b4] sm:$0xf0]  ;;  %v4334_v36 = vld [vmem:[#allocation2 + $0x330] sm:$0xf]  ;;  %v195_v38 = vadd.f32 %v194_v23, %v189_v14  ;;  %v4407_v45 = vor.u32 %v5845_v27, %v4406_v26  ;;  %v6513_v47 = vld [vmem:[#allocation2 + $0x220] sm:$0xf] }
  0x56   : > { %3124 = vmatpush.bf16.msrb.mxu2 %v4367_v44  ;;  %v5827_v37 = vld [vmem:[#allocation2 + $0x334] sm:$0xf0]  ;;  %v4398_v41 = vld [vmem:[#allocation2 + $0x3b0] sm:$0xf]  ;;  %v205_v43 = vpack.c.bf16 %v203_v32, %v200_v28  ;;  %v196_v44 = vmul.f32 0.25, %v192_v33  ;;  %v4271_v49 = vor.u32 %v5811_v35, %v6511_v31  ;;  %vm6527_vm4 = vmand %vm252_vm1, %vm253_vm0  ;;  %s3828_s21 = sshll.u32 %s6770_s20, 4  ;;  %s3829_s21 = int_to_ptr.vmem [resolvable:$true] %s3828_s21 }
  0x57   : > { %3137 = vmatpush.bf16.msrb.mxu3 %v4431_v48  ;;  %v5843_v42 = vld [vmem:[#allocation2 + $0x3b4] sm:$0xf0]  ;;  %v197_v48 = vmul.f32 0.25, %v195_v38  ;;  %v4335_v50 = vor.u32 %v5827_v37, %v4334_v36  ;;  %v5793_v52 = vld [vmem:[#allocation2 + $0x224] sm:$0xf0]  ;;  %vm6533_vm5 = vmand %vm259_vm2, %vm260_vm3  ;;  %s3830_s22 = sshll.u32 %s3826_s19, 4  ;;  %s3831_s22 = int_to_ptr.hbm [resolvable:$true] %s3830_s22 }
  0x58   : > { %3099 = vmatpush.bf16.msrb.mxu0 %v4231_v55  ;;  %v210_v51 = vunpack.c.l.b16 %v205_v43  ;;  %v6516_v53 = vld [vmem:[#allocation2 + $0x2a0] sm:$0xf]  ;;  %v6518_v54 = vld [vmem:[#allocation2 + $0x2a4] sm:$0xf0]  ;;  %v211_v55 = vunpack.c.h.b16 %v205_v43  ;;  %v4399_v58 = vor.u32 %v5843_v42, %v4398_v41  ;;  %v5791_v9 = vld [vmem:[#allocation2 + $0x214] sm:$0xf0] }
  0x59   : > { %3112 = vmatpush.bf16.msrb.mxu1 %v4295_v59  ;;  %v4326_v56 = vld [vmem:[#allocation2 + $0x320] sm:$0xf]  ;;  %v204_v57 = vpack.c.bf16 %v197_v48, %v196_v44  ;;  %v5841_v62 = vld [vmem:[#allocation2 + $0x3a4] sm:$0xf0]  ;;  %v4263_v1 = vor.u32 %v6518_v54, %v6516_v53  ;;  %v4254_v14 = vld [vmem:[#allocation2 + $0x290] sm:$0xf] }
  0x5a   : > { %3125 = vmatpush.bf16.msrb.mxu2 %v4359_v60  ;;  %v214_v59 = vpack.c.b16 %v210_v51, %v210_v51  ;;  %v5825_v60 = vld [vmem:[#allocation2 + $0x324] sm:$0xf0]  ;;  %v4390_v61 = vld [vmem:[#allocation2 + $0x3a0] sm:$0xf]  ;;  %v215_v63 = vpack.c.b16 %v211_v55, %v211_v55  ;;  %v5807_v15 = vld [vmem:[#allocation2 + $0x294] sm:$0xf0] }
  0x5b   : > { %3138 = vmatpush.bf16.msrb.mxu3 %v4423_v0  ;;  %v4199_v0 = vor.u32 %v5793_v52, %v6513_v47  ;;  %v208_v2 = vunpack.c.l.b16 %v204_v57  ;;  %v209_v3 = vunpack.c.h.b16 %v204_v57  ;;  %v4327_v10 = vor.u32 %v5825_v60, %v4326_v56  ;;  %v4318_v16 = vld [vmem:[#allocation2 + $0x310] sm:$0xf]  ;;  %v5823_v22 = vld [vmem:[#allocation2 + $0x314] sm:$0xf0]  ;;  %v4182_v33 = vld [vmem:[#allocation2 + $0x200] sm:$0xf] }
  0x5c   : > { %3100 = vmatpush.bf16.msrb.mxu0 %v4223_v4  ;;  %v6523_v4 = vld [vmem:[#allocation2 + $0x210] sm:$0xf]  ;;  %v236_v6 = vshll.u32 %v214_v59, 16  ;;  %v241_v7 = vshrl.u32 %v215_v63, 16  ;;  %v244_v8 = vshll.u32 %v215_v63, 16  ;;  %v4255_v43 = vor.u32 %v5807_v15, %v4254_v14  ;;  %s3815_s13 = scalar_lea.sflag [#allocation4], %s6493_s5 }
  0x5d   : > { %3113 = vmatpush.bf16.msrb.mxu1 %v4287_v5  ;;  %v233_v5 = vshrl.u32 %v214_v59, 16  ;;  %v212_v12 = vpack.c.b16 %v208_v2, %v208_v2  ;;  %v213_v13 = vpack.c.b16 %v209_v3, %v209_v3  ;;  %v4382_v28 = vld [vmem:[#allocation2 + $0x390] sm:$0xf]  ;;  %v4191_v31 = vor.u32 %v5791_v9, %v6523_v4  ;;  %v5839_v32 = vld [vmem:[#allocation2 + $0x394] sm:$0xf0]  ;;  %s6316_s24 = sshra.s32 %s3831_s22, 4  ;;  %s6317_s24 = int_to_ptr.hbm [resolvable:$true] %s6316_s24 }
  0x5e   : > { %3126 = vmatpush.bf16.msrb.mxu2 %v4351_v11  ;;  %v4391_v11 = vor.u32 %v5841_v62, %v4390_v61  ;;  %v238_v18 = vrot.slane %v236_v6, 7  ;;  %v243_v20 = vrot.slane %v241_v7, 6  ;;  %v246_v21 = vrot.slane %v244_v8, 7  ;;  %v4374_v51 = vld [vmem:[#allocation2 + $0x380] sm:$0xf]  ;;  %s6318_s25 = scalar_lea.hbm %s6317_s24, 16  ;;  %p6323_p11 = scmp.lt.s32.totalorder %s6317_s24, %s6823_s2 }
  0x5f   : > { %3139 = vmatpush.bf16.msrb.mxu3 %v4415_v24  ;;  %v235_v17 = vrot.slane %v233_v5, 6  ;;  %v217_v24 = vshrl.u32 %v212_v12, 16  ;;  %v220_v25 = vshll.u32 %v212_v12, 16  ;;  %v225_v26 = vshrl.u32 %v213_v13, 16  ;;  %v5837_v52 = vld [vmem:[#allocation2 + $0x384] sm:$0xf0]  ;;  %p6319_p1 = scmp.ne.s32.totalorder %s6317_s24, %s6318_s25 }
  0x60   : > { %3101 = vmatpush.bf16.msrb.mxu0 %v4215_v34  ;;  %v228_v27 = vshll.u32 %v213_v13, 16  ;;  %v247_v30 = vor.u32 %v246_v21, %v243_v20  ;;  %v5789_v34 = vld [vmem:[#allocation2 + $0x204] sm:$0xf0]  ;;  %v4319_v44 = vor.u32 %v5823_v22, %v4318_v16  ;;  %v4494_v53 = vld [vmem:[#allocation2 + $0x470] sm:$0xf]  ;;  %v4383_v55 = vor.u32 %v5839_v32, %v4382_v28  ;;  %s6322_s3 = scalar_lea.hbm %s6823_s2, 32 }
  0x61   : > { %3114 = vmatpush.bf16.msrb.mxu1 %v4279_v39  ;;  %v239_v29 = vor.u32 %v238_v18, %v235_v17  ;;  %v219_v35 = vrot.slane %v217_v24, 6  ;;  %v222_v36 = vrot.slane %v220_v25, 7  ;;  %v227_v37 = vrot.slane %v225_v26, 6  ;;  %v4246_v39 = vld [vmem:[#allocation2 + $0x280] sm:$0xf]  ;;  %p6320_p4 = pnand %p6319_p1, %p6461_p7  ;;  %p6324_p9 = scmp.lt.s32.totalorder %s6322_s3, %s6318_s25 }
  0x62   : > { %3127 = vmatpush.bf16.msrb.mxu2 %v4343_v40  ;;  %v230_v38 = vrot.slane %v228_v27, 7  ;;  %v5805_v40 = vld [vmem:[#allocation2 + $0x284] sm:$0xf0]  ;;  %v258_v42 = vsel %vm6527_vm4, 0, %v247_v30  ;;  %v5867_v54 = vld [vmem:[#allocation2 + $0x474] sm:$0xf0]  ;;  %v4183_v61 = vor.u32 %v5789_v34, %v4182_v33 }
  0x63   : > { %3140 = vmatpush.bf16.msrb.mxu3 %v4407_v45  ;;  %v257_v41 = vsel %vm6527_vm4, 0, %v239_v29  ;;  %v4310_v45 = vld [vmem:[#allocation2 + $0x300] sm:$0xf]  ;;  %v223_v48 = vor.u32 %v222_v36, %v219_v35  ;;  %v4558_v56 = vld [vmem:[#allocation2 + $0x4f0] sm:$0xf]  ;;  %v4247_v2 = vor.u32 %v5805_v40, %v4246_v39  ;;  %v4495_v6 = vor.u32 %v5867_v54, %v4494_v53  ;;  %p6321_p8 = pneg %p6320_p4  ;;  %p6325_p2 = por %p6324_p9, %p6323_p11 }
  0x64   : > { %3102 = vmatpush.bf16.msrb.mxu0 %v4207_v46  ;;  %v5821_v46 = vld [vmem:[#allocation2 + $0x304] sm:$0xf0]  ;;  %v6544_v47 = vsel %vm6533_vm5, %v257_v41, 0  ;;  %v5883_v57 = vld [vmem:[#allocation2 + $0x4f4] sm:$0xf0] }
  0x65   : > { %3115 = vmatpush.bf16.msrb.mxu1 %v4271_v49  ;;  %v6548_v49 = vsel %vm6533_vm5, %v258_v42, 0  ;;  %3080 = vmatmul.bf16.vlgmr.msra.gmra.mxu2 %v6544_v47  ;;  %v255_v59 = vsel %vm6527_vm4, 0, %v223_v48  ;;  %v5899_v62 = vld [vmem:[#allocation2 + $0x574] sm:$0xf0]  ;;  %v4686_v63 = vld [vmem:[#allocation2 + $0x5f0] sm:$0xf]  ;;  %v4311_v3 = vor.u32 %v5821_v46, %v4310_v45  ;;  %v4559_v7 = vor.u32 %v5883_v57, %v4558_v56  ;;  %p6326_p10 = pnand %p6325_p2, %p6321_p8 }
  0x66   : > { %3128 = vmatpush.bf16.msrb.mxu2 %v4335_v50  ;;  %v231_v50 = vor.u32 %v230_v38, %v227_v37  ;;  %3093 = vmatmul.bf16.vlgmr.msra.gmra.mxu3 %v6548_v49  ;;  %v5915_v4 = vld [vmem:[#allocation2 + $0x5f4] sm:$0xf0]  ;;  %v4486_v5 = vld [vmem:[#allocation2 + $0x460] sm:$0xf]  ;;  %v5865_v8 = vld [vmem:[#allocation2 + $0x464] sm:$0xf0] }
  0x67   : > { %3141 = vmatpush.bf16.msrb.mxu3 %v4399_v58  ;;  %v4622_v58 = vld [vmem:[#allocation2 + $0x570] sm:$0xf]  ;;  %v4550_v9 = vld [vmem:[#allocation2 + $0x4e0] sm:$0xf]  ;;  %v5897_v14 = vld [vmem:[#allocation2 + $0x564] sm:$0xf0]  ;;  %v4687_v17 = vor.u32 %v5915_v4, %v4686_v63  ;;  %v4487_v18 = vor.u32 %v5865_v8, %v4486_v5 }
  0x68   : > { %3103 = vmatpush.bf16.msrb.mxu0 %v4199_v0  ;;  %v256_v60 = vsel %vm6527_vm4, 0, %v231_v50  ;;  %v6558_v0 = vsel %vm6533_vm5, %v255_v59, 0  ;;  %v4623_v12 = vor.u32 %v5899_v62, %v4622_v58  ;;  %v4614_v13 = vld [vmem:[#allocation2 + $0x560] sm:$0xf]  ;;  %v6567_v15 = vshll.u32 %v6544_v47, 16 }
  0x69   : > { %3116 = vmatpush.bf16.msrb.mxu1 %v4263_v1  ;;  %v6562_v1 = vsel %vm6533_vm5, %v256_v60, 0  ;;  %3054 = vmatmul.bf16.vlgmr.msra.gmra.mxu0 %v6558_v0  ;;  %v6570_v16 = vshll.u32 %v6548_v49, 16  ;;  %v4678_v19 = vld [vmem:[#allocation2 + $0x5e0] sm:$0xf]  ;;  %v5913_v20 = vld [vmem:[#allocation2 + $0x5e4] sm:$0xf0]  ;;  %v4615_v23 = vor.u32 %v5897_v14, %v4614_v13 }
  0x6a   : > { %3129 = vmatpush.bf16.msrb.mxu2 %v4327_v10  ;;  %3067 = vmatmul.bf16.vlgmr.msra.gmra.mxu1 %v6562_v1  ;;  %v5881_v10 = vld [vmem:[#allocation2 + $0x4e4] sm:$0xf0]  ;;  %v4478_v21 = vld [vmem:[#allocation2 + $0x450] sm:$0xf]  ;;  %v6573_v24 = vshll.u32 %v6558_v0, 16  ;;  %v6576_v27 = vshll.u32 %v6562_v1, 16  ;;  %v4679_v33 = vor.u32 %v5913_v20, %v4678_v19 }
  0x6b   : > { %3142 = vmatpush.bf16.msrb.mxu3 %v4391_v11  ;;  %v4375_v11 = vor.u32 %v5837_v52, %v4374_v51  ;;  %v4551_v22 = vor.u32 %v5881_v10, %v4550_v9  ;;  %v5863_v25 = vld [vmem:[#allocation2 + $0x454] sm:$0xf0]  ;;  %v4542_v26 = vld [vmem:[#allocation2 + $0x4d0] sm:$0xf]  ;;  %v6579_v28 = vshrl.u32 %v6544_v47, 16  ;;  %v285_v29 = vrot.slane %v6567_v15, 1 }
  0x6c   : > { %3104 = vmatpush.bf16.msrb.mxu0 %v4191_v31  ;;  %v6583_v30 = vshrl.u32 %v6548_v49, 16  ;;  %v292_v31 = vrot.slane %v6570_v16, 1  ;;  %v5879_v32 = vld [vmem:[#allocation2 + $0x4d4] sm:$0xf0]  ;;  %v4606_v34 = vld [vmem:[#allocation2 + $0x550] sm:$0xf]  ;;  %v4479_v37 = vor.u32 %v5863_v25, %v4478_v21 }
  0x6d   : > { %3117 = vmatpush.bf16.msrb.mxu1 %v4255_v43  ;;  %v5895_v35 = vld [vmem:[#allocation2 + $0x554] sm:$0xf0]  ;;  %v6587_v36 = vshrl.u32 %v6558_v0, 16  ;;  %v4670_v38 = vld [vmem:[#allocation2 + $0x5d0] sm:$0xf]  ;;  %v271_v40 = vrot.slane %v6573_v24, 1  ;;  %v4543_v41 = vor.u32 %v5879_v32, %v4542_v26 }
  0x6e   : > { %3130 = vmatpush.bf16.msrb.mxu2 %v4319_v44  ;;  %v5911_v39 = vld [vmem:[#allocation2 + $0x5d4] sm:$0xf0]  ;;  %v6591_v42 = vshrl.u32 %v6562_v1, 16  ;;  %v278_v43 = vrot.slane %v6576_v27, 1  ;;  %v6595_v44 = vor.u32 %v285_v29, %v6579_v28  ;;  %v6598_v45 = vor.u32 %v292_v31, %v6583_v30  ;;  %v4470_v46 = vld [vmem:[#allocation2 + $0x440] sm:$0xf] }
  0x6f   : > { %3143 = vmatpush.bf16.msrb.mxu3 %v4383_v55  ;;  %v5861_v48 = vld [vmem:[#allocation2 + $0x444] sm:$0xf0]  ;;  %v4607_v50 = vor.u32 %v5895_v35, %v4606_v34  ;;  %v4671_v51 = vor.u32 %v5911_v39, %v4670_v38  ;;  %v4534_v52 = vld [vmem:[#allocation2 + $0x4c0] sm:$0xf]  ;;  %v6601_v58 = vor.u32 %v271_v40, %v6587_v36  ;;  %v4462_v62 = vld [vmem:[#allocation2 + $0x430] sm:$0xf] }
  0x70   : > { %3105 = vmatpush.bf16.msrb.mxu0 %v4183_v61  ;;  %v5877_v53 = vld [vmem:[#allocation2 + $0x4c4] sm:$0xf0]  ;;  %v4598_v54 = vld [vmem:[#allocation2 + $0x540] sm:$0xf]  ;;  %v6604_v59 = vor.u32 %v278_v43, %v6591_v42  ;;  %v4471_v60 = vor.u32 %v5861_v48, %v4470_v46  ;;  %v5859_v63 = vld [vmem:[#allocation2 + $0x434] sm:$0xf0] }
  0x71   : > { %3118 = vmatpush.bf16.msrb.mxu1 %v4247_v2  ;;  %v5893_v55 = vld [vmem:[#allocation2 + $0x544] sm:$0xf0]  ;;  %v4662_v56 = vld [vmem:[#allocation2 + $0x5c0] sm:$0xf]  ;;  %v4535_v61 = vor.u32 %v5877_v53, %v4534_v52  ;;  %v4526_v4 = vld [vmem:[#allocation2 + $0x4b0] sm:$0xf]  ;;  %v4463_v10 = vor.u32 %v5859_v63, %v4462_v62 }
  0x72   : > { %3131 = vmatpush.bf16.msrb.mxu2 %v4311_v3  ;;  %v5909_v57 = vld [vmem:[#allocation2 + $0x5c4] sm:$0xf0]  ;;  %v4599_v2 = vor.u32 %v5893_v55, %v4598_v54  ;;  %v5875_v5 = vld [vmem:[#allocation2 + $0x4b4] sm:$0xf0]  ;;  %v4654_v8 = vld [vmem:[#allocation2 + $0x5b0] sm:$0xf] }
  0x73   : > { %3144 = vmatpush.bf16.msrb.mxu3 %v4375_v11  ;;  %v4663_v3 = vor.u32 %v5909_v57, %v4662_v56  ;;  %v5907_v9 = vld [vmem:[#allocation2 + $0x5b4] sm:$0xf0]  ;;  %v4527_v11 = vor.u32 %v5875_v5, %v4526_v4  ;;  %v5857_v13 = vld [vmem:[#allocation2 + $0x424] sm:$0xf0]  ;;  %v4582_v20 = vld [vmem:[#allocation2 + $0x520] sm:$0xf] }
  0x74   : > { %3150 = vmatpush.bf16.msra.mxu0 %v4495_v6  ;;  %v4590_v6 = vld [vmem:[#allocation2 + $0x530] sm:$0xf]  ;;  %v5873_v19 = vld [vmem:[#allocation2 + $0x4a4] sm:$0xf0]  ;;  %v5855_v31 = vld [vmem:[#allocation2 + $0x414] sm:$0xf0] }
  0x75   : > { %3163 = vmatpush.bf16.msra.mxu1 %v4559_v7  ;;  %3132 = vmatmul.bf16.vlgmr.msrb.gmra.mxu2 %v6595_v44  ;;  %v5891_v7 = vld [vmem:[#allocation2 + $0x534] sm:$0xf0]  ;;  %v5889_v21 = vld [vmem:[#allocation2 + $0x524] sm:$0xf0]  ;;  %v4446_v29 = vld [vmem:[#allocation2 + $0x410] sm:$0xf] }
  0x76   : > { %3176 = vmatpush.bf16.msra.mxu2 %v4623_v12  ;;  %3145 = vmatmul.bf16.vlgmr.msrb.gmra.mxu3 %v6598_v45  ;;  %v4454_v12 = vld [vmem:[#allocation2 + $0x420] sm:$0xf]  ;;  %v4591_v14 = vor.u32 %v5891_v7, %v4590_v6  ;;  %v4583_v32 = vor.u32 %v5889_v21, %v4582_v20  ;;  %v4510_v34 = vld [vmem:[#allocation2 + $0x490] sm:$0xf]  ;;  %v5871_v35 = vld [vmem:[#allocation2 + $0x494] sm:$0xf0]  ;;  %v4447_v43 = vor.u32 %v5855_v31, %v4446_v29 }
  0x77   : > { %3189 = vmatpush.bf16.msra.mxu3 %v4687_v17  ;;  %v4655_v17 = vor.u32 %v5907_v9, %v4654_v8  ;;  %v4455_v25 = vor.u32 %v5857_v13, %v4454_v12  ;;  %v5887_v38 = vld [vmem:[#allocation2 + $0x514] sm:$0xf0]  ;;  %v4638_v39 = vld [vmem:[#allocation2 + $0x590] sm:$0xf]  ;;  %v4511_v46 = vor.u32 %v5871_v35, %v4510_v34  ;;  %v5853_v48 = vld [vmem:[#allocation2 + $0x404] sm:$0xf0] }
  0x78   : > { %3151 = vmatpush.bf16.msra.mxu0 %v4487_v18  ;;  %v4518_v18 = vld [vmem:[#allocation2 + $0x4a0] sm:$0xf]  ;;  %v5903_v40 = vld [vmem:[#allocation2 + $0x594] sm:$0xf0]  ;;  %v5885_v55 = vld [vmem:[#allocation2 + $0x504] sm:$0xf0] }
  0x79   : > { %3164 = vmatpush.bf16.msra.mxu1 %v4551_v22  ;;  %3106 = vmatmul.bf16.vlgmr.msrb.gmra.mxu0 %v6601_v58  ;;  %v4646_v22 = vld [vmem:[#allocation2 + $0x5a0] sm:$0xf]  ;;  %v4519_v26 = vor.u32 %v5873_v19, %v4518_v18  ;;  %v4639_v53 = vor.u32 %v5903_v40, %v4638_v39  ;;  %v5901_v57 = vld [vmem:[#allocation2 + $0x584] sm:$0xf0]  ;;  %v4814_v62 = vld [vmem:[#allocation2 + $0x6f0] sm:$0xf] }
  0x7a   : > { %3177 = vmatpush.bf16.msra.mxu2 %v4615_v23  ;;  %3119 = vmatmul.bf16.vlgmr.msrb.gmra.mxu1 %v6604_v59  ;;  %v5905_v23 = vld [vmem:[#allocation2 + $0x5a4] sm:$0xf0]  ;;  %v4566_v54 = vld [vmem:[#allocation2 + $0x500] sm:$0xf]  ;;  %v5947_v63 = vld [vmem:[#allocation2 + $0x6f4] sm:$0xf0] }
  0x7b   : > { %3190 = vmatpush.bf16.msra.mxu3 %v4679_v33  ;;  %v4647_v33 = vor.u32 %v5905_v23, %v4646_v22  ;;  %v4630_v56 = vld [vmem:[#allocation2 + $0x580] sm:$0xf]  ;;  %v5963_v5 = vld [vmem:[#allocation2 + $0x774] sm:$0xf0]  ;;  %v4942_v6 = vld [vmem:[#allocation2 + $0x7f0] sm:$0xf]  ;;  %v4567_v8 = vor.u32 %v5885_v55, %v4566_v54 }
  0x7c   : > { %3152 = vmatpush.bf16.msra.mxu0 %v4479_v37  ;;  %v4574_v37 = vld [vmem:[#allocation2 + $0x510] sm:$0xf]  ;;  %v5979_v7 = vld [vmem:[#allocation2 + $0x7f4] sm:$0xf0]  ;;  %v4631_v9 = vor.u32 %v5901_v57, %v4630_v56  ;;  %v302_v12 = vrot.slane %v6558_v0, 1  ;;  %v304_v13 = vrot.slane %v6544_v47, 1 }
  0x7d   : > { %3165 = vmatpush.bf16.msra.mxu1 %v4543_v41  ;;  %v4438_v41 = vld [vmem:[#allocation2 + $0x400] sm:$0xf]  ;;  %v4575_v52 = vor.u32 %v5887_v38, %v4574_v37  ;;  %v4943_v19 = vor.u32 %v5979_v7, %v4942_v6  ;;  %v5945_v21 = vld [vmem:[#allocation2 + $0x6e4] sm:$0xf0]  ;;  %v303_v29 = vrot.slane %v6562_v1, 1  ;;  %v305_v31 = vrot.slane %v6548_v49, 1 }
  0x7e   : > { %3178 = vmatpush.bf16.msra.mxu2 %v4607_v50  ;;  %v4502_v50 = vld [vmem:[#allocation2 + $0x480] sm:$0xf]  ;;  %v5961_v23 = vld [vmem:[#allocation2 + $0x764] sm:$0xf0]  ;;  %v4734_v34 = vld [vmem:[#allocation2 + $0x650] sm:$0xf] }
  0x7f   : > { %3191 = vmatpush.bf16.msra.mxu3 %v4671_v51  ;;  %v5869_v51 = vld [vmem:[#allocation2 + $0x484] sm:$0xf0]  ;;  %v4806_v20 = vld [vmem:[#allocation2 + $0x6e0] sm:$0xf]  ;;  %v5927_v35 = vld [vmem:[#allocation2 + $0x654] sm:$0xf0] }
  0x80   : > { %3153 = vmatpush.bf16.msra.mxu0 %v4471_v60  ;;  %v4750_v60 = vld [vmem:[#allocation2 + $0x670] sm:$0xf]  ;;  %v4503_v4 = vor.u32 %v5869_v51, %v4502_v50  ;;  %v4870_v22 = vld [vmem:[#allocation2 + $0x760] sm:$0xf]  ;;  %v5943_v40 = vld [vmem:[#allocation2 + $0x6d4] sm:$0xf0]  ;;  %v4735_v50 = vor.u32 %v5927_v35, %v4734_v34 }
  0x81   : > { %3166 = vmatpush.bf16.msra.mxu1 %v4535_v61  ;;  %v5931_v61 = vld [vmem:[#allocation2 + $0x674] sm:$0xf0]  ;;  %v4871_v37 = vor.u32 %v5961_v23, %v4870_v22  ;;  %v4798_v39 = vld [vmem:[#allocation2 + $0x6d0] sm:$0xf]  ;;  %v4790_v56 = vld [vmem:[#allocation2 + $0x6c0] sm:$0xf] }
  0x82   : > { %3179 = vmatpush.bf16.msra.mxu2 %v4599_v2  ;;  %v4878_v2 = vld [vmem:[#allocation2 + $0x770] sm:$0xf]  ;;  %v4799_v51 = vor.u32 %v5943_v40, %v4798_v39  ;;  %v5941_v57 = vld [vmem:[#allocation2 + $0x6c4] sm:$0xf0]  ;;  %v4902_v34 = vld [vmem:[#allocation2 + $0x7a0] sm:$0xf] }
  0x83   : > { %3192 = vmatpush.bf16.msra.mxu3 %v4663_v3  ;;  %v4439_v3 = vor.u32 %v5853_v48, %v4438_v41  ;;  %v4879_v18 = vor.u32 %v5963_v5, %v4878_v2  ;;  %v4862_v41 = vld [vmem:[#allocation2 + $0x750] sm:$0xf]  ;;  %v5975_v48 = vld [vmem:[#allocation2 + $0x7d4] sm:$0xf0]  ;;  %v5969_v35 = vld [vmem:[#allocation2 + $0x7a4] sm:$0xf0] }
  0x84   : > { %3154 = vmatpush.bf16.msra.mxu0 %v4463_v10  ;;  %v4751_v10 = vor.u32 %v5931_v61, %v4750_v60  ;;  %v4854_v60 = vld [vmem:[#allocation2 + $0x740] sm:$0xf]  ;;  %v5957_v61 = vld [vmem:[#allocation2 + $0x744] sm:$0xf0]  ;;  %v5923_v5 = vld [vmem:[#allocation2 + $0x634] sm:$0xf0] }
  0x85   : > { %3167 = vmatpush.bf16.msra.mxu1 %v4527_v11  ;;  %v4815_v11 = vor.u32 %v5947_v63, %v4814_v62  ;;  %v4918_v62 = vld [vmem:[#allocation2 + $0x7c0] sm:$0xf]  ;;  %v5973_v63 = vld [vmem:[#allocation2 + $0x7c4] sm:$0xf0]  ;;  %v4855_v6 = vor.u32 %v5957_v61, %v4854_v60  ;;  %v5919_v40 = vld [vmem:[#allocation2 + $0x614] sm:$0xf0] }
  0x86   : > { %3180 = vmatpush.bf16.msra.mxu2 %v4591_v14  ;;  %v4742_v14 = vld [vmem:[#allocation2 + $0x660] sm:$0xf]  ;;  %v4919_v7 = vor.u32 %v5973_v63, %v4918_v62  ;;  %v5949_v63 = vld [vmem:[#allocation2 + $0x704] sm:$0xf0] }
  0x87   : > { %3193 = vmatpush.bf16.msra.mxu3 %v4655_v17  ;;  %v5929_v17 = vld [vmem:[#allocation2 + $0x664] sm:$0xf0]  ;;  %v4822_v60 = vld [vmem:[#allocation2 + $0x700] sm:$0xf] }
  0x88   : > { %3155 = vmatpush.bf16.msra.mxu0 %v4455_v25  ;;  %v4934_v25 = vld [vmem:[#allocation2 + $0x7e0] sm:$0xf] }
  0x89   : > { %3168 = vmatpush.bf16.msra.mxu1 %v4519_v26  ;;  %v5977_v26 = vld [vmem:[#allocation2 + $0x7e4] sm:$0xf0] }
  0x8a   : > { %3181 = vmatpush.bf16.msra.mxu2 %v4583_v32  ;;  %v4743_v32 = vor.u32 %v5929_v17, %v4742_v14  ;;  %v4935_v38 = vor.u32 %v5977_v26, %v4934_v25  ;;  %v4910_v14 = vld [vmem:[#allocation2 + $0x7b0] sm:$0xf]  ;;  %v5971_v17 = vld [vmem:[#allocation2 + $0x7b4] sm:$0xf0]  ;;  %v4774_v25 = vld [vmem:[#allocation2 + $0x6a0] sm:$0xf] }
  0x8b   : > { %3194 = vmatpush.bf16.msra.mxu3 %v4647_v33  ;;  %v4807_v33 = vor.u32 %v5945_v21, %v4806_v20  ;;  %v4710_v20 = vld [vmem:[#allocation2 + $0x620] sm:$0xf]  ;;  %v5921_v21 = vld [vmem:[#allocation2 + $0x624] sm:$0xf0]  ;;  %v4911_v23 = vor.u32 %v5971_v17, %v4910_v14  ;;  %v4823_v14 = vor.u32 %v5949_v63, %v4822_v60  ;;  %v5991_v63 = vld [vmem:[#allocation2 + $0x854] sm:$0xf0] }
  0x8c   : > { %3156 = vmatpush.bf16.msra.mxu0 %v4447_v43  ;;  %v5959_v43 = vld [vmem:[#allocation2 + $0x754] sm:$0xf0]  ;;  %v5937_v26 = vld [vmem:[#allocation2 + $0x6a4] sm:$0xf0] }
  0x8d   : > { %3169 = vmatpush.bf16.msra.mxu1 %v4511_v46  ;;  %v4926_v46 = vld [vmem:[#allocation2 + $0x7d0] sm:$0xf]  ;;  %v4863_v54 = vor.u32 %v5959_v43, %v4862_v41  ;;  %v4775_v39 = vor.u32 %v5937_v26, %v4774_v25  ;;  %v5935_v43 = vld [vmem:[#allocation2 + $0x694] sm:$0xf0]  ;;  %v316_v25 = vrot.slane %v6579_v28, 1  ;;  %v317_v26 = vrot.slane %v6567_v15, 2 }
  0x8e   : > { %3182 = vmatpush.bf16.msra.mxu2 %v4575_v52  ;;  %v4726_v52 = vld [vmem:[#allocation2 + $0x640] sm:$0xf]  ;;  %v4927_v55 = vor.u32 %v5975_v48, %v4926_v46  ;;  %v4766_v41 = vld [vmem:[#allocation2 + $0x690] sm:$0xf]  ;;  %v4903_v48 = vor.u32 %v5969_v35, %v4902_v34  ;;  %v319_v34 = vrot.slane %v6583_v30, 1  ;;  %v320_v35 = vrot.slane %v6570_v16, 2 }
  0x8f   : > { %3195 = vmatpush.bf16.msra.mxu3 %v4639_v53  ;;  %v5925_v53 = vld [vmem:[#allocation2 + $0x644] sm:$0xf0]  ;;  %v4767_v62 = vor.u32 %v5935_v43, %v4766_v41 }
  0x90   : > { %3157 = vmatpush.bf16.msra.mxu0 %v4439_v3  ;;  %v4727_v2 = vor.u32 %v5925_v53, %v4726_v52  ;;  %v4791_v3 = vor.u32 %v5941_v57, %v4790_v56  ;;  %v4894_v52 = vld [vmem:[#allocation2 + $0x790] sm:$0xf]  ;;  %v5967_v53 = vld [vmem:[#allocation2 + $0x794] sm:$0xf0]  ;;  %v4758_v56 = vld [vmem:[#allocation2 + $0x680] sm:$0xf] }
  0x91   : > { %3170 = vmatpush.bf16.msra.mxu1 %v4503_v4  ;;  %v4718_v4 = vld [vmem:[#allocation2 + $0x630] sm:$0xf]  ;;  %v5933_v57 = vld [vmem:[#allocation2 + $0x684] sm:$0xf0] }
  0x92   : > { %3183 = vmatpush.bf16.msra.mxu2 %v4567_v8  ;;  %v4782_v8 = vld [vmem:[#allocation2 + $0x6b0] sm:$0xf] }
  0x93   : > { %3196 = vmatpush.bf16.msra.mxu3 %v4631_v9  ;;  %3158 = vmatmul.bf16.vlgmr.msra.gmra.mxu0 %v302_v12  ;;  %v5939_v9 = vld [vmem:[#allocation2 + $0x6b4] sm:$0xf0] }
  0x94   : > { %3202 = vmatpush.bf16.msrb.mxu0 %v4751_v10  ;;  %3171 = vmatmul.bf16.vlgmr.msra.gmra.mxu1 %v303_v29  ;;  %v4846_v10 = vld [vmem:[#allocation2 + $0x730] sm:$0xf] }
  0x95   : > { %3215 = vmatpush.bf16.msrb.mxu1 %v4815_v11  ;;  %3184 = vmatmul.bf16.vlgmr.msra.gmra.mxu2 %v304_v13  ;;  %v5955_v11 = vld [vmem:[#allocation2 + $0x734] sm:$0xf0] }
  0x96   : > { %3228 = vmatpush.bf16.msrb.mxu2 %v4879_v18  ;;  %3197 = vmatmul.bf16.vlgmr.msra.gmra.mxu3 %v305_v31  ;;  %v4719_v18 = vor.u32 %v5923_v5, %v4718_v4  ;;  %v4847_v22 = vor.u32 %v5955_v11, %v4846_v10  ;;  %v4895_v5 = vor.u32 %v5967_v53, %v4894_v52  ;;  %v6025_v53 = vld [vmem:[#allocation2 + $0x964] sm:$0xf0] }
  0x97   : > { %3241 = vmatpush.bf16.msrb.mxu3 %v4943_v19  ;;  %v4783_v19 = vor.u32 %v5939_v9, %v4782_v8  ;;  %v5070_v8 = vld [vmem:[#allocation2 + $0x8f0] sm:$0xf]  ;;  %v6011_v9 = vld [vmem:[#allocation2 + $0x8f4] sm:$0xf0]  ;;  %v4759_v11 = vor.u32 %v5933_v57, %v4758_v56  ;;  %v6632_v52 = vor.u32 %v317_v26, %v316_v25  ;;  %v6636_v57 = vor.u32 %v320_v35, %v319_v34  ;;  %v5174_v25 = vld [vmem:[#allocation2 + $0x9c0] sm:$0xf] }
  0x98   : > { %3203 = vmatpush.bf16.msrb.mxu0 %v4743_v32  ;;  %v4838_v32 = vld [vmem:[#allocation2 + $0x720] sm:$0xf]  ;;  %v6037_v26 = vld [vmem:[#allocation2 + $0x9c4] sm:$0xf0]  ;;  %v4974_v34 = vld [vmem:[#allocation2 + $0x830] sm:$0xf] }
  0x99   : > { %3216 = vmatpush.bf16.msrb.mxu1 %v4807_v33  ;;  %v5953_v33 = vld [vmem:[#allocation2 + $0x724] sm:$0xf0]  ;;  %v5987_v35 = vld [vmem:[#allocation2 + $0x834] sm:$0xf0] }
  0x9a   : > { %3229 = vmatpush.bf16.msrb.mxu2 %v4871_v37  ;;  %v4702_v37 = vld [vmem:[#allocation2 + $0x610] sm:$0xf]  ;;  %v4839_v46 = vor.u32 %v5953_v33, %v4838_v32  ;;  %v313_v32 = vrot.slane %v6591_v42, 1  ;;  %v314_v33 = vrot.slane %v6576_v27, 2 }
  0x9b   : > { %3242 = vmatpush.bf16.msrb.mxu3 %v4935_v38  ;;  %v4711_v38 = vor.u32 %v5921_v21, %v4710_v20  ;;  %v4703_v61 = vor.u32 %v5919_v40, %v4702_v37  ;;  %v5198_v20 = vld [vmem:[#allocation2 + $0x9f0] sm:$0xf]  ;;  %v6043_v21 = vld [vmem:[#allocation2 + $0x9f4] sm:$0xf0]  ;;  %v5993_v40 = vld [vmem:[#allocation2 + $0x864] sm:$0xf0] }
  0x9c   : > { %3204 = vmatpush.bf16.msrb.mxu0 %v4735_v50  ;;  %v4830_v50 = vld [vmem:[#allocation2 + $0x710] sm:$0xf]  ;;  %v5199_v43 = vor.u32 %v6043_v21, %v5198_v20  ;;  %v6634_v56 = vor.u32 %v314_v33, %v313_v32  ;;  %v5046_v20 = vld [vmem:[#allocation2 + $0x8c0] sm:$0xf]  ;;  %v6005_v21 = vld [vmem:[#allocation2 + $0x8c4] sm:$0xf0] }
  0x9d   : > { %3217 = vmatpush.bf16.msrb.mxu1 %v4799_v51  ;;  %v5951_v51 = vld [vmem:[#allocation2 + $0x714] sm:$0xf0]  ;;  %v5047_v33 = vor.u32 %v6005_v21, %v5046_v20  ;;  %v5150_v20 = vld [vmem:[#allocation2 + $0x990] sm:$0xf] }
  0x9e   : > { %3230 = vmatpush.bf16.msrb.mxu2 %v4863_v54  ;;  %v4694_v54 = vld [vmem:[#allocation2 + $0x600] sm:$0xf]  ;;  %v4831_v4 = vor.u32 %v5951_v51, %v4830_v50  ;;  %v6031_v21 = vld [vmem:[#allocation2 + $0x994] sm:$0xf0] }
  0x9f   : > { %3243 = vmatpush.bf16.msrb.mxu3 %v4927_v55  ;;  %v5917_v55 = vld [vmem:[#allocation2 + $0x604] sm:$0xf0]  ;;  %v5126_v50 = vld [vmem:[#allocation2 + $0x960] sm:$0xf] }
  0xa0   : > { %3205 = vmatpush.bf16.msrb.mxu0 %v4727_v2  ;;  %v4886_v2 = vld [vmem:[#allocation2 + $0x780] sm:$0xf]  ;;  %v4695_v10 = vor.u32 %v5917_v55, %v4694_v54  ;;  %v6041_v55 = vld [vmem:[#allocation2 + $0x9e4] sm:$0xf0] }
  0xa1   : > { %3218 = vmatpush.bf16.msrb.mxu1 %v4791_v3  ;;  %v5965_v3 = vld [vmem:[#allocation2 + $0x784] sm:$0xf0]  ;;  %v5190_v54 = vld [vmem:[#allocation2 + $0x9e0] sm:$0xf] }
  0xa2   : > { %3231 = vmatpush.bf16.msrb.mxu2 %v4855_v6  ;;  %v5006_v6 = vld [vmem:[#allocation2 + $0x870] sm:$0xf]  ;;  %v4887_v17 = vor.u32 %v5965_v3, %v4886_v2  ;;  %v5127_v2 = vor.u32 %v6025_v53, %v5126_v50  ;;  %v5191_v3 = vor.u32 %v6041_v55, %v5190_v54  ;;  %v4975_v50 = vor.u32 %v5987_v35, %v4974_v34  ;;  %v4966_v54 = vld [vmem:[#allocation2 + $0x820] sm:$0xf]  ;;  %v5985_v55 = vld [vmem:[#allocation2 + $0x824] sm:$0xf0] }
  0xa3   : > { %3244 = vmatpush.bf16.msrb.mxu3 %v4919_v7  ;;  %v5995_v7 = vld [vmem:[#allocation2 + $0x874] sm:$0xf0]  ;;  %v5151_v35 = vor.u32 %v6031_v21, %v5150_v20  ;;  %v327_v20 = vrot.slane %v6562_v1, 2  ;;  %v329_v21 = vrot.slane %v6548_v49, 2 }
  0xa4   : > { %3206 = vmatpush.bf16.msrb.mxu0 %v4719_v18  ;;  %v5134_v18 = vld [vmem:[#allocation2 + $0x970] sm:$0xf]  ;;  %v5007_v37 = vor.u32 %v5995_v7, %v5006_v6  ;;  %v6023_v7 = vld [vmem:[#allocation2 + $0x954] sm:$0xf0] }
  0xa5   : > { %3219 = vmatpush.bf16.msrb.mxu1 %v4783_v19  ;;  %v6027_v19 = vld [vmem:[#allocation2 + $0x974] sm:$0xf0]  ;;  %v5118_v6 = vld [vmem:[#allocation2 + $0x950] sm:$0xf] }
  0xa6   : > { %3232 = vmatpush.bf16.msrb.mxu2 %v4847_v22  ;;  %v310_v22 = vrot.slane %v6587_v36, 1  ;;  %v5135_v41 = vor.u32 %v6027_v19, %v5134_v18  ;;  %v5119_v18 = vor.u32 %v6023_v7, %v5118_v6  ;;  %v4967_v6 = vor.u32 %v5985_v55, %v4966_v54  ;;  %v6091_v55 = vld [vmem:[#allocation2 + $0xb74] sm:$0xf0] }
  0xa7   : > { %3245 = vmatpush.bf16.msrb.mxu3 %v4911_v23  ;;  %v311_v23 = vrot.slane %v6573_v24, 2 }
  0xa8   : > { %3207 = vmatpush.bf16.msrb.mxu0 %v4711_v38  ;;  %v5071_v38 = vor.u32 %v6011_v9, %v5070_v8  ;;  %v5182_v8 = vld [vmem:[#allocation2 + $0x9d0] sm:$0xf]  ;;  %v6039_v9 = vld [vmem:[#allocation2 + $0x9d4] sm:$0xf0] }
  0xa9   : > { %3220 = vmatpush.bf16.msrb.mxu1 %v4775_v39  ;;  %v4998_v39 = vld [vmem:[#allocation2 + $0x860] sm:$0xf]  ;;  %v6630_v51 = vor.u32 %v311_v23, %v310_v22  ;;  %v5183_v19 = vor.u32 %v6039_v9, %v5182_v8  ;;  %v6021_v23 = vld [vmem:[#allocation2 + $0x944] sm:$0xf0]  ;;  %v4958_v8 = vld [vmem:[#allocation2 + $0x810] sm:$0xf] }
  0xaa   : > { %3233 = vmatpush.bf16.msrb.mxu2 %v4839_v46  ;;  %v5062_v46 = vld [vmem:[#allocation2 + $0x8e0] sm:$0xf]  ;;  %v4999_v60 = vor.u32 %v5993_v40, %v4998_v39  ;;  %v5038_v39 = vld [vmem:[#allocation2 + $0x8b0] sm:$0xf]  ;;  %v6003_v40 = vld [vmem:[#allocation2 + $0x8b4] sm:$0xf0] }
  0xab   : > { %3246 = vmatpush.bf16.msrb.mxu3 %v4903_v48  ;;  %v6009_v48 = vld [vmem:[#allocation2 + $0x8e4] sm:$0xf0]  ;;  %v5110_v22 = vld [vmem:[#allocation2 + $0x940] sm:$0xf]  ;;  %v5039_v53 = vor.u32 %v6003_v40, %v5038_v39  ;;  %v5983_v9 = vld [vmem:[#allocation2 + $0x814] sm:$0xf0] }
  0xac   : > { %3208 = vmatpush.bf16.msrb.mxu0 %v4703_v61  ;;  %v5063_v61 = vor.u32 %v6009_v48, %v5062_v46  ;;  %v5166_v46 = vld [vmem:[#allocation2 + $0x9b0] sm:$0xf]  ;;  %v6035_v48 = vld [vmem:[#allocation2 + $0x9b4] sm:$0xf0]  ;;  %v5142_v39 = vld [vmem:[#allocation2 + $0x980] sm:$0xf] }
  0xad   : > { %3221 = vmatpush.bf16.msrb.mxu1 %v4767_v62  ;;  %v4990_v62 = vld [vmem:[#allocation2 + $0x850] sm:$0xf]  ;;  %v6029_v40 = vld [vmem:[#allocation2 + $0x984] sm:$0xf0] }
  0xae   : > { %3234 = vmatpush.bf16.msrb.mxu2 %v4831_v4  ;;  %v5054_v4 = vld [vmem:[#allocation2 + $0x8d0] sm:$0xf] }
  0xaf   : > { %3247 = vmatpush.bf16.msrb.mxu3 %v4895_v5  ;;  %v6007_v5 = vld [vmem:[#allocation2 + $0x8d4] sm:$0xf0] }
  0xb0   : > { %3209 = vmatpush.bf16.msrb.mxu0 %v4695_v10  ;;  %v4991_v10 = vor.u32 %v5991_v63, %v4990_v62  ;;  %v5030_v62 = vld [vmem:[#allocation2 + $0x8a0] sm:$0xf]  ;;  %v6001_v63 = vld [vmem:[#allocation2 + $0x8a4] sm:$0xf0] }
  0xb1   : > { %3222 = vmatpush.bf16.msrb.mxu1 %v4759_v11  ;;  %v5055_v11 = vor.u32 %v6007_v5, %v5054_v4  ;;  %v5158_v4 = vld [vmem:[#allocation2 + $0x9a0] sm:$0xf]  ;;  %v6033_v5 = vld [vmem:[#allocation2 + $0x9a4] sm:$0xf0]  ;;  %v5031_v7 = vor.u32 %v6001_v63, %v5030_v62  ;;  %v5143_v63 = vor.u32 %v6029_v40, %v5142_v39  ;;  %v5438_v39 = vld [vmem:[#allocation2 + $0xbd0] sm:$0xf] }
  0xb2   : > { %3235 = vmatpush.bf16.msrb.mxu2 %v4823_v14  ;;  %v4982_v14 = vld [vmem:[#allocation2 + $0x840] sm:$0xf]  ;;  %v6103_v40 = vld [vmem:[#allocation2 + $0xbd4] sm:$0xf0] }
  0xb3   : > { %3248 = vmatpush.bf16.msrb.mxu3 %v4887_v17  ;;  %3210 = vmatmul.bf16.vlgmr.msrb.gmra.mxu0 %v6630_v51  ;;  %v5989_v17 = vld [vmem:[#allocation2 + $0x844] sm:$0xf0] }
  0xb4   : > { %3254 = vmatpush.bf16.msra.mxu0 %v5007_v37  ;;  %3223 = vmatmul.bf16.vlgmr.msrb.gmra.mxu1 %v6634_v56  ;;  %v4983_v32 = vor.u32 %v5989_v17, %v4982_v14  ;;  %v5111_v37 = vor.u32 %v6021_v23, %v5110_v22  ;;  %v5022_v14 = vld [vmem:[#allocation2 + $0x890] sm:$0xf]  ;;  %v5999_v17 = vld [vmem:[#allocation2 + $0x894] sm:$0xf0]  ;;  %v4950_v22 = vld [vmem:[#allocation2 + $0x800] sm:$0xf]  ;;  %v4959_v23 = vor.u32 %v5983_v9, %v4958_v8 }
  0xb5   : > { %3267 = vmatpush.bf16.msra.mxu1 %v5071_v38  ;;  %3236 = vmatmul.bf16.vlgmr.msrb.gmra.mxu2 %v6632_v52  ;;  %v5175_v38 = vor.u32 %v6037_v26, %v5174_v25  ;;  %v5023_v25 = vor.u32 %v5999_v17, %v5022_v14  ;;  %v5981_v26 = vld [vmem:[#allocation2 + $0x804] sm:$0xf0]  ;;  %v5382_v14 = vld [vmem:[#allocation2 + $0xb60] sm:$0xf] }
  0xb6   : > { %3280 = vmatpush.bf16.msra.mxu2 %v5135_v41  ;;  %3249 = vmatmul.bf16.vlgmr.msrb.gmra.mxu3 %v6636_v57  ;;  %v5102_v41 = vld [vmem:[#allocation2 + $0x930] sm:$0xf]  ;;  %v6089_v17 = vld [vmem:[#allocation2 + $0xb64] sm:$0xf0] }
  0xb7   : > { %3293 = vmatpush.bf16.msra.mxu3 %v5199_v43  ;;  %v6019_v43 = vld [vmem:[#allocation2 + $0x934] sm:$0xf0] }
  0xb8   : > { %3255 = vmatpush.bf16.msra.mxu0 %v4999_v60  ;;  %v5103_v60 = vor.u32 %v6019_v43, %v5102_v41  ;;  %v5262_v41 = vld [vmem:[#allocation2 + $0xa70] sm:$0xf]  ;;  %v6059_v43 = vld [vmem:[#allocation2 + $0xa74] sm:$0xf0] }
  0xb9   : > { %3268 = vmatpush.bf16.msra.mxu1 %v5063_v61  ;;  %v5167_v61 = vor.u32 %v6035_v48, %v5166_v46  ;;  %v5326_v46 = vld [vmem:[#allocation2 + $0xaf0] sm:$0xf]  ;;  %v6075_v48 = vld [vmem:[#allocation2 + $0xaf4] sm:$0xf0] }
  0xba   : > { %3281 = vmatpush.bf16.msra.mxu2 %v5127_v2  ;;  %v5094_v2 = vld [vmem:[#allocation2 + $0x920] sm:$0xf] }
  0xbb   : > { %3294 = vmatpush.bf16.msra.mxu3 %v5191_v3  ;;  %v6017_v3 = vld [vmem:[#allocation2 + $0x924] sm:$0xf0] }
  0xbc   : > { %3256 = vmatpush.bf16.msra.mxu0 %v4991_v10  ;;  %v5095_v10 = vor.u32 %v6017_v3, %v5094_v2  ;;  %v5263_v2 = vor.u32 %v6059_v43, %v5262_v41  ;;  %v5327_v3 = vor.u32 %v6075_v48, %v5326_v46  ;;  %v5238_v46 = vld [vmem:[#allocation2 + $0xa40] sm:$0xf]  ;;  %v6053_v48 = vld [vmem:[#allocation2 + $0xa44] sm:$0xf0] }
  0xbd   : > { %3269 = vmatpush.bf16.msra.mxu1 %v5055_v11  ;;  %v5159_v11 = vor.u32 %v6033_v5, %v5158_v4  ;;  %v326_v4 = vrot.slane %v6558_v0, 2  ;;  %v328_v5 = vrot.slane %v6544_v47, 2 }
  0xbe   : > { %3282 = vmatpush.bf16.msra.mxu2 %v5119_v18  ;;  %v5086_v18 = vld [vmem:[#allocation2 + $0x910] sm:$0xf] }
  0xbf   : > { %3295 = vmatpush.bf16.msra.mxu3 %v5183_v19  ;;  %v6015_v19 = vld [vmem:[#allocation2 + $0x914] sm:$0xf0] }
  0xc0   : > { %3257 = vmatpush.bf16.msra.mxu0 %v4983_v32  ;;  %v5014_v32 = vld [vmem:[#allocation2 + $0x880] sm:$0xf]  ;;  %v5087_v34 = vor.u32 %v6015_v19, %v5086_v18  ;;  %v6105_v19 = vld [vmem:[#allocation2 + $0xbe4] sm:$0xf0] }
  0xc1   : > { %3270 = vmatpush.bf16.msra.mxu1 %v5047_v33  ;;  %v5997_v33 = vld [vmem:[#allocation2 + $0x884] sm:$0xf0]  ;;  %v5446_v18 = vld [vmem:[#allocation2 + $0xbe0] sm:$0xf] }
  0xc2   : > { %3283 = vmatpush.bf16.msra.mxu2 %v5111_v37  ;;  %v5078_v37 = vld [vmem:[#allocation2 + $0x900] sm:$0xf]  ;;  %v5015_v54 = vor.u32 %v5997_v33, %v5014_v32  ;;  %v5383_v32 = vor.u32 %v6089_v17, %v5382_v14  ;;  %v5447_v33 = vor.u32 %v6105_v19, %v5446_v18  ;;  %v5358_v14 = vld [vmem:[#allocation2 + $0xb30] sm:$0xf]  ;;  %v6083_v17 = vld [vmem:[#allocation2 + $0xb34] sm:$0xf0] }
  0xc3   : > { %3296 = vmatpush.bf16.msra.mxu3 %v5175_v38  ;;  %v6013_v38 = vld [vmem:[#allocation2 + $0x904] sm:$0xf0]  ;;  %v5422_v18 = vld [vmem:[#allocation2 + $0xbb0] sm:$0xf]  ;;  %v6099_v19 = vld [vmem:[#allocation2 + $0xbb4] sm:$0xf0] }
  0xc4   : > { %3258 = vmatpush.bf16.msra.mxu0 %v4975_v50  ;;  %v5390_v50 = vld [vmem:[#allocation2 + $0xb70] sm:$0xf]  ;;  %v5079_v62 = vor.u32 %v6013_v38, %v5078_v37  ;;  %v6087_v38 = vld [vmem:[#allocation2 + $0xb54] sm:$0xf0] }
  0xc5   : > { %3271 = vmatpush.bf16.msra.mxu1 %v5039_v53  ;;  %v4951_v53 = vor.u32 %v5981_v26, %v4950_v22  ;;  %v5391_v8 = vor.u32 %v6091_v55, %v5390_v50  ;;  %v6055_v26 = vld [vmem:[#allocation2 + $0xa54] sm:$0xf0]  ;;  %v5374_v37 = vld [vmem:[#allocation2 + $0xb50] sm:$0xf]  ;;  %v6069_v55 = vld [vmem:[#allocation2 + $0xac4] sm:$0xf0] }
  0xc6   : > { %3284 = vmatpush.bf16.msra.mxu2 %v5103_v60  ;;  %v5454_v60 = vld [vmem:[#allocation2 + $0xbf0] sm:$0xf]  ;;  %v5375_v50 = vor.u32 %v6087_v38, %v5374_v37  ;;  %v5350_v37 = vld [vmem:[#allocation2 + $0xb20] sm:$0xf]  ;;  %v6081_v38 = vld [vmem:[#allocation2 + $0xb24] sm:$0xf0] }
  0xc7   : > { %3297 = vmatpush.bf16.msra.mxu3 %v5167_v61  ;;  %v6107_v61 = vld [vmem:[#allocation2 + $0xbf4] sm:$0xf0] }
  0xc8   : > { %3259 = vmatpush.bf16.msra.mxu0 %v4967_v6  ;;  %v5254_v6 = vld [vmem:[#allocation2 + $0xa60] sm:$0xf]  ;;  %v5455_v9 = vor.u32 %v6107_v61, %v5454_v60  ;;  %v6085_v61 = vld [vmem:[#allocation2 + $0xb44] sm:$0xf0] }
  0xc9   : > { %3272 = vmatpush.bf16.msra.mxu1 %v5031_v7  ;;  %v6057_v7 = vld [vmem:[#allocation2 + $0xa64] sm:$0xf0]  ;;  %v5366_v60 = vld [vmem:[#allocation2 + $0xb40] sm:$0xf] }
  0xca   : > { %3285 = vmatpush.bf16.msra.mxu2 %v5095_v10  ;;  %v5318_v10 = vld [vmem:[#allocation2 + $0xae0] sm:$0xf]  ;;  %v5255_v22 = vor.u32 %v6057_v7, %v5254_v6  ;;  %v5230_v6 = vld [vmem:[#allocation2 + $0xa30] sm:$0xf]  ;;  %v6051_v7 = vld [vmem:[#allocation2 + $0xa34] sm:$0xf0] }
  0xcb   : > { %3298 = vmatpush.bf16.msra.mxu3 %v5159_v11  ;;  %v6073_v11 = vld [vmem:[#allocation2 + $0xae4] sm:$0xf0] }
  0xcc   : > { %3260 = vmatpush.bf16.msra.mxu0 %v4959_v23  ;;  %v5319_v23 = vor.u32 %v6073_v11, %v5318_v10  ;;  %v5294_v10 = vld [vmem:[#allocation2 + $0xab0] sm:$0xf]  ;;  %v6067_v11 = vld [vmem:[#allocation2 + $0xab4] sm:$0xf0] }
  0xcd   : > { %3273 = vmatpush.bf16.msra.mxu1 %v5023_v25  ;;  %v5246_v25 = vld [vmem:[#allocation2 + $0xa50] sm:$0xf] }
  0xce   : > { %3286 = vmatpush.bf16.msra.mxu2 %v5087_v34  ;;  %v5310_v34 = vld [vmem:[#allocation2 + $0xad0] sm:$0xf]  ;;  %v5247_v41 = vor.u32 %v6055_v26, %v5246_v25  ;;  %v5222_v25 = vld [vmem:[#allocation2 + $0xa20] sm:$0xf]  ;;  %v6049_v26 = vld [vmem:[#allocation2 + $0xa24] sm:$0xf0] }
  0xcf   : > { %3299 = vmatpush.bf16.msra.mxu3 %v5151_v35  ;;  %v6071_v35 = vld [vmem:[#allocation2 + $0xad4] sm:$0xf0] }
  0xd0   : > { %3261 = vmatpush.bf16.msra.mxu0 %v4951_v53  ;;  %v5311_v43 = vor.u32 %v6071_v35, %v5310_v34  ;;  %v5439_v53 = vor.u32 %v6103_v40, %v5438_v39  ;;  %v5286_v34 = vld [vmem:[#allocation2 + $0xaa0] sm:$0xf]  ;;  %v6065_v35 = vld [vmem:[#allocation2 + $0xaa4] sm:$0xf0] }
  0xd1   : > { %3274 = vmatpush.bf16.msra.mxu1 %v5015_v54  ;;  %v5302_v54 = vld [vmem:[#allocation2 + $0xac0] sm:$0xf]  ;;  %v6097_v40 = vld [vmem:[#allocation2 + $0xba4] sm:$0xf0] }
  0xd2   : > { %3287 = vmatpush.bf16.msra.mxu2 %v5079_v62  ;;  %v5430_v62 = vld [vmem:[#allocation2 + $0xbc0] sm:$0xf] }
  0xd3   : > { %3300 = vmatpush.bf16.msra.mxu3 %v5143_v63  ;;  %3262 = vmatmul.bf16.vlgmr.msra.gmra.mxu0 %v326_v4  ;;  %v6101_v63 = vld [vmem:[#allocation2 + $0xbc4] sm:$0xf0]  ;;  %v5414_v39 = vld [vmem:[#allocation2 + $0xba0] sm:$0xf] }
  0xd4   : > { %3306 = vmatpush.bf16.msrb.mxu0 %v5263_v2  ;;  %3275 = vmatmul.bf16.vlgmr.msra.gmra.mxu1 %v327_v20  ;;  %v5239_v2 = vor.u32 %v6053_v48, %v5238_v46  ;;  %v5287_v46 = vor.u32 %v6065_v35, %v5286_v34  ;;  %v6047_v48 = vld [vmem:[#allocation2 + $0xa14] sm:$0xf0] }
  0xd5   : > { %3319 = vmatpush.bf16.msrb.mxu1 %v5327_v3  ;;  %3288 = vmatmul.bf16.vlgmr.msra.gmra.mxu2 %v328_v5  ;;  %v5303_v3 = vor.u32 %v6069_v55, %v5302_v54  ;;  %v5351_v54 = vor.u32 %v6081_v38, %v5350_v37  ;;  %v5415_v55 = vor.u32 %v6097_v40, %v5414_v39  ;;  %v5646_v37 = vld [vmem:[#allocation2 + $0xd70] sm:$0xf]  ;;  %v6155_v38 = vld [vmem:[#allocation2 + $0xd74] sm:$0xf0] }
  0xd6   : > { %3332 = vmatpush.bf16.msrb.mxu2 %v5391_v8  ;;  %3301 = vmatmul.bf16.vlgmr.msra.gmra.mxu3 %v329_v21  ;;  %v5367_v8 = vor.u32 %v6085_v61, %v5366_v60  ;;  %v5342_v60 = vld [vmem:[#allocation2 + $0xb10] sm:$0xf]  ;;  %v6079_v61 = vld [vmem:[#allocation2 + $0xb14] sm:$0xf0] }
  0xd7   : > { %3345 = vmatpush.bf16.msrb.mxu3 %v5455_v9  ;;  %v5431_v9 = vor.u32 %v6101_v63, %v5430_v62  ;;  %v5406_v62 = vld [vmem:[#allocation2 + $0xb90] sm:$0xf]  ;;  %v6095_v63 = vld [vmem:[#allocation2 + $0xb94] sm:$0xf0] }
  0xd8   : > { %3307 = vmatpush.bf16.msrb.mxu0 %v5255_v22  ;;  %v5231_v22 = vor.u32 %v6051_v7, %v5230_v6  ;;  %v5270_v6 = vld [vmem:[#allocation2 + $0xa80] sm:$0xf]  ;;  %v6061_v7 = vld [vmem:[#allocation2 + $0xa84] sm:$0xf0]  ;;  %v5710_v39 = vld [vmem:[#allocation2 + $0xdf0] sm:$0xf] }
  0xd9   : > { %3320 = vmatpush.bf16.msrb.mxu1 %v5319_v23  ;;  %v5295_v23 = vor.u32 %v6067_v11, %v5294_v10  ;;  %v6077_v11 = vld [vmem:[#allocation2 + $0xb04] sm:$0xf0]  ;;  %v6171_v40 = vld [vmem:[#allocation2 + $0xdf4] sm:$0xf0] }
  0xda   : > { %3333 = vmatpush.bf16.msrb.mxu2 %v5383_v32  ;;  %v5359_v32 = vor.u32 %v6083_v17, %v5358_v14  ;;  %v5398_v14 = vld [vmem:[#allocation2 + $0xb80] sm:$0xf]  ;;  %v6093_v17 = vld [vmem:[#allocation2 + $0xb84] sm:$0xf0] }
  0xdb   : > { %3346 = vmatpush.bf16.msrb.mxu3 %v5447_v33  ;;  %v5423_v33 = vor.u32 %v6099_v19, %v5422_v18  ;;  %v5343_v18 = vor.u32 %v6079_v61, %v5342_v60  ;;  %v5407_v19 = vor.u32 %v6095_v63, %v5406_v62  ;;  %v5399_v35 = vor.u32 %v6093_v17, %v5398_v14  ;;  %v5510_v62 = vld [vmem:[#allocation2 + $0xc60] sm:$0xf]  ;;  %v5502_v14 = vld [vmem:[#allocation2 + $0xc50] sm:$0xf]  ;;  %v6119_v17 = vld [vmem:[#allocation2 + $0xc54] sm:$0xf0] }
  0xdc   : > { %3308 = vmatpush.bf16.msrb.mxu0 %v5247_v41  ;;  %v5214_v41 = vld [vmem:[#allocation2 + $0xa10] sm:$0xf]  ;;  %v5647_v63 = vor.u32 %v6155_v38, %v5646_v37 }
  0xdd   : > { %3321 = vmatpush.bf16.msrb.mxu1 %v5311_v43  ;;  %v5223_v43 = vor.u32 %v6049_v26, %v5222_v25  ;;  %v5582_v25 = vld [vmem:[#allocation2 + $0xcf0] sm:$0xf]  ;;  %v6139_v26 = vld [vmem:[#allocation2 + $0xcf4] sm:$0xf0] }
  0xde   : > { %3334 = vmatpush.bf16.msrb.mxu2 %v5375_v50  ;;  %v5278_v50 = vld [vmem:[#allocation2 + $0xa90] sm:$0xf]  ;;  %v5583_v61 = vor.u32 %v6139_v26, %v5582_v25  ;;  %v6135_v25 = vld [vmem:[#allocation2 + $0xcd4] sm:$0xf0] }
  0xdf   : > { %3347 = vmatpush.bf16.msrb.mxu3 %v5439_v53  ;;  %v6063_v53 = vld [vmem:[#allocation2 + $0xa94] sm:$0xf0]  ;;  %v5630_v26 = vld [vmem:[#allocation2 + $0xd50] sm:$0xf] }
  0xe0   : > { %3309 = vmatpush.bf16.msrb.mxu0 %v5239_v2  ;;  %v5206_v2 = vld [vmem:[#allocation2 + $0xa00] sm:$0xf]  ;;  %v5279_v10 = vor.u32 %v6063_v53, %v5278_v50  ;;  %v337_v50 = vrot.slane %v6591_v42, 2  ;;  %v338_v53 = vrot.slane %v6576_v27, 3  ;;  %v6153_v27 = vld [vmem:[#allocation2 + $0xd64] sm:$0xf0] }
  0xe1   : > { %3322 = vmatpush.bf16.msrb.mxu1 %v5303_v3  ;;  %v6045_v3 = vld [vmem:[#allocation2 + $0xa04] sm:$0xf0] }
  0xe2   : > { %3335 = vmatpush.bf16.msrb.mxu2 %v5367_v8  ;;  %v5334_v8 = vld [vmem:[#allocation2 + $0xb00] sm:$0xf] }
  0xe3   : > { %3348 = vmatpush.bf16.msrb.mxu3 %v5431_v9  ;;  %v5215_v9 = vor.u32 %v6047_v48, %v5214_v41  ;;  %v5335_v34 = vor.u32 %v6077_v11, %v5334_v8  ;;  %v334_v41 = vrot.slane %v6587_v36, 2  ;;  %v341_v48 = vrot.slane %v6567_v15, 3  ;;  %v6121_v36 = vld [vmem:[#allocation2 + $0xc64] sm:$0xf0] }
  0xe4   : > { %3310 = vmatpush.bf16.msrb.mxu0 %v5231_v22  ;;  %v5518_v22 = vld [vmem:[#allocation2 + $0xc70] sm:$0xf] }
  0xe5   : > { %3323 = vmatpush.bf16.msrb.mxu1 %v5295_v23  ;;  %v6123_v23 = vld [vmem:[#allocation2 + $0xc74] sm:$0xf0] }
  0xe6   : > { %3336 = vmatpush.bf16.msrb.mxu2 %v5359_v32  ;;  %v5207_v32 = vor.u32 %v6045_v3, %v5206_v2  ;;  %v5519_v60 = vor.u32 %v6123_v23, %v5518_v22  ;;  %v5574_v2 = vld [vmem:[#allocation2 + $0xce0] sm:$0xf]  ;;  %v3055_v8 = vpop.f32.mrf.mxu0  ;;  %v5566_v23 = vld [vmem:[#allocation2 + $0xcd0] sm:$0xf] }
  0xe7   : > { %3349 = vmatpush.bf16.msrb.mxu3 %v5423_v33  ;;  %v5271_v33 = vor.u32 %v6061_v7, %v5270_v6  ;;  %v5638_v3 = vld [vmem:[#allocation2 + $0xd60] sm:$0xf] }
  0xe8   : > { %3311 = vmatpush.bf16.msrb.mxu0 %v5223_v43  ;;  %v335_v43 = vrot.slane %v6573_v24, 3  ;;  %v5711_v24 = vor.u32 %v6171_v40, %v5710_v39  ;;  %v5702_v6 = vld [vmem:[#allocation2 + $0xde0] sm:$0xf]  ;;  %v5503_v39 = vor.u32 %v6119_v17, %v5502_v14  ;;  %v5567_v40 = vor.u32 %v6135_v25, %v5566_v23  ;;  %v6163_v14 = vld [vmem:[#allocation2 + $0xdb4] sm:$0xf0] }
  0xe9   : > { %3324 = vmatpush.bf16.msrb.mxu1 %v5287_v46  ;;  %v340_v46 = vrot.slane %v6579_v28, 2  ;;  %v6137_v28 = vld [vmem:[#allocation2 + $0xce4] sm:$0xf0]  ;;  %v3094_v37 = vpop.f32.mrf.mxu3  ;;  %v5478_v23 = vld [vmem:[#allocation2 + $0xc20] sm:$0xf] }
  0xea   : > { %3337 = vmatpush.bf16.msrb.mxu2 %v5351_v54  ;;  %v343_v54 = vrot.slane %v6583_v30, 2  ;;  %v6662_v15 = vor.u32 %v335_v43, %v334_v41  ;;  %v6169_v30 = vld [vmem:[#allocation2 + $0xde4] sm:$0xf0]  ;;  %v5575_v11 = vor.u32 %v6137_v28, %v5574_v2  ;;  %v5494_v41 = vld [vmem:[#allocation2 + $0xc40] sm:$0xf] }
  0xeb   : > { %3350 = vmatpush.bf16.msrb.mxu3 %v5415_v55  ;;  %v344_v55 = vrot.slane %v6570_v16, 3  ;;  %v6664_v42 = vor.u32 %v341_v48, %v340_v46  ;;  %v6666_v16 = vor.u32 %v338_v53, %v337_v50  ;;  %v5703_v22 = vor.u32 %v6169_v30, %v5702_v6  ;;  %v6117_v43 = vld [vmem:[#allocation2 + $0xc44] sm:$0xf0]  ;;  %v5558_v50 = vld [vmem:[#allocation2 + $0xcc0] sm:$0xf] }
  0xec   : > { %3312 = vmatpush.bf16.msrb.mxu0 %v5215_v9  ;;  %v3068_v9 = vpop.f32.mrf.mxu1  ;;  %v6133_v53 = vld [vmem:[#allocation2 + $0xcc4] sm:$0xf0]  ;;  %v5486_v28 = vld [vmem:[#allocation2 + $0xc30] sm:$0xf] }
  0xed   : > { %3325 = vmatpush.bf16.msrb.mxu1 %v5279_v10  ;;  %v6668_v7 = vor.u32 %v344_v55, %v343_v54  ;;  %v5511_v10 = vor.u32 %v6121_v36, %v5510_v62  ;;  %v5622_v54 = vld [vmem:[#allocation2 + $0xd40] sm:$0xf]  ;;  %v6165_v62 = vld [vmem:[#allocation2 + $0xdc4] sm:$0xf0]  ;;  %v5559_v2 = vor.u32 %v6133_v53, %v5558_v50  ;;  %v5550_v30 = vld [vmem:[#allocation2 + $0xcb0] sm:$0xf] }
  0xee   : > { %3338 = vmatpush.bf16.msrb.mxu2 %v5343_v18  ;;  %v3069_v18 = vadd.f32 %v3068_v9, %v3055_v8  ;;  %v3057_v36 = vpop.f32.mrf.mxu0  ;;  %v6131_v8 = vld [vmem:[#allocation2 + $0xcb4] sm:$0xf0]  ;;  %v5614_v9 = vld [vmem:[#allocation2 + $0xd30] sm:$0xf]  ;;  %v6113_v25 = vld [vmem:[#allocation2 + $0xc24] sm:$0xf0] }
  0xef   : > { %3351 = vmatpush.bf16.msrb.mxu3 %v5407_v19  ;;  %v5639_v19 = vor.u32 %v6153_v27, %v5638_v3  ;;  %v6115_v3 = vld [vmem:[#allocation2 + $0xc34] sm:$0xf0]  ;;  %v5598_v36 = vld [vmem:[#allocation2 + $0xd10] sm:$0xf] }
  0xf0   : > { %3313 = vmatpush.bf16.msrb.mxu0 %v5207_v32  ;;  %v6151_v32 = vld [vmem:[#allocation2 + $0xd54] sm:$0xf0] }
  0xf1   : > { %3326 = vmatpush.bf16.msrb.mxu1 %v5271_v33  ;;  %v5694_v33 = vld [vmem:[#allocation2 + $0xdd0] sm:$0xf]  ;;  %v5631_v46 = vor.u32 %v6151_v32, %v5630_v26  ;;  %v6111_v50 = vld [vmem:[#allocation2 + $0xc14] sm:$0xf0] }
  0xf2   : > { %3339 = vmatpush.bf16.msrb.mxu2 %v5335_v34  ;;  %v6167_v34 = vld [vmem:[#allocation2 + $0xdd4] sm:$0xf0] }
  0xf3   : > { %3352 = vmatpush.bf16.msrb.mxu3 %v5399_v35  ;;  %3314 = vmatmul.bf16.vlgmr.msrb.gmra.mxu0 %v6662_v15  ;;  %v3081_v35 = vpop.f32.mrf.mxu2  ;;  %v5695_v48 = vor.u32 %v6167_v34, %v5694_v33  ;;  %v5542_v33 = vld [vmem:[#allocation2 + $0xca0] sm:$0xf]  ;;  %v6129_v34 = vld [vmem:[#allocation2 + $0xca4] sm:$0xf0] }
  0xf4   : > { %3358 = vmatpush.bf16.msra.mxu0 %v5519_v60  ;;  %3327 = vmatmul.bf16.vlgmr.msrb.gmra.mxu1 %v6666_v16  ;;  %v3082_v38 = vadd.f32 %v3081_v35, %v3069_v18  ;;  %v6149_v60 = vld [vmem:[#allocation2 + $0xd44] sm:$0xf0]  ;;  %v3096_v18 = vpop.f32.mrf.mxu3  ;;  %v5606_v35 = vld [vmem:[#allocation2 + $0xd20] sm:$0xf] }
  0xf5   : > { %3371 = vmatpush.bf16.msra.mxu1 %v5583_v61  ;;  %3340 = vmatmul.bf16.vlgmr.msrb.gmra.mxu2 %v6664_v42  ;;  %v5686_v61 = vld [vmem:[#allocation2 + $0xdc0] sm:$0xf]  ;;  %v5623_v27 = vor.u32 %v6149_v60, %v5622_v54 }
  0xf6   : > { %3384 = vmatpush.bf16.msra.mxu2 %v5647_v63  ;;  %3353 = vmatmul.bf16.vlgmr.msrb.gmra.mxu3 %v6668_v7  ;;  %v3095_v55 = vadd.f32 %v3094_v37, %v3082_v38  ;;  %v3070_v63 = vpop.f32.mrf.mxu1  ;;  %v5687_v6 = vor.u32 %v6165_v62, %v5686_v61  ;;  %v6145_v37 = vld [vmem:[#allocation2 + $0xd24] sm:$0xf0]  ;;  %v5670_v38 = vld [vmem:[#allocation2 + $0xda0] sm:$0xf]  ;;  %v5534_v61 = vld [vmem:[#allocation2 + $0xc90] sm:$0xf] }
  0xf7   : > { %3397 = vmatpush.bf16.msra.mxu3 %v5711_v24  ;;  %v5495_v24 = vor.u32 %v6117_v43, %v5494_v41  ;;  %v5479_v43 = vor.u32 %v6113_v25, %v5478_v23  ;;  %v5607_v54 = vor.u32 %v6145_v37, %v5606_v35  ;;  %v6127_v62 = vld [vmem:[#allocation2 + $0xc94] sm:$0xf0]  ;;  %v5590_v18 = vld [vmem:[#allocation2 + $0xd00] sm:$0xf]  ;;  %v6157_v23 = vld [vmem:[#allocation2 + $0xd84] sm:$0xf0] }
  0xf8   : > { %3359 = vmatpush.bf16.msra.mxu0 %v5511_v10  ;;  %v6147_v10 = vld [vmem:[#allocation2 + $0xd34] sm:$0xf0]  ;;  %v5738_v25 = vld [vmem:[#allocation2 + $0x74] sm:$0xf] }
  0xf9   : > { %3372 = vmatpush.bf16.msra.mxu1 %v5575_v11  ;;  %v5678_v11 = vld [vmem:[#allocation2 + $0xdb0] sm:$0xf]  ;;  %v5615_v26 = vor.u32 %v6147_v10, %v5614_v9  ;;  %v6143_v63 = vld [vmem:[#allocation2 + $0xd14] sm:$0xf0]  ;;  %v6109_v9 = vld [vmem:[#allocation2 + $0xc04] sm:$0xf0] }
  0xfa   : > { %3385 = vmatpush.bf16.msra.mxu2 %v5639_v19  ;;  %v5487_v19 = vor.u32 %v6115_v3, %v5486_v28  ;;  %v5679_v32 = vor.u32 %v6163_v14, %v5678_v11  ;;  %v5526_v10 = vld [vmem:[#allocation2 + $0xc80] sm:$0xf]  ;;  %v6125_v11 = vld [vmem:[#allocation2 + $0xc84] sm:$0xf0]  ;;  %v5599_v14 = vor.u32 %v6143_v63, %v5598_v36  ;;  %v5770_v35 = vld [vmem:[#allocation2 + $0x174] sm:$0xf] }
  0xfb   : > { %3398 = vmatpush.bf16.msra.mxu3 %v5703_v22  ;;  %v3083_v17 = vpop.f32.mrf.mxu2  ;;  %v5551_v22 = vor.u32 %v6131_v8, %v5550_v30  ;;  %v5535_v8 = vor.u32 %v6127_v62, %v5534_v61  ;;  %v352_v61 = vrot.slane %v6544_v47, 3  ;;  %v5736_v62 = vld [vmem:[#allocation2 + $0x64] sm:$0xf]  ;;  %v3976_v36 = vld [vmem:[#allocation2 + $0x68] sm:$0xf0] }
  0xfc   : > { %3360 = vmatpush.bf16.msra.mxu0 %v5503_v39  ;;  %v6161_v39 = vld [vmem:[#allocation2 + $0xda4] sm:$0xf0] }
  0xfd   : > { %3373 = vmatpush.bf16.msra.mxu1 %v5567_v40  ;;  %v3107_v40 = vpop.f32.mrf.mxu0  ;;  %v5671_v60 = vor.u32 %v6161_v39, %v5670_v38  ;;  %v5527_v38 = vor.u32 %v6125_v11, %v5526_v10  ;;  %v4112_v39 = vld [vmem:[#allocation2 + $0x178] sm:$0xf0]  ;;  %v351_v10 = vrot.slane %v6562_v1, 3  ;;  %v353_v11 = vrot.slane %v6548_v49, 3 }
  0xfe   : > { %3386 = vmatpush.bf16.msra.mxu2 %v5631_v46  ;;  %v3120_v41 = vpop.f32.mrf.mxu1  ;;  %v5543_v46 = vor.u32 %v6129_v34, %v5542_v33  ;;  %v3108_v53 = vadd.f32 %v3107_v40, %v3095_v55  ;;  %v5754_v33 = vld [vmem:[#allocation2 + $0xf4] sm:$0xf]  ;;  %v4048_v34 = vld [vmem:[#allocation2 + $0xf8] sm:$0xf0]  ;;  %v4115_v63 = vor.u32 %v5770_v35, %v4112_v39  ;;  %v5732_v39 = vld [vmem:[#allocation2 + $0x44] sm:$0xf] }
  0xff   : > { %3399 = vmatpush.bf16.msra.mxu3 %v5695_v48  ;;  %v5470_v48 = vld [vmem:[#allocation2 + $0xc10] sm:$0xf]  ;;  %v5786_v40 = vld [vmem:[#allocation2 + $0x1f4] sm:$0xf]  ;;  %v4160_v35 = vld [vmem:[#allocation2 + $0x1d8] sm:$0xf0] }
 0x100   : > { %3361 = vmatpush.bf16.msra.mxu0 %v5495_v24  ;;  %v5662_v24 = vld [vmem:[#allocation2 + $0xd90] sm:$0xf]  ;;  %v3121_v28 = vadd.f32 %v3120_v41, %v3108_v53  ;;  %v5471_v30 = vor.u32 %v6111_v50, %v5470_v48  ;;  %v4176_v41 = vld [vmem:[#allocation2 + $0x1f8] sm:$0xf0] }
 0x101   : > { %3374 = vmatpush.bf16.msra.mxu1 %v5559_v2  ;;  %v6159_v2 = vld [vmem:[#allocation2 + $0xd94] sm:$0xf0] }
 0x102   : > { %3387 = vmatpush.bf16.msra.mxu2 %v5623_v27  ;;  %v3146_v27 = vpop.f32.mrf.mxu3  ;;  %v5663_v17 = vor.u32 %v6159_v2, %v5662_v24  ;;  %v4179_v24 = vor.u32 %v5786_v40, %v4176_v41  ;;  %v5752_v2 = vld [vmem:[#allocation2 + $0xe4] sm:$0xf]  ;;  %v3960_v40 = vld [vmem:[#allocation2 + $0x48] sm:$0xf0] }
 0x103   : > { %3400 = vmatpush.bf16.msra.mxu3 %v5687_v6  ;;  %v3133_v3 = vpop.f32.mrf.mxu2  ;;  %v5462_v6 = vld [vmem:[#allocation2 + $0xc00] sm:$0xf] }
 0x104   : > { %3362 = vmatpush.bf16.msra.mxu0 %v5487_v19  ;;  %v3134_v55 = vadd.f32 %v3133_v3, %v3121_v28  ;;  %v6141_v19 = vld [vmem:[#allocation2 + $0xd04] sm:$0xf0]  ;;  %v5463_v37 = vor.u32 %v6109_v9, %v5462_v6  ;;  %v4040_v28 = vld [vmem:[#allocation2 + $0xe8] sm:$0xf0]  ;;  %v5768_v3 = vld [vmem:[#allocation2 + $0x164] sm:$0xf] }
 0x105   : > { %3375 = vmatpush.bf16.msra.mxu1 %v5551_v22  ;;  %v5654_v22 = vld [vmem:[#allocation2 + $0xd80] sm:$0xf]  ;;  %v5591_v48 = vor.u32 %v6141_v19, %v5590_v18  ;;  %v4168_v9 = vld [vmem:[#allocation2 + $0x1e8] sm:$0xf0]  ;;  %v3968_v18 = vld [vmem:[#allocation2 + $0x58] sm:$0xf0] }
 0x106   : > { %3388 = vmatpush.bf16.msra.mxu2 %v5615_v26  ;;  %v3984_v26 = vld [vmem:[#allocation2 + $0x78] sm:$0xf0]  ;;  %v5655_v50 = vor.u32 %v6157_v23, %v5654_v22  ;;  %v5750_v23 = vld [vmem:[#allocation2 + $0xd4] sm:$0xf] }
 0x107   : > { %3401 = vmatpush.bf16.msra.mxu3 %v5679_v32  ;;  %v6674_v32 = vadd.f32 %v3146_v27, %v3134_v55  ;;  %v3987_v53 = vor.u32 %v5738_v25, %v3984_v26  ;;  %v3979_v55 = vor.u32 %v5736_v62, %v3976_v36  ;;  %v4032_v25 = vld [vmem:[#allocation2 + $0xd8] sm:$0xf0]  ;;  %v5766_v26 = vld [vmem:[#allocation2 + $0x154] sm:$0xf]  ;;  %v4152_v62 = vld [vmem:[#allocation2 + $0x1c8] sm:$0xf0] }
 0x108   : > { %3363 = vmatpush.bf16.msra.mxu0 %v5479_v43  ;;  %v3109_v43 = vpop.f32.mrf.mxu0 }
 0x109   : > { %3376 = vmatpush.bf16.msra.mxu1 %v5543_v46  ;;  %v3122_v46 = vpop.f32.mrf.mxu1 }
 0x10a   : > { %3389 = vmatpush.bf16.msra.mxu2 %v5607_v54  ;;  %v4051_v54 = vor.u32 %v5754_v33, %v4048_v34  ;;  %v3148_v6 = vpop.f32.mrf.mxu3  ;;  %v4096_v33 = vld [vmem:[#allocation2 + $0x158] sm:$0xf0]  ;;  %v5782_v34 = vld [vmem:[#allocation2 + $0x1d4] sm:$0xf]  ;;  %v5748_v46 = vld [vmem:[#allocation2 + $0xc4] sm:$0xf] }
 0x10b   : > { %3402 = vmatpush.bf16.msra.mxu3 %v5671_v60  ;;  %v350_v60 = vrot.slane %v6558_v0, 3  ;;  %v3135_v27 = vpop.f32.mrf.mxu2  ;;  %v4099_v41 = vor.u32 %v5766_v26, %v4096_v33  ;;  %v4163_v43 = vor.u32 %v5782_v34, %v4160_v35  ;;  %v5744_v35 = vld [vmem:[#allocation2 + $0xa4] sm:$0xf] }
 0x10c   : > { %3364 = vmatpush.bf16.msra.mxu0 %v5471_v30  ;;  %v4104_v30 = vld [vmem:[#allocation2 + $0x168] sm:$0xf0]  ;;  %v3952_v27 = vld [vmem:[#allocation2 + $0x38] sm:$0xf0] }
 0x10d   : > { %3377 = vmatpush.bf16.msra.mxu1 %v5535_v8  ;;  %v5784_v8 = vld [vmem:[#allocation2 + $0x1e4] sm:$0xf]  ;;  %v4107_v19 = vor.u32 %v5768_v3, %v4104_v30  ;;  %v5730_v3 = vld [vmem:[#allocation2 + $0x34] sm:$0xf] }
 0x10e   : > { %3390 = vmatpush.bf16.msra.mxu2 %v5599_v14  ;;  %v4043_v14 = vor.u32 %v5752_v2, %v4040_v28  ;;  %v4171_v22 = vor.u32 %v5784_v8, %v4168_v9  ;;  %v5746_v8 = vld [vmem:[#allocation2 + $0xb4] sm:$0xf]  ;;  %v4016_v9 = vld [vmem:[#allocation2 + $0xb8] sm:$0xf0] }
 0x10f   : > { %3403 = vmatpush.bf16.msra.mxu3 %v5663_v17  ;;  %v5734_v17 = vld [vmem:[#allocation2 + $0x54] sm:$0xf] }
 0x110   : > { %3365 = vmatpush.bf16.msra.mxu0 %v5463_v37  ;;  %v3971_v37 = vor.u32 %v5734_v17, %v3968_v18  ;;  %v3159_v36 = vpop.f32.mrf.mxu0  ;;  %v4080_v17 = vld [vmem:[#allocation2 + $0x138] sm:$0xf0]  ;;  %v5778_v18 = vld [vmem:[#allocation2 + $0x1b4] sm:$0xf] }
 0x111   : > { %3378 = vmatpush.bf16.msra.mxu1 %v5527_v38  ;;  %v4035_v38 = vor.u32 %v5750_v23, %v4032_v25  ;;  %v3172_v28 = vpop.f32.mrf.mxu1  ;;  %v5728_v23 = vld [vmem:[#allocation2 + $0x24] sm:$0xf]  ;;  %v3944_v25 = vld [vmem:[#allocation2 + $0x28] sm:$0xf0] }
 0x112   : > { %3391 = vmatpush.bf16.msra.mxu2 %v5591_v48  ;;  %v4024_v48 = vld [vmem:[#allocation2 + $0xc8] sm:$0xf0] }
 0x113   : > { %3404 = vmatpush.bf16.msra.mxu3 %v5655_v50  ;;  %3366 = vmatmul.bf16.vlgmr.msra.gmra.mxu0 %v350_v60  ;;  %v5764_v50 = vld [vmem:[#allocation2 + $0x144] sm:$0xf]  ;;  %v4027_v2 = vor.u32 %v5748_v46, %v4024_v48  ;;  %v4136_v46 = vld [vmem:[#allocation2 + $0x1a8] sm:$0xf0] }
 0x114   : > { %3410 = vmatpush.bf16.msrb.mxu0 %v3987_v53  ;;  %3379 = vmatmul.bf16.vlgmr.msra.gmra.mxu1 %v351_v10  ;;  %v4088_v53 = vld [vmem:[#allocation2 + $0x148] sm:$0xf0] }
 0x115   : > { %3423 = vmatpush.bf16.msrb.mxu1 %v4051_v54  ;;  %3392 = vmatmul.bf16.vlgmr.msra.gmra.mxu2 %v352_v61  ;;  %v5780_v54 = vld [vmem:[#allocation2 + $0x1c4] sm:$0xf]  ;;  %v4091_v6 = vor.u32 %v5764_v50, %v4088_v53  ;;  %v3947_v53 = vor.u32 %v5728_v23, %v3944_v25  ;;  %v4056_v25 = vld [vmem:[#allocation2 + $0x108] sm:$0xf0] }
 0x116   : > { %3436 = vmatpush.bf16.msrb.mxu2 %v4115_v63  ;;  %3405 = vmatmul.bf16.vlgmr.msra.gmra.mxu3 %v353_v11  ;;  %v3160_v63 = vadd.f32 %v3159_v36, %v6674_v32  ;;  %v4155_v30 = vor.u32 %v5780_v54, %v4152_v62  ;;  %v4019_v32 = vor.u32 %v5746_v8, %v4016_v9  ;;  %v5726_v62 = vld [vmem:[#allocation2 + $0x14] sm:$0xf]  ;;  %v3936_v36 = vld [vmem:[#allocation2 + $0x18] sm:$0xf0]  ;;  %v5724_v9 = vld [vmem:[#allocation2 + $0x4] sm:$0xf] }
 0x117   : > { %3449 = vmatpush.bf16.msrb.mxu3 %v4179_v24  ;;  %v3963_v24 = vor.u32 %v5732_v39, %v3960_v40  ;;  %v4128_v8 = vld [vmem:[#allocation2 + $0x198] sm:$0xf0]  ;;  %v5756_v23 = vld [vmem:[#allocation2 + $0x104] sm:$0xf] }
 0x118   : > { %3411 = vmatpush.bf16.msrb.mxu0 %v3979_v55  ;;  %v5762_v55 = vld [vmem:[#allocation2 + $0x134] sm:$0xf]  ;;  %v3185_v34 = vpop.f32.mrf.mxu2  ;;  %v3161_v48 = vpop.f32.mrf.mxu0 }
 0x119   : > { %3424 = vmatpush.bf16.msrb.mxu1 %v4043_v14  ;;  %v3173_v14 = vadd.f32 %v3172_v28, %v3160_v63  ;;  %v4083_v26 = vor.u32 %v5762_v55, %v4080_v17  ;;  %v3198_v40 = vpop.f32.mrf.mxu3  ;;  %v3174_v63 = vpop.f32.mrf.mxu1  ;;  %v5742_v28 = vld [vmem:[#allocation2 + $0x94] sm:$0xf]  ;;  %v3939_v55 = vor.u32 %v5726_v62, %v3936_v36  ;;  %v3928_v17 = vld [vmem:[#allocation2 + $0x8] sm:$0xf0]  ;;  %v4368_v48 = vld [vmem:[#allocation2 + $0x378] sm:$0xf0]  ;;  %v4059_v62 = vor.u32 %v5756_v23, %v4056_v25 }
 0x11a   : > { %3437 = vmatpush.bf16.msrb.mxu2 %v4107_v19  ;;  %v4144_v19 = vld [vmem:[#allocation2 + $0x1b8] sm:$0xf0]  ;;  %v5814_v25 = vld [vmem:[#allocation2 + $0x2d4] sm:$0xf] }
 0x11b   : > { %3450 = vmatpush.bf16.msrb.mxu3 %v4171_v22  ;;  %v3955_v22 = vor.u32 %v5730_v3, %v3952_v27  ;;  %v4147_v33 = vor.u32 %v5778_v18, %v4144_v19  ;;  %v3186_v39 = vadd.f32 %v3185_v34, %v3173_v14  ;;  %v4000_v3 = vld [vmem:[#allocation2 + $0x98] sm:$0xf0]  ;;  %v5758_v27 = vld [vmem:[#allocation2 + $0x114] sm:$0xf]  ;;  %v5740_v18 = vld [vmem:[#allocation2 + $0x84] sm:$0xf] }
 0x11c   : > { %3412 = vmatpush.bf16.msrb.mxu0 %v3971_v37  ;;  %v4008_v37 = vld [vmem:[#allocation2 + $0xa8] sm:$0xf0]  ;;  %v4003_v14 = vor.u32 %v5742_v28, %v4000_v3 }
 0x11d   : > { %3425 = vmatpush.bf16.msrb.mxu1 %v4035_v38  ;;  %v5760_v38 = vld [vmem:[#allocation2 + $0x124] sm:$0xf]  ;;  %v6689_v50 = vadd.f32 %v3198_v40, %v3186_v39  ;;  %v4011_v54 = vor.u32 %v5744_v35, %v4008_v37  ;;  %v3992_v19 = vld [vmem:[#allocation2 + $0x88] sm:$0xf0]  ;;  %v5802_v35 = vld [vmem:[#allocation2 + $0x274] sm:$0xf] }
 0x11e   : > { %3438 = vmatpush.bf16.msrb.mxu2 %v4099_v41  ;;  %v4072_v41 = vld [vmem:[#allocation2 + $0x128] sm:$0xf0]  ;;  %v4240_v37 = vld [vmem:[#allocation2 + $0x278] sm:$0xf0]  ;;  %v5818_v39 = vld [vmem:[#allocation2 + $0x2f4] sm:$0xf] }
 0x11f   : > { %3451 = vmatpush.bf16.msrb.mxu3 %v4163_v43  ;;  %v5776_v43 = vld [vmem:[#allocation2 + $0x1a4] sm:$0xf]  ;;  %v4120_v34 = vld [vmem:[#allocation2 + $0x188] sm:$0xf0]  ;;  %v4304_v40 = vld [vmem:[#allocation2 + $0x2f8] sm:$0xf0]  ;;  %v4243_v63 = vor.u32 %v5802_v35, %v4240_v37 }
 0x120   : > { %3413 = vmatpush.bf16.msrb.mxu0 %v3963_v24  ;;  %v4075_v24 = vor.u32 %v5760_v38, %v4072_v41  ;;  %v5834_v41 = vld [vmem:[#allocation2 + $0x374] sm:$0xf]  ;;  %v4232_v28 = vld [vmem:[#allocation2 + $0x268] sm:$0xf0]  ;;  %v4416_v37 = vld [vmem:[#allocation2 + $0x3d8] sm:$0xf0] }
 0x121   : > { %3426 = vmatpush.bf16.msrb.mxu1 %v4027_v2  ;;  %v4139_v2 = vor.u32 %v5776_v43, %v4136_v46  ;;  %v3200_v38 = vpop.f32.mrf.mxu3  ;;  %v3931_v43 = vor.u32 %v5724_v9, %v3928_v17  ;;  %v3995_v46 = vor.u32 %v5740_v18, %v3992_v19  ;;  %v4371_v3 = vor.u32 %v5834_v41, %v4368_v48  ;;  %v4360_v9 = vld [vmem:[#allocation2 + $0x368] sm:$0xf0]  ;;  %v5798_v19 = vld [vmem:[#allocation2 + $0x254] sm:$0xf]  ;;  %v5812_v48 = vld [vmem:[#allocation2 + $0x2c4] sm:$0xf] }
 0x122   : > { %3439 = vmatpush.bf16.msrb.mxu2 %v4091_v6  ;;  %v4064_v6 = vld [vmem:[#allocation2 + $0x118] sm:$0xf0]  ;;  %v5846_v35 = vld [vmem:[#allocation2 + $0x3d4] sm:$0xf]  ;;  %v4216_v41 = vld [vmem:[#allocation2 + $0x248] sm:$0xf0] }
 0x123   : > { %3452 = vmatpush.bf16.msrb.mxu3 %v4155_v30  ;;  %v5774_v30 = vld [vmem:[#allocation2 + $0x194] sm:$0xf] }
 0x124   : > { %3414 = vmatpush.bf16.msrb.mxu0 %v3955_v22  ;;  %v4067_v22 = vor.u32 %v5758_v27, %v4064_v6  ;;  %v5816_v6 = vld [vmem:[#allocation2 + $0x2e4] sm:$0xf] }
 0x125   : > { %3427 = vmatpush.bf16.msrb.mxu1 %v4019_v32  ;;  %v4131_v32 = vor.u32 %v5774_v30, %v4128_v8  ;;  %v4296_v30 = vld [vmem:[#allocation2 + $0x2e8] sm:$0xf0]  ;;  %v5832_v8 = vld [vmem:[#allocation2 + $0x364] sm:$0xf] }
 0x126   : > { %3440 = vmatpush.bf16.msrb.mxu2 %v4083_v26  ;;  %v5772_v26 = vld [vmem:[#allocation2 + $0x184] sm:$0xf]  ;;  %v4299_v18 = vor.u32 %v5816_v6, %v4296_v30  ;;  %v5794_v6 = vld [vmem:[#allocation2 + $0x234] sm:$0xf]  ;;  %v4208_v30 = vld [vmem:[#allocation2 + $0x238] sm:$0xf0] }
 0x127   : > { %3453 = vmatpush.bf16.msrb.mxu3 %v4147_v33  ;;  %v3187_v33 = vpop.f32.mrf.mxu2  ;;  %v4123_v36 = vor.u32 %v5772_v26, %v4120_v34  ;;  %v4288_v26 = vld [vmem:[#allocation2 + $0x2d8] sm:$0xf0] }
 0x128   : > { %3415 = vmatpush.bf16.msrb.mxu0 %v3947_v53  ;;  %v5850_v53 = vld [vmem:[#allocation2 + $0x3f4] sm:$0xf]  ;;  %v4352_v34 = vld [vmem:[#allocation2 + $0x358] sm:$0xf0] }
 0x129   : > { %3428 = vmatpush.bf16.msrb.mxu1 %v4011_v54  ;;  %v4432_v54 = vld [vmem:[#allocation2 + $0x3f8] sm:$0xf0]  ;;  %v5830_v33 = vld [vmem:[#allocation2 + $0x354] sm:$0xf] }
 0x12a   : > { %3441 = vmatpush.bf16.msrb.mxu2 %v4075_v24  ;;  %v4307_v24 = vor.u32 %v5818_v39, %v4304_v40  ;;  %v4435_v27 = vor.u32 %v5850_v53, %v4432_v54  ;;  %v4291_v39 = vor.u32 %v5814_v25, %v4288_v26  ;;  %v5796_v40 = vld [vmem:[#allocation2 + $0x244] sm:$0xf]  ;;  %v4280_v53 = vld [vmem:[#allocation2 + $0x2c8] sm:$0xf0] }
 0x12b   : > { %3454 = vmatpush.bf16.msrb.mxu3 %v4139_v2  ;;  %v5800_v2 = vld [vmem:[#allocation2 + $0x264] sm:$0xf]  ;;  %v4200_v26 = vld [vmem:[#allocation2 + $0x228] sm:$0xf0] }
 0x12c   : > { %3416 = vmatpush.bf16.msrb.mxu0 %v3939_v55  ;;  %v5848_v55 = vld [vmem:[#allocation2 + $0x3e4] sm:$0xf]  ;;  %v4235_v17 = vor.u32 %v5800_v2, %v4232_v28  ;;  %v4219_v28 = vor.u32 %v5796_v40, %v4216_v41 }
 0x12d   : > { %3429 = vmatpush.bf16.msrb.mxu1 %v4003_v14  ;;  %v4424_v14 = vld [vmem:[#allocation2 + $0x3e8] sm:$0xf0]  ;;  %v5828_v54 = vld [vmem:[#allocation2 + $0x344] sm:$0xf] }
 0x12e   : > { %3442 = vmatpush.bf16.msrb.mxu2 %v4067_v22  ;;  %v4224_v22 = vld [vmem:[#allocation2 + $0x258] sm:$0xf0]  ;;  %v4427_v23 = vor.u32 %v5848_v55, %v4424_v14  ;;  %v5810_v55 = vld [vmem:[#allocation2 + $0x2b4] sm:$0xf]  ;;  %v5792_v25 = vld [vmem:[#allocation2 + $0x224] sm:$0xf] }
 0x12f   : > { %3455 = vmatpush.bf16.msrb.mxu3 %v4131_v32  ;;  %v4363_v32 = vor.u32 %v5832_v8, %v4360_v9  ;;  %v4227_v38 = vor.u32 %v5798_v19, %v4224_v22  ;;  %v4272_v14 = vld [vmem:[#allocation2 + $0x2b8] sm:$0xf0]  ;;  %v5842_v22 = vld [vmem:[#allocation2 + $0x3b4] sm:$0xf] }
 0x130   : > { %3417 = vmatpush.bf16.msrb.mxu0 %v3931_v43  ;;  %v4355_v43 = vor.u32 %v5830_v33, %v4352_v34  ;;  %v4336_v19 = vld [vmem:[#allocation2 + $0x338] sm:$0xf0] }
 0x131   : > { %3430 = vmatpush.bf16.msrb.mxu1 %v3995_v46  ;;  %v4419_v46 = vor.u32 %v5846_v35, %v4416_v37  ;;  %v5808_v37 = vld [vmem:[#allocation2 + $0x2a4] sm:$0xf] }
 0x132   : > { %3443 = vmatpush.bf16.msrb.mxu2 %v4059_v62  ;;  %v4344_v62 = vld [vmem:[#allocation2 + $0x348] sm:$0xf0] }
 0x133   : > { %3456 = vmatpush.bf16.msrb.mxu3 %v4123_v36  ;;  %3418 = vmatmul.bf16.vlgmr.msrb.gmra.mxu0 %v6558_v0  ;;  %v5844_v36 = vld [vmem:[#allocation2 + $0x3c4] sm:$0xf]  ;;  %v4347_v8 = vor.u32 %v5828_v54, %v4344_v62  ;;  %v4203_v62 = vor.u32 %v5792_v25, %v4200_v26  ;;  %v4312_v26 = vld [vmem:[#allocation2 + $0x308] sm:$0xf0] }
 0x134   : > { %3462 = vmatpush.bf16.msra.mxu0 %v4243_v63  ;;  %3431 = vmatmul.bf16.vlgmr.msrb.gmra.mxu1 %v6562_v1  ;;  %v4408_v63 = vld [vmem:[#allocation2 + $0x3c8] sm:$0xf0]  ;;  %v5820_v25 = vld [vmem:[#allocation2 + $0x304] sm:$0xf] }
 0x135   : > { %3475 = vmatpush.bf16.msra.mxu1 %v4307_v24  ;;  %3444 = vmatmul.bf16.vlgmr.msrb.gmra.mxu2 %v6544_v47  ;;  %v3211_v24 = vpop.f32.mrf.mxu0  ;;  %v4411_v9 = vor.u32 %v5844_v36, %v4408_v63  ;;  %v5790_v63 = vld [vmem:[#allocation2 + $0x214] sm:$0xf] }
 0x136   : > { %3488 = vmatpush.bf16.msra.mxu2 %v4371_v3  ;;  %3457 = vmatmul.bf16.vlgmr.msrb.gmra.mxu3 %v6548_v49  ;;  %v3212_v2 = vadd.f32 %v3211_v24, %v6689_v50  ;;  %v4283_v3 = vor.u32 %v5812_v48, %v4280_v53  ;;  %v4275_v50 = vor.u32 %v5810_v55, %v4272_v14  ;;  %v4392_v48 = vld [vmem:[#allocation2 + $0x3a8] sm:$0xf0]  ;;  %v4192_v24 = vld [vmem:[#allocation2 + $0x218] sm:$0xf0]  ;;  %v5788_v14 = vld [vmem:[#allocation2 + $0x204] sm:$0xf] }
 0x137   : > { %3501 = vmatpush.bf16.msra.mxu3 %v4435_v27  ;;  %v3224_v27 = vpop.f32.mrf.mxu1  ;;  %v4384_v55 = vld [vmem:[#allocation2 + $0x398] sm:$0xf0] }
 0x138   : > { %3463 = vmatpush.bf16.msra.mxu0 %v4235_v17  ;;  %v5826_v17 = vld [vmem:[#allocation2 + $0x334] sm:$0xf]  ;;  %v3237_v35 = vpop.f32.mrf.mxu2 }
 0x139   : > { %3476 = vmatpush.bf16.msra.mxu1 %v4299_v18  ;;  %v3225_v18 = vadd.f32 %v3224_v27, %v3212_v2  ;;  %v4339_v33 = vor.u32 %v5826_v17, %v4336_v19  ;;  %v3250_v41 = vpop.f32.mrf.mxu3  ;;  %v5806_v27 = vld [vmem:[#allocation2 + $0x294] sm:$0xf]  ;;  %v4195_v17 = vor.u32 %v5790_v63, %v4192_v24  ;;  %v4184_v19 = vld [vmem:[#allocation2 + $0x208] sm:$0xf0]  ;;  %v4315_v63 = vor.u32 %v5820_v25, %v4312_v26 }
 0x13a   : > { %3489 = vmatpush.bf16.msra.mxu2 %v4363_v32  ;;  %v4400_v32 = vld [vmem:[#allocation2 + $0x3b8] sm:$0xf0]  ;;  %v5878_v26 = vld [vmem:[#allocation2 + $0x4d4] sm:$0xf] }
 0x13b   : > { %3502 = vmatpush.bf16.msra.mxu3 %v4427_v23  ;;  %v4211_v23 = vor.u32 %v5794_v6, %v4208_v30  ;;  %v4403_v34 = vor.u32 %v5842_v22, %v4400_v32  ;;  %v3238_v40 = vadd.f32 %v3237_v35, %v3225_v18  ;;  %v4256_v6 = vld [vmem:[#allocation2 + $0x298] sm:$0xf0]  ;;  %v5822_v30 = vld [vmem:[#allocation2 + $0x314] sm:$0xf]  ;;  %v5804_v22 = vld [vmem:[#allocation2 + $0x284] sm:$0xf] }
 0x13c   : > { %3464 = vmatpush.bf16.msra.mxu0 %v4227_v38  ;;  %v4264_v38 = vld [vmem:[#allocation2 + $0x2a8] sm:$0xf0]  ;;  %v4259_v18 = vor.u32 %v5806_v27, %v4256_v6 }
 0x13d   : > { %3477 = vmatpush.bf16.msra.mxu1 %v4291_v39  ;;  %v5824_v39 = vld [vmem:[#allocation2 + $0x324] sm:$0xf]  ;;  %v3213_v53 = vpop.f32.mrf.mxu0  ;;  %v6696_v54 = vadd.f32 %v3250_v41, %v3238_v40  ;;  %v4267_v36 = vor.u32 %v5808_v37, %v4264_v38  ;;  %v4248_v32 = vld [vmem:[#allocation2 + $0x288] sm:$0xf0]  ;;  %v5866_v37 = vld [vmem:[#allocation2 + $0x474] sm:$0xf] }
 0x13e   : > { %3490 = vmatpush.bf16.msra.mxu2 %v4355_v43  ;;  %v4328_v43 = vld [vmem:[#allocation2 + $0x328] sm:$0xf0]  ;;  %v4496_v38 = vld [vmem:[#allocation2 + $0x478] sm:$0xf0]  ;;  %v5882_v40 = vld [vmem:[#allocation2 + $0x4f4] sm:$0xf] }
 0x13f   : > { %3503 = vmatpush.bf16.msra.mxu3 %v4419_v46  ;;  %v5840_v46 = vld [vmem:[#allocation2 + $0x3a4] sm:$0xf]  ;;  %v3226_v2 = vpop.f32.mrf.mxu1  ;;  %v4376_v35 = vld [vmem:[#allocation2 + $0x388] sm:$0xf0]  ;;  %v4560_v41 = vld [vmem:[#allocation2 + $0x4f8] sm:$0xf0] }
 0x140   : > { %3465 = vmatpush.bf16.msra.mxu0 %v4219_v28  ;;  %v4331_v28 = vor.u32 %v5824_v39, %v4328_v43  ;;  %v5898_v43 = vld [vmem:[#allocation2 + $0x574] sm:$0xf]  ;;  %v4624_v53 = vld [vmem:[#allocation2 + $0x578] sm:$0xf0]  ;;  %v4499_v2 = vor.u32 %v5866_v37, %v4496_v38  ;;  %v4488_v27 = vld [vmem:[#allocation2 + $0x468] sm:$0xf0] }
 0x141   : > { %3478 = vmatpush.bf16.msra.mxu1 %v4283_v3  ;;  %v4395_v3 = vor.u32 %v5840_v46, %v4392_v48  ;;  %v3252_v39 = vpop.f32.mrf.mxu3  ;;  %v4187_v46 = vor.u32 %v5788_v14, %v4184_v19  ;;  %v4251_v48 = vor.u32 %v5804_v22, %v4248_v32  ;;  %v4627_v6 = vor.u32 %v5898_v43, %v4624_v53  ;;  %v4616_v14 = vld [vmem:[#allocation2 + $0x568] sm:$0xf0]  ;;  %v5862_v32 = vld [vmem:[#allocation2 + $0x454] sm:$0xf]  ;;  %v4672_v38 = vld [vmem:[#allocation2 + $0x5d8] sm:$0xf0] }
 0x142   : > { %3491 = vmatpush.bf16.msra.mxu2 %v4347_v8  ;;  %v4320_v8 = vld [vmem:[#allocation2 + $0x318] sm:$0xf0]  ;;  %v5910_v37 = vld [vmem:[#allocation2 + $0x5d4] sm:$0xf]  ;;  %v4472_v43 = vld [vmem:[#allocation2 + $0x448] sm:$0xf0] }
 0x143   : > { %3504 = vmatpush.bf16.msra.mxu3 %v4411_v9  ;;  %v5838_v9 = vld [vmem:[#allocation2 + $0x394] sm:$0xf]  ;;  %v4536_v53 = vld [vmem:[#allocation2 + $0x4c8] sm:$0xf0] }
 0x144   : > { %3466 = vmatpush.bf16.msra.mxu0 %v4211_v23  ;;  %v4323_v23 = vor.u32 %v5822_v30, %v4320_v8  ;;  %v5880_v8 = vld [vmem:[#allocation2 + $0x4e4] sm:$0xf] }
 0x145   : > { %3479 = vmatpush.bf16.msra.mxu1 %v4275_v50  ;;  %v4387_v50 = vor.u32 %v5838_v9, %v4384_v55  ;;  %v4552_v9 = vld [vmem:[#allocation2 + $0x4e8] sm:$0xf0]  ;;  %v5896_v55 = vld [vmem:[#allocation2 + $0x564] sm:$0xf] }
 0x146   : > { %3492 = vmatpush.bf16.msra.mxu2 %v4339_v33  ;;  %v5836_v33 = vld [vmem:[#allocation2 + $0x384] sm:$0xf]  ;;  %v4555_v22 = vor.u32 %v5880_v8, %v4552_v9  ;;  %v4528_v8 = vld [vmem:[#allocation2 + $0x4b8] sm:$0xf0]  ;;  %v5890_v9 = vld [vmem:[#allocation2 + $0x534] sm:$0xf] }
 0x147   : > { %3505 = vmatpush.bf16.msra.mxu3 %v4403_v34  ;;  %v3239_v34 = vpop.f32.mrf.mxu2  ;;  %v4379_v24 = vor.u32 %v5836_v33, %v4376_v35  ;;  %v4544_v33 = vld [vmem:[#allocation2 + $0x4d8] sm:$0xf0] }
 0x148   : > { %3467 = vmatpush.bf16.msra.mxu0 %v4203_v62  ;;  %v5914_v62 = vld [vmem:[#allocation2 + $0x5f4] sm:$0xf]  ;;  %v4608_v35 = vld [vmem:[#allocation2 + $0x558] sm:$0xf0] }
 0x149   : > { %3480 = vmatpush.bf16.msra.mxu1 %v4267_v36  ;;  %v4688_v36 = vld [vmem:[#allocation2 + $0x5f8] sm:$0xf0]  ;;  %v5894_v34 = vld [vmem:[#allocation2 + $0x554] sm:$0xf] }
 0x14a   : > { %3493 = vmatpush.bf16.msra.mxu2 %v4331_v28  ;;  %v4563_v28 = vor.u32 %v5882_v40, %v4560_v41  ;;  %v4691_v30 = vor.u32 %v5914_v62, %v4688_v36  ;;  %v4547_v40 = vor.u32 %v5878_v26, %v4544_v33  ;;  %v5860_v41 = vld [vmem:[#allocation2 + $0x444] sm:$0xf]  ;;  %v4600_v62 = vld [vmem:[#allocation2 + $0x548] sm:$0xf0] }
 0x14b   : > { %3506 = vmatpush.bf16.msra.mxu3 %v4395_v3  ;;  %v5864_v3 = vld [vmem:[#allocation2 + $0x464] sm:$0xf]  ;;  %v4520_v33 = vld [vmem:[#allocation2 + $0x4a8] sm:$0xf0] }
 0x14c   : > { %3468 = vmatpush.bf16.msra.mxu0 %v4195_v17  ;;  %v5912_v17 = vld [vmem:[#allocation2 + $0x5e4] sm:$0xf]  ;;  %v4491_v19 = vor.u32 %v5864_v3, %v4488_v27  ;;  %v4464_v3 = vld [vmem:[#allocation2 + $0x438] sm:$0xf0] }
 0x14d   : > { %3481 = vmatpush.bf16.msra.mxu1 %v4259_v18  ;;  %v4680_v18 = vld [vmem:[#allocation2 + $0x5e8] sm:$0xf0]  ;;  %v5908_v36 = vld [vmem:[#allocation2 + $0x5c4] sm:$0xf] }
 0x14e   : > { %3494 = vmatpush.bf16.msra.mxu2 %v4323_v23  ;;  %v4480_v23 = vld [vmem:[#allocation2 + $0x458] sm:$0xf0]  ;;  %v4683_v25 = vor.u32 %v5912_v17, %v4680_v18  ;;  %v5872_v26 = vld [vmem:[#allocation2 + $0x4a4] sm:$0xf] }
 0x14f   : > { %3507 = vmatpush.bf16.msra.mxu3 %v4387_v50  ;;  %v4619_v50 = vor.u32 %v5896_v55, %v4616_v14  ;;  %v4483_v39 = vor.u32 %v5862_v32, %v4480_v23  ;;  %v4592_v55 = vld [vmem:[#allocation2 + $0x538] sm:$0xf0]  ;;  %v5906_v14 = vld [vmem:[#allocation2 + $0x5b4] sm:$0xf]  ;;  %v4456_v32 = vld [vmem:[#allocation2 + $0x428] sm:$0xf0] }
 0x150   : > { %3469 = vmatpush.bf16.msra.mxu0 %v4187_v46  ;;  %v4611_v46 = vor.u32 %v5894_v34, %v4608_v35  ;;  %v4656_v17 = vld [vmem:[#allocation2 + $0x5b8] sm:$0xf0]  ;;  %v4595_v23 = vor.u32 %v5890_v9, %v4592_v55  ;;  %v5888_v34 = vld [vmem:[#allocation2 + $0x524] sm:$0xf]  ;;  %v4504_v9 = vld [vmem:[#allocation2 + $0x488] sm:$0xf0] }
 0x151   : > { %3482 = vmatpush.bf16.msra.mxu1 %v4251_v48  ;;  %v4675_v48 = vor.u32 %v5910_v37, %v4672_v38  ;;  %v4584_v37 = vld [vmem:[#allocation2 + $0x528] sm:$0xf0]  ;;  %v5904_v38 = vld [vmem:[#allocation2 + $0x5a4] sm:$0xf] }
 0x152   : > { %3495 = vmatpush.bf16.msra.mxu2 %v4315_v63  ;;  %v4664_v63 = vld [vmem:[#allocation2 + $0x5c8] sm:$0xf0] }
 0x153   : > { %3508 = vmatpush.bf16.msra.mxu3 %v4379_v24  ;;  %3470 = vmatmul.bf16.vlgmr.msra.gmra.mxu0 %v6601_v58  ;;  %v5892_v58 = vld [vmem:[#allocation2 + $0x544] sm:$0xf]  ;;  %v6702_v24 = vpop.f32.mrf.mxu0 }
 0x154   : > { %3514 = vmatpush.bf16.msrb.mxu0 %v4499_v2  ;;  %3483 = vmatmul.bf16.vlgmr.msra.gmra.mxu1 %v6604_v59  ;;  %v6704_v2 = vpop.f32.mrf.mxu1  ;;  %v4603_v27 = vor.u32 %v5892_v58, %v4600_v62  ;;  %v5870_v62 = vld [vmem:[#allocation2 + $0x494] sm:$0xf] }
 0x155   : > { %3527 = vmatpush.bf16.msrb.mxu1 %v4563_v28  ;;  %3496 = vmatmul.bf16.vlgmr.msra.gmra.mxu2 %v6595_v44  ;;  %v5876_v44 = vld [vmem:[#allocation2 + $0x4c4] sm:$0xf]  ;;  %v5858_v28 = vld [vmem:[#allocation2 + $0x434] sm:$0xf] }
 0x156   : > { %3540 = vmatpush.bf16.msrb.mxu2 %v4627_v6  ;;  %3509 = vmatmul.bf16.vlgmr.msra.gmra.mxu3 %v6598_v45  ;;  %v4475_v45 = vor.u32 %v5860_v41, %v4472_v43  ;;  %v4539_v59 = vor.u32 %v5876_v44, %v4536_v53  ;;  %v4667_v6 = vor.u32 %v5908_v36, %v4664_v63  ;;  %v4512_v36 = vld [vmem:[#allocation2 + $0x498] sm:$0xf0]  ;;  %v5886_v63 = vld [vmem:[#allocation2 + $0x514] sm:$0xf] }
 0x157   : > { %3553 = vmatpush.bf16.msrb.mxu3 %v4691_v30  ;;  %v5874_v30 = vld [vmem:[#allocation2 + $0x4b4] sm:$0xf]  ;;  %v4467_v18 = vor.u32 %v5858_v28, %v4464_v3  ;;  %v4523_v43 = vor.u32 %v5872_v26, %v4520_v33  ;;  %v4587_v53 = vor.u32 %v5888_v34, %v4584_v37  ;;  %v4640_v28 = vld [vmem:[#allocation2 + $0x598] sm:$0xf0]  ;;  %v5852_v3 = vld [vmem:[#allocation2 + $0x404] sm:$0xf] }
 0x158   : > { %3515 = vmatpush.bf16.msrb.mxu0 %v4491_v19  ;;  %v4531_v19 = vor.u32 %v5874_v30, %v4528_v8  ;;  %v4440_v30 = vld [vmem:[#allocation2 + $0x408] sm:$0xf0]  ;;  %v5868_v8 = vld [vmem:[#allocation2 + $0x484] sm:$0xf]  ;;  %v5946_v33 = vld [vmem:[#allocation2 + $0x6f4] sm:$0xf] }
 0x159   : > { %3528 = vmatpush.bf16.msrb.mxu1 %v4555_v22  ;;  %v5856_v22 = vld [vmem:[#allocation2 + $0x424] sm:$0xf]  ;;  %v6708_v35 = vpop.f32.mrf.mxu3  ;;  %v4816_v34 = vld [vmem:[#allocation2 + $0x6f8] sm:$0xf0]  ;;  %v5962_v37 = vld [vmem:[#allocation2 + $0x774] sm:$0xf] }
 0x15a   : > { %3541 = vmatpush.bf16.msrb.mxu2 %v4619_v50  ;;  %v4659_v50 = vor.u32 %v5906_v14, %v4656_v17  ;;  %v4459_v41 = vor.u32 %v5856_v22, %v4456_v32  ;;  %v5884_v17 = vld [vmem:[#allocation2 + $0x504] sm:$0xf]  ;;  %v4632_v32 = vld [vmem:[#allocation2 + $0x588] sm:$0xf0] }
 0x15b   : > { %3554 = vmatpush.bf16.msrb.mxu3 %v4683_v25  ;;  %v6706_v25 = vpop.f32.mrf.mxu2 }
 0x15c   : > { %3516 = vmatpush.bf16.msrb.mxu0 %v4483_v39  ;;  %v4648_v39 = vld [vmem:[#allocation2 + $0x5a8] sm:$0xf0]  ;;  %v3278_v44 = vpop.f32.mrf.mxu1 }
 0x15d   : > { %3529 = vmatpush.bf16.msrb.mxu1 %v4547_v40  ;;  %v3265_v40 = vpop.f32.mrf.mxu0  ;;  %v4651_v58 = vor.u32 %v5904_v38, %v4648_v39  ;;  %v4443_v38 = vor.u32 %v5852_v3, %v4440_v30  ;;  %v4507_v39 = vor.u32 %v5868_v8, %v4504_v9  ;;  %v4872_v3 = vld [vmem:[#allocation2 + $0x768] sm:$0xf0]  ;;  %v5926_v9 = vld [vmem:[#allocation2 + $0x654] sm:$0xf] }
 0x15e   : > { %3542 = vmatpush.bf16.msrb.mxu2 %v4611_v46  ;;  %v5854_v46 = vld [vmem:[#allocation2 + $0x414] sm:$0xf]  ;;  %v4880_v40 = vld [vmem:[#allocation2 + $0x778] sm:$0xf0] }
 0x15f   : > { %3555 = vmatpush.bf16.msrb.mxu3 %v4675_v48  ;;  %v4448_v48 = vld [vmem:[#allocation2 + $0x418] sm:$0xf0] }
 0x160   : > { %3517 = vmatpush.bf16.msrb.mxu0 %v4475_v45  ;;  %v4576_v45 = vld [vmem:[#allocation2 + $0x518] sm:$0xf0] }
 0x161   : > { %3530 = vmatpush.bf16.msrb.mxu1 %v4539_v59  ;;  %v5902_v59 = vld [vmem:[#allocation2 + $0x594] sm:$0xf]  ;;  %v4579_v55 = vor.u32 %v5886_v63, %v4576_v45  ;;  %v3304_v26 = vpop.f32.mrf.mxu3  ;;  %v5944_v45 = vld [vmem:[#allocation2 + $0x6e4] sm:$0xf] }
 0x162   : > { %3543 = vmatpush.bf16.msrb.mxu2 %v4603_v27  ;;  %v4451_v27 = vor.u32 %v5854_v46, %v4448_v48  ;;  %v4643_v14 = vor.u32 %v5902_v59, %v4640_v28  ;;  %v4808_v59 = vld [vmem:[#allocation2 + $0x6e8] sm:$0xf0]  ;;  %v5960_v28 = vld [vmem:[#allocation2 + $0x764] sm:$0xf] }
 0x163   : > { %3556 = vmatpush.bf16.msrb.mxu3 %v4667_v6  ;;  %v4515_v6 = vor.u32 %v5870_v62, %v4512_v36  ;;  %v3291_v22 = vpop.f32.mrf.mxu2  ;;  %v4744_v62 = vld [vmem:[#allocation2 + $0x668] sm:$0xf0]  ;;  %v4883_v36 = vor.u32 %v5962_v37, %v4880_v40  ;;  %v4811_v8 = vor.u32 %v5944_v45, %v4808_v59  ;;  %v5956_v40 = vld [vmem:[#allocation2 + $0x744] sm:$0xf]  ;;  %v4784_v45 = vld [vmem:[#allocation2 + $0x6b8] sm:$0xf0] }
 0x164   : > { %3518 = vmatpush.bf16.msrb.mxu0 %v4467_v18  ;;  %v4568_v18 = vld [vmem:[#allocation2 + $0x508] sm:$0xf0]  ;;  %v5958_v22 = vld [vmem:[#allocation2 + $0x754] sm:$0xf] }
 0x165   : > { %3531 = vmatpush.bf16.msrb.mxu1 %v4531_v19  ;;  %v5900_v19 = vld [vmem:[#allocation2 + $0x584] sm:$0xf]  ;;  %v4571_v46 = vor.u32 %v5884_v17, %v4568_v18  ;;  %v5942_v18 = vld [vmem:[#allocation2 + $0x6d4] sm:$0xf]  ;;  %v4728_v37 = vld [vmem:[#allocation2 + $0x648] sm:$0xf0] }
 0x166   : > { %3544 = vmatpush.bf16.msrb.mxu2 %v4595_v23  ;;  %v5930_v23 = vld [vmem:[#allocation2 + $0x674] sm:$0xf]  ;;  %v4635_v48 = vor.u32 %v5900_v19, %v4632_v32  ;;  %v4800_v19 = vld [vmem:[#allocation2 + $0x6d8] sm:$0xf0] }
 0x167   : > { %3557 = vmatpush.bf16.msrb.mxu3 %v4659_v50  ;;  %v4752_v50 = vld [vmem:[#allocation2 + $0x678] sm:$0xf0]  ;;  %v5954_v59 = vld [vmem:[#allocation2 + $0x734] sm:$0xf] }
 0x168   : > { %3519 = vmatpush.bf16.msrb.mxu0 %v4459_v41  ;;  %v5978_v41 = vld [vmem:[#allocation2 + $0x7f4] sm:$0xf]  ;;  %v4755_v44 = vor.u32 %v5930_v23, %v4752_v50  ;;  %v4864_v32 = vld [vmem:[#allocation2 + $0x758] sm:$0xf0] }
 0x169   : > { %3532 = vmatpush.bf16.msrb.mxu1 %v4523_v43  ;;  %v4944_v43 = vld [vmem:[#allocation2 + $0x7f8] sm:$0xf0]  ;;  %v5974_v23 = vld [vmem:[#allocation2 + $0x7d4] sm:$0xf] }
 0x16a   : > { %3545 = vmatpush.bf16.msrb.mxu2 %v4587_v53  ;;  %v4819_v53 = vor.u32 %v5946_v33, %v4816_v34  ;;  %v4947_v63 = vor.u32 %v5978_v41, %v4944_v43  ;;  %v4928_v50 = vld [vmem:[#allocation2 + $0x7d8] sm:$0xf0]  ;;  %v4803_v33 = vor.u32 %v5942_v18, %v4800_v19  ;;  %v5924_v34 = vld [vmem:[#allocation2 + $0x644] sm:$0xf]  ;;  %v4856_v41 = vld [vmem:[#allocation2 + $0x748] sm:$0xf0] }
 0x16b   : > { %3558 = vmatpush.bf16.msrb.mxu3 %v4651_v58  ;;  %v5928_v58 = vld [vmem:[#allocation2 + $0x664] sm:$0xf]  ;;  %v4776_v19 = vld [vmem:[#allocation2 + $0x6a8] sm:$0xf0] }
 0x16c   : > { %3520 = vmatpush.bf16.msrb.mxu0 %v4451_v27  ;;  %v5976_v27 = vld [vmem:[#allocation2 + $0x7e4] sm:$0xf]  ;;  %v4747_v30 = vor.u32 %v5928_v58, %v4744_v62  ;;  %v4720_v58 = vld [vmem:[#allocation2 + $0x638] sm:$0xf0]  ;;  %v4859_v62 = vor.u32 %v5956_v40, %v4856_v41 }
 0x16d   : > { %3533 = vmatpush.bf16.msrb.mxu1 %v4515_v6  ;;  %v4936_v6 = vld [vmem:[#allocation2 + $0x7e8] sm:$0xf0]  ;;  %v5972_v43 = vld [vmem:[#allocation2 + $0x7c4] sm:$0xf] }
 0x16e   : > { %3546 = vmatpush.bf16.msrb.mxu2 %v4579_v55  ;;  %v4736_v55 = vld [vmem:[#allocation2 + $0x658] sm:$0xf0]  ;;  %v4939_v17 = vor.u32 %v5976_v27, %v4936_v6  ;;  %v5936_v18 = vld [vmem:[#allocation2 + $0x6a4] sm:$0xf] }
 0x16f   : > { %3559 = vmatpush.bf16.msrb.mxu3 %v4643_v14  ;;  %v4875_v14 = vor.u32 %v5960_v28, %v4872_v3  ;;  %v4739_v26 = vor.u32 %v5926_v9, %v4736_v55  ;;  %v4848_v28 = vld [vmem:[#allocation2 + $0x738] sm:$0xf0]  ;;  %v5970_v3 = vld [vmem:[#allocation2 + $0x7b4] sm:$0xf]  ;;  %v4712_v9 = vld [vmem:[#allocation2 + $0x628] sm:$0xf0] }
 0x170   : > { %3521 = vmatpush.bf16.msrb.mxu0 %v4443_v38  ;;  %v4931_v38 = vor.u32 %v5974_v23, %v4928_v50  ;;  %v4912_v27 = vld [vmem:[#allocation2 + $0x7b8] sm:$0xf0]  ;;  %v4851_v55 = vor.u32 %v5954_v59, %v4848_v28  ;;  %v4840_v50 = vld [vmem:[#allocation2 + $0x728] sm:$0xf0]  ;;  %v5932_v59 = vld [vmem:[#allocation2 + $0x684] sm:$0xf] }
 0x171   : > { %3534 = vmatpush.bf16.msrb.mxu1 %v4507_v39  ;;  %v4792_v39 = vld [vmem:[#allocation2 + $0x6c8] sm:$0xf0] }
 0x172   : > { %3547 = vmatpush.bf16.msrb.mxu2 %v4571_v46  ;;  %v4920_v46 = vld [vmem:[#allocation2 + $0x7c8] sm:$0xf0] }
 0x173   : > { %3560 = vmatpush.bf16.msrb.mxu3 %v4635_v48  ;;  %3522 = vmatmul.bf16.vlgmr.msrb.gmra.mxu0 %v302_v12  ;;  %v4867_v12 = vor.u32 %v5958_v22, %v4864_v32  ;;  %v5952_v22 = vld [vmem:[#allocation2 + $0x724] sm:$0xf]  ;;  %v3264_v32 = vadd.f32 %v6702_v24, %v6696_v54  ;;  %v5950_v54 = vld [vmem:[#allocation2 + $0x714] sm:$0xf]  ;;  %v4760_v28 = vld [vmem:[#allocation2 + $0x688] sm:$0xf0] }
 0x174   : > { %3566 = vmatpush.bf16.msra.mxu0 %v4755_v44  ;;  %3535 = vmatmul.bf16.vlgmr.msrb.gmra.mxu1 %v303_v29  ;;  %v6718_v29 = vpop.f32.mrf.mxu0  ;;  %v6720_v44 = vpop.f32.mrf.mxu1  ;;  %v4843_v40 = vor.u32 %v5952_v22, %v4840_v50  ;;  %v6026_v22 = vld [vmem:[#allocation2 + $0x974] sm:$0xf] }
 0x175   : > { %3579 = vmatpush.bf16.msra.mxu1 %v4819_v53  ;;  %3548 = vmatmul.bf16.vlgmr.msrb.gmra.mxu2 %v304_v13  ;;  %v5940_v13 = vld [vmem:[#allocation2 + $0x6c4] sm:$0xf]  ;;  %v5922_v53 = vld [vmem:[#allocation2 + $0x634] sm:$0xf]  ;;  %v3277_v24 = vadd.f32 %v6704_v2, %v3264_v32 }
 0x176   : > { %3592 = vmatpush.bf16.msra.mxu2 %v4883_v36  ;;  %3561 = vmatmul.bf16.vlgmr.msrb.gmra.mxu3 %v305_v31  ;;  %v4731_v31 = vor.u32 %v5924_v34, %v4728_v37  ;;  %v4795_v48 = vor.u32 %v5940_v13, %v4792_v39  ;;  %v4923_v36 = vor.u32 %v5972_v43, %v4920_v46  ;;  %v4704_v13 = vld [vmem:[#allocation2 + $0x618] sm:$0xf0]  ;;  %v5934_v43 = vld [vmem:[#allocation2 + $0x694] sm:$0xf]  ;;  %v5964_v2 = vld [vmem:[#allocation2 + $0x784] sm:$0xf] }
 0x177   : > { %3605 = vmatpush.bf16.msra.mxu3 %v4947_v63  ;;  %v5938_v63 = vld [vmem:[#allocation2 + $0x6b4] sm:$0xf]  ;;  %v4723_v6 = vor.u32 %v5922_v53, %v4720_v58  ;;  %v4768_v46 = vld [vmem:[#allocation2 + $0x698] sm:$0xf0]  ;;  %v5916_v58 = vld [vmem:[#allocation2 + $0x604] sm:$0xf] }
 0x178   : > { %3567 = vmatpush.bf16.msra.mxu0 %v4747_v30  ;;  %v4787_v30 = vor.u32 %v5938_v63, %v4784_v45  ;;  %v4896_v53 = vld [vmem:[#allocation2 + $0x798] sm:$0xf0]  ;;  %v4771_v63 = vor.u32 %v5934_v43, %v4768_v46  ;;  %v4696_v45 = vld [vmem:[#allocation2 + $0x608] sm:$0xf0] }
 0x179   : > { %3580 = vmatpush.bf16.msra.mxu1 %v4811_v8  ;;  %v5920_v8 = vld [vmem:[#allocation2 + $0x624] sm:$0xf]  ;;  %v6726_v23 = vpop.f32.mrf.mxu3  ;;  %v4699_v50 = vor.u32 %v5916_v58, %v4696_v45  ;;  %v5000_v43 = vld [vmem:[#allocation2 + $0x868] sm:$0xf0]  ;;  %v4992_v45 = vld [vmem:[#allocation2 + $0x858] sm:$0xf0] }
 0x17a   : > { %3593 = vmatpush.bf16.msra.mxu2 %v4875_v14  ;;  %v4915_v14 = vor.u32 %v5970_v3, %v4912_v27  ;;  %v4715_v37 = vor.u32 %v5920_v8, %v4712_v9  ;;  %v4888_v9 = vld [vmem:[#allocation2 + $0x788] sm:$0xf0] }
 0x17b   : > { %3606 = vmatpush.bf16.msra.mxu3 %v4939_v17  ;;  %v6722_v17 = vpop.f32.mrf.mxu2  ;;  %v5192_v58 = vld [vmem:[#allocation2 + $0x9e8] sm:$0xf0] }
 0x17c   : > { %3568 = vmatpush.bf16.msra.mxu0 %v4739_v26  ;;  %v5968_v26 = vld [vmem:[#allocation2 + $0x7a4] sm:$0xf]  ;;  %v3317_v34 = vpop.f32.mrf.mxu0  ;;  %v3330_v39 = vpop.f32.mrf.mxu1 }
 0x17d   : > { %3581 = vmatpush.bf16.msra.mxu1 %v4803_v33  ;;  %v4904_v33 = vld [vmem:[#allocation2 + $0x7a8] sm:$0xf0]  ;;  %v6042_v34 = vld [vmem:[#allocation2 + $0x9f4] sm:$0xf] }
 0x17e   : > { %3594 = vmatpush.bf16.msra.mxu2 %v4867_v12  ;;  %v4779_v12 = vor.u32 %v5936_v18, %v4776_v19  ;;  %v4907_v41 = vor.u32 %v5968_v26, %v4904_v33  ;;  %v5072_v19 = vld [vmem:[#allocation2 + $0x8f8] sm:$0xf0]  ;;  %v4763_v26 = vor.u32 %v5932_v59, %v4760_v28 }
 0x17f   : > { %3607 = vmatpush.bf16.msra.mxu3 %v4931_v38  ;;  %v5918_v38 = vld [vmem:[#allocation2 + $0x614] sm:$0xf]  ;;  %v5136_v33 = vld [vmem:[#allocation2 + $0x978] sm:$0xf0] }
 0x180   : > { %3569 = vmatpush.bf16.msra.mxu0 %v4731_v31  ;;  %v4832_v31 = vld [vmem:[#allocation2 + $0x718] sm:$0xf0]  ;;  %v5139_v46 = vor.u32 %v6026_v22, %v5136_v33 }
 0x181   : > { %3582 = vmatpush.bf16.msra.mxu1 %v4795_v48  ;;  %v5966_v48 = vld [vmem:[#allocation2 + $0x794] sm:$0xf]  ;;  %v4835_v3 = vor.u32 %v5950_v54, %v4832_v31  ;;  %v3356_v18 = vpop.f32.mrf.mxu3  ;;  %v6024_v31 = vld [vmem:[#allocation2 + $0x964] sm:$0xf] }
 0x182   : > { %3595 = vmatpush.bf16.msra.mxu2 %v4859_v62  ;;  %v3290_v62 = vadd.f32 %v6706_v25, %v3277_v24  ;;  %v4899_v27 = vor.u32 %v5966_v48, %v4896_v53  ;;  %v6010_v25 = vld [vmem:[#allocation2 + $0x8f4] sm:$0xf]  ;;  %v5064_v24 = vld [vmem:[#allocation2 + $0x8e8] sm:$0xf0]  ;;  %v6040_v53 = vld [vmem:[#allocation2 + $0x9e4] sm:$0xf] }
 0x183   : > { %3608 = vmatpush.bf16.msra.mxu3 %v4923_v36  ;;  %v4707_v36 = vor.u32 %v5918_v38, %v4704_v13  ;;  %v3343_v8 = vpop.f32.mrf.mxu2  ;;  %v4891_v38 = vor.u32 %v5964_v2, %v4888_v9  ;;  %v5128_v48 = vld [vmem:[#allocation2 + $0x968] sm:$0xf0]  ;;  %v5195_v28 = vor.u32 %v6040_v53, %v5192_v58  ;;  %v6038_v2 = vld [vmem:[#allocation2 + $0x9d4] sm:$0xf] }
 0x184   : > { %3570 = vmatpush.bf16.msra.mxu0 %v4723_v6  ;;  %v5948_v6 = vld [vmem:[#allocation2 + $0x704] sm:$0xf]  ;;  %v3303_v32 = vadd.f32 %v6708_v35, %v3290_v62  ;;  %v5131_v59 = vor.u32 %v6024_v31, %v5128_v48  ;;  %v5184_v8 = vld [vmem:[#allocation2 + $0x9d8] sm:$0xf0]  ;;  %v4984_v18 = vld [vmem:[#allocation2 + $0x848] sm:$0xf0] }
 0x185   : > { %3583 = vmatpush.bf16.msra.mxu1 %v4787_v30  ;;  %v4824_v30 = vld [vmem:[#allocation2 + $0x708] sm:$0xf0]  ;;  %v6008_v35 = vld [vmem:[#allocation2 + $0x8e4] sm:$0xf] }
 0x186   : > { %3596 = vmatpush.bf16.msra.mxu2 %v4851_v55  ;;  %v5994_v55 = vld [vmem:[#allocation2 + $0x874] sm:$0xf]  ;;  %v3316_v13 = vadd.f32 %v6718_v29, %v3303_v32  ;;  %v5112_v32 = vld [vmem:[#allocation2 + $0x948] sm:$0xf0]  ;;  %v5984_v48 = vld [vmem:[#allocation2 + $0x824] sm:$0xf] }
 0x187   : > { %3609 = vmatpush.bf16.msra.mxu3 %v4915_v14  ;;  %v5008_v14 = vld [vmem:[#allocation2 + $0x878] sm:$0xf0]  ;;  %v4968_v53 = vld [vmem:[#allocation2 + $0x828] sm:$0xf0] }
 0x188   : > { %3571 = vmatpush.bf16.msra.mxu0 %v4715_v37  ;;  %v5200_v37 = vld [vmem:[#allocation2 + $0x9f8] sm:$0xf0]  ;;  %v5011_v39 = vor.u32 %v5994_v55, %v5008_v14  ;;  %v3329_v62 = vadd.f32 %v6720_v44, %v3316_v13  ;;  %v5988_v14 = vld [vmem:[#allocation2 + $0x844] sm:$0xf] }
 0x189   : > { %3584 = vmatpush.bf16.msra.mxu1 %v4779_v12  ;;  %v4827_v12 = vor.u32 %v5948_v6, %v4824_v30  ;;  %v5203_v54 = vor.u32 %v6042_v34, %v5200_v37  ;;  %v6022_v6 = vld [vmem:[#allocation2 + $0x954] sm:$0xf]  ;;  %v5120_v44 = vld [vmem:[#allocation2 + $0x958] sm:$0xf0]  ;;  %v4987_v33 = vor.u32 %v5988_v14, %v4984_v18 }
 0x18a   : > { %3597 = vmatpush.bf16.msra.mxu2 %v4843_v40  ;;  %v5075_v40 = vor.u32 %v6010_v25, %v5072_v19  ;;  %v3342_v30 = vadd.f32 %v6722_v17, %v3329_v62  ;;  %v5123_v17 = vor.u32 %v6022_v6, %v5120_v44  ;;  %v5187_v25 = vor.u32 %v6038_v2, %v5184_v8  ;;  %v5048_v19 = vld [vmem:[#allocation2 + $0x8c8] sm:$0xf0]  ;;  %v5998_v14 = vld [vmem:[#allocation2 + $0x894] sm:$0xf] }
 0x18b   : > { %3610 = vmatpush.bf16.msra.mxu3 %v4907_v41  ;;  %v5992_v41 = vld [vmem:[#allocation2 + $0x864] sm:$0xf]  ;;  %v5160_v6 = vld [vmem:[#allocation2 + $0x9a8] sm:$0xf0]  ;;  %v4971_v2 = vor.u32 %v5984_v48, %v4968_v53 }
 0x18c   : > { %3572 = vmatpush.bf16.msra.mxu0 %v4707_v36  ;;  %v5003_v29 = vor.u32 %v5992_v41, %v5000_v43  ;;  %v5067_v36 = vor.u32 %v6008_v35, %v5064_v24  ;;  %v3355_v22 = vadd.f32 %v6726_v23, %v3342_v30  ;;  %v5040_v41 = vld [vmem:[#allocation2 + $0x8b8] sm:$0xf0]  ;;  %v6018_v43 = vld [vmem:[#allocation2 + $0x934] sm:$0xf] }
 0x18d   : > { %3585 = vmatpush.bf16.msra.mxu1 %v4771_v63  ;;  %v5990_v63 = vld [vmem:[#allocation2 + $0x854] sm:$0xf]  ;;  %v5104_v23 = vld [vmem:[#allocation2 + $0x938] sm:$0xf0] }
 0x18e   : > { %3598 = vmatpush.bf16.msra.mxu2 %v4835_v3  ;;  %v6006_v3 = vld [vmem:[#allocation2 + $0x8d4] sm:$0xf]  ;;  %v4995_v9 = vor.u32 %v5990_v63, %v4992_v45  ;;  %v5107_v58 = vor.u32 %v6018_v43, %v5104_v23  ;;  %v5032_v63 = vld [vmem:[#allocation2 + $0x8a8] sm:$0xf0]  ;;  %v6016_v45 = vld [vmem:[#allocation2 + $0x924] sm:$0xf] }
 0x18f   : > { %3611 = vmatpush.bf16.msra.mxu3 %v4899_v27  ;;  %v5056_v27 = vld [vmem:[#allocation2 + $0x8d8] sm:$0xf0]  ;;  %v5144_v43 = vld [vmem:[#allocation2 + $0x988] sm:$0xf0]  ;;  %v6058_v23 = vld [vmem:[#allocation2 + $0xa74] sm:$0xf] }
 0x190   : > { %3573 = vmatpush.bf16.msra.mxu0 %v4699_v50  ;;  %v5059_v55 = vor.u32 %v6006_v3, %v5056_v27  ;;  %v6036_v50 = vld [vmem:[#allocation2 + $0x9c4] sm:$0xf]  ;;  %v5096_v3 = vld [vmem:[#allocation2 + $0x928] sm:$0xf0] }
 0x191   : > { %3586 = vmatpush.bf16.msra.mxu1 %v4763_v26  ;;  %v3367_v26 = vpop.f32.mrf.mxu0  ;;  %v3380_v37 = vpop.f32.mrf.mxu1  ;;  %v6032_v27 = vld [vmem:[#allocation2 + $0x9a4] sm:$0xf] }
 0x192   : > { %3599 = vmatpush.bf16.msra.mxu2 %v4827_v12  ;;  %v5986_v12 = vld [vmem:[#allocation2 + $0x834] sm:$0xf] }
 0x193   : > { %3612 = vmatpush.bf16.msra.mxu3 %v4891_v38  ;;  %3574 = vmatmul.bf16.vlgmr.msra.gmra.mxu0 %v6630_v51  ;;  %v6004_v51 = vld [vmem:[#allocation2 + $0x8c4] sm:$0xf]  ;;  %v4976_v38 = vld [vmem:[#allocation2 + $0x838] sm:$0xf0] }
 0x194   : > { %3618 = vmatpush.bf16.msrb.mxu0 %v5011_v39  ;;  %3587 = vmatmul.bf16.vlgmr.msra.gmra.mxu1 %v6634_v56  ;;  %v5176_v56 = vld [vmem:[#allocation2 + $0x9c8] sm:$0xf0]  ;;  %v5051_v34 = vor.u32 %v6004_v51, %v5048_v19  ;;  %v4979_v24 = vor.u32 %v5986_v12, %v4976_v38  ;;  %v5024_v51 = vld [vmem:[#allocation2 + $0x898] sm:$0xf0]  ;;  %v6014_v19 = vld [vmem:[#allocation2 + $0x914] sm:$0xf] }
 0x195   : > { %3631 = vmatpush.bf16.msrb.mxu1 %v5075_v40  ;;  %3600 = vmatmul.bf16.vlgmr.msra.gmra.mxu2 %v6632_v52  ;;  %v6020_v52 = vld [vmem:[#allocation2 + $0x944] sm:$0xf]  ;;  %v5179_v39 = vor.u32 %v6036_v50, %v5176_v56  ;;  %v6002_v40 = vld [vmem:[#allocation2 + $0x8b4] sm:$0xf]  ;;  %v5152_v50 = vld [vmem:[#allocation2 + $0x998] sm:$0xf0] }
 0x196   : > { %3644 = vmatpush.bf16.msrb.mxu2 %v5139_v46  ;;  %3613 = vmatmul.bf16.vlgmr.msra.gmra.mxu3 %v6636_v57  ;;  %v3368_v57 = vadd.f32 %v3367_v26, %v3355_v22  ;;  %v5115_v13 = vor.u32 %v6020_v52, %v5112_v32  ;;  %v6034_v46 = vld [vmem:[#allocation2 + $0x9b4] sm:$0xf]  ;;  %v5043_v31 = vor.u32 %v6002_v40, %v5040_v41  ;;  %v5088_v52 = vld [vmem:[#allocation2 + $0x918] sm:$0xf0]  ;;  %v5980_v56 = vld [vmem:[#allocation2 + $0x804] sm:$0xf] }
 0x197   : > { %3657 = vmatpush.bf16.msrb.mxu3 %v5203_v54  ;;  %v5168_v54 = vld [vmem:[#allocation2 + $0x9b8] sm:$0xf0]  ;;  %v6030_v32 = vld [vmem:[#allocation2 + $0x994] sm:$0xf]  ;;  %v5091_v12 = vor.u32 %v6014_v19, %v5088_v52  ;;  %v6028_v40 = vld [vmem:[#allocation2 + $0x984] sm:$0xf] }
 0x198   : > { %3619 = vmatpush.bf16.msrb.mxu0 %v5003_v29  ;;  %v3381_v35 = vadd.f32 %v3380_v37, %v3368_v57  ;;  %v5171_v62 = vor.u32 %v6034_v46, %v5168_v54  ;;  %v3393_v29 = vpop.f32.mrf.mxu2  ;;  %v5027_v57 = vor.u32 %v5998_v14, %v5024_v51  ;;  %v5016_v37 = vld [vmem:[#allocation2 + $0x888] sm:$0xf0]  ;;  %v5155_v38 = vor.u32 %v6030_v32, %v5152_v50  ;;  %v5264_v46 = vld [vmem:[#allocation2 + $0xa78] sm:$0xf0]  ;;  %v6104_v14 = vld [vmem:[#allocation2 + $0xbe4] sm:$0xf] }
 0x199   : > { %3632 = vmatpush.bf16.msrb.mxu1 %v5067_v36  ;;  %v6000_v36 = vld [vmem:[#allocation2 + $0x8a4] sm:$0xf]  ;;  %v3369_v30 = vpop.f32.mrf.mxu0  ;;  %v3382_v18 = vpop.f32.mrf.mxu1  ;;  %v6054_v51 = vld [vmem:[#allocation2 + $0xa54] sm:$0xf]  ;;  %v5248_v19 = vld [vmem:[#allocation2 + $0xa58] sm:$0xf0] }
 0x19a   : > { %3645 = vmatpush.bf16.msrb.mxu2 %v5131_v59  ;;  %v3394_v59 = vadd.f32 %v3393_v29, %v3381_v35  ;;  %v5035_v8 = vor.u32 %v6000_v36, %v5032_v63  ;;  %v6074_v35 = vld [vmem:[#allocation2 + $0xaf4] sm:$0xf]  ;;  %v5456_v29 = vld [vmem:[#allocation2 + $0xbf8] sm:$0xf0]  ;;  %v5147_v63 = vor.u32 %v6028_v40, %v5144_v43  ;;  %v5448_v18 = vld [vmem:[#allocation2 + $0xbe8] sm:$0xf0] }
 0x19b   : > { %3658 = vmatpush.bf16.msrb.mxu3 %v5195_v28  ;;  %v3406_v28 = vpop.f32.mrf.mxu3  ;;  %v6070_v32 = vld [vmem:[#allocation2 + $0xad4] sm:$0xf]  ;;  %v5312_v50 = vld [vmem:[#allocation2 + $0xad8] sm:$0xf0]  ;;  %v5304_v40 = vld [vmem:[#allocation2 + $0xac8] sm:$0xf0] }
 0x19c   : > { %3620 = vmatpush.bf16.msrb.mxu0 %v4995_v9  ;;  %v3407_v44 = vadd.f32 %v3406_v28, %v3394_v59  ;;  %v5982_v9 = vld [vmem:[#allocation2 + $0x814] sm:$0xf]  ;;  %v5267_v59 = vor.u32 %v6058_v23, %v5264_v46  ;;  %v5368_v43 = vld [vmem:[#allocation2 + $0xb48] sm:$0xf0] }
 0x19d   : > { %3633 = vmatpush.bf16.msrb.mxu1 %v5059_v55  ;;  %v4960_v55 = vld [vmem:[#allocation2 + $0x818] sm:$0xf0]  ;;  %v5432_v23 = vld [vmem:[#allocation2 + $0xbc8] sm:$0xf0]  ;;  %v6050_v46 = vld [vmem:[#allocation2 + $0xa34] sm:$0xf] }
 0x19e   : > { %3646 = vmatpush.bf16.msrb.mxu2 %v5123_v17  ;;  %v5099_v17 = vor.u32 %v6016_v45, %v5096_v3  ;;  %v5716_v22 = vmul.f32 -1.442695, %v3407_v44  ;;  %v4963_v26 = vor.u32 %v5982_v9, %v4960_v55  ;;  %v6056_v3 = vld [vmem:[#allocation2 + $0xa64] sm:$0xf]  ;;  %v5384_v55 = vld [vmem:[#allocation2 + $0xb68] sm:$0xf0] }
 0x19f   : > { %3659 = vmatpush.bf16.msrb.mxu3 %v5187_v25  ;;  %v5163_v25 = vor.u32 %v6032_v27, %v5160_v6  ;;  %v5256_v27 = vld [vmem:[#allocation2 + $0xa68] sm:$0xf0]  ;;  %v6072_v6 = vld [vmem:[#allocation2 + $0xae4] sm:$0xf] }
 0x1a0   : > { %3621 = vmatpush.bf16.msrb.mxu0 %v4987_v33  ;;  %6234 = vpow2.f32 %v5716_v22  ;;  %v4952_v33 = vld [vmem:[#allocation2 + $0x808] sm:$0xf0]  ;;  %v3395_v41 = vpop.f32.mrf.mxu2  ;;  %v6088_v9 = vld [vmem:[#allocation2 + $0xb64] sm:$0xf]  ;;  %v5451_v22 = vor.u32 %v6104_v14, %v5448_v18 }
 0x1a1   : > { %3634 = vmatpush.bf16.msrb.mxu1 %v5051_v34  ;;  %v5996_v34 = vld [vmem:[#allocation2 + $0x884] sm:$0xf]  ;;  %v4955_v48 = vor.u32 %v5980_v56, %v4952_v33  ;;  %v5387_v52 = vor.u32 %v6088_v9, %v5384_v55  ;;  %v6086_v56 = vld [vmem:[#allocation2 + $0xb54] sm:$0xf]  ;;  %v5440_v33 = vld [vmem:[#allocation2 + $0xbd8] sm:$0xf0] }
 0x1a2   : > { %3647 = vmatpush.bf16.msrb.mxu2 %v5115_v13  ;;  %v6012_v13 = vld [vmem:[#allocation2 + $0x904] sm:$0xf]  ;;  %v5019_v53 = vor.u32 %v5996_v34, %v5016_v37  ;;  %v5251_v34 = vor.u32 %v6054_v51, %v5248_v19  ;;  %v5315_v37 = vor.u32 %v6070_v32, %v5312_v50  ;;  %v5224_v55 = vld [vmem:[#allocation2 + $0xa28] sm:$0xf0] }
 0x1a3   : > { %3660 = vmatpush.bf16.msrb.mxu3 %v5179_v39  ;;  %v5080_v39 = vld [vmem:[#allocation2 + $0x908] sm:$0xf0]  ;;  %v3408_v54 = vpop.f32.mrf.mxu3  ;;  %v6084_v41 = vld [vmem:[#allocation2 + $0xb44] sm:$0xf] }
 0x1a4   : > { %3622 = vmatpush.bf16.msrb.mxu0 %v4979_v24  ;;  %v5328_v24 = vld [vmem:[#allocation2 + $0xaf8] sm:$0xf0]  ;;  %v5083_v36 = vor.u32 %v6012_v13, %v5080_v39  ;;  %v6068_v39 = vld [vmem:[#allocation2 + $0xac4] sm:$0xf]  ;;  %v5288_v18 = vld [vmem:[#allocation2 + $0xaa8] sm:$0xf0] }
 0x1a5   : > { %3635 = vmatpush.bf16.msrb.mxu1 %v5043_v31  ;;  %v6090_v31 = vld [vmem:[#allocation2 + $0xb74] sm:$0xf]  ;;  %v5331_v28 = vor.u32 %v6074_v35, %v5328_v24  ;;  %v5232_v54 = vld [vmem:[#allocation2 + $0xa38] sm:$0xf0]  ;;  %v6064_v14 = vld [vmem:[#allocation2 + $0xaa4] sm:$0xf] }
 0x1a6   : > { %3648 = vmatpush.bf16.msrb.mxu2 %v5107_v58  ;;  %v5392_v58 = vld [vmem:[#allocation2 + $0xb78] sm:$0xf0]  ;;  %v6235_v45 = vpop.eup %6234  ;;  %v6080_v19 = vld [vmem:[#allocation2 + $0xb24] sm:$0xf] }
 0x1a7   : > { %3661 = vmatpush.bf16.msrb.mxu3 %v5171_v62  ;;  %v6106_v62 = vld [vmem:[#allocation2 + $0xbf4] sm:$0xf]  ;;  %v6739_v30 = vadd.f32 1.0, %v6235_v45  ;;  %v5395_v44 = vor.u32 %v6090_v31, %v5392_v58  ;;  %v5296_v58 = vld [vmem:[#allocation2 + $0xab8] sm:$0xf0] }
 0x1a8   : > { %3623 = vmatpush.bf16.msrb.mxu0 %v4971_v2  ;;  %v5459_v2 = vor.u32 %v6106_v62, %v5456_v29  ;;  %v5371_v29 = vor.u32 %v6084_v41, %v5368_v43  ;;  %v5360_v45 = vld [vmem:[#allocation2 + $0xb38] sm:$0xf0]  ;;  %v6096_v50 = vld [vmem:[#allocation2 + $0xba4] sm:$0xf]  ;;  %v6062_v41 = vld [vmem:[#allocation2 + $0xa94] sm:$0xf] }
 0x1a9   : > { %3636 = vmatpush.bf16.msrb.mxu1 %v5035_v8  ;;  %v5320_v8 = vld [vmem:[#allocation2 + $0xae8] sm:$0xf0]  ;;  %6236 = vrcp.f32 %v6739_v30  ;;  %vm3787_vm7 = vweird.f32 %v6739_v30  ;;  %v6078_v43 = vld [vmem:[#allocation2 + $0xb14] sm:$0xf] }
 0x1aa   : > { %3649 = vmatpush.bf16.msrb.mxu2 %v5099_v17  ;;  %v5259_v17 = vor.u32 %v6056_v3, %v5256_v27  ;;  %v6098_v27 = vld [vmem:[#allocation2 + $0xbb4] sm:$0xf] }
 0x1ab   : > { %3662 = vmatpush.bf16.msrb.mxu3 %v5163_v25  ;;  %v5323_v25 = vor.u32 %v6072_v6, %v5320_v8  ;;  %v5424_v6 = vld [vmem:[#allocation2 + $0xbb8] sm:$0xf0]  ;;  %v5235_v8 = vor.u32 %v6050_v46, %v5232_v54  ;;  %v6044_v54 = vld [vmem:[#allocation2 + $0xa04] sm:$0xf] }
 0x1ac   : > { %3624 = vmatpush.bf16.msrb.mxu0 %v4963_v26  ;;  %v5376_v26 = vld [vmem:[#allocation2 + $0xb58] sm:$0xf0]  ;;  %v5427_v51 = vor.u32 %v6098_v27, %v5424_v6  ;;  %v6138_v6 = vld [vmem:[#allocation2 + $0xcf4] sm:$0xf] }
 0x1ad   : > { %3637 = vmatpush.bf16.msrb.mxu1 %v5027_v57  ;;  %v6102_v57 = vld [vmem:[#allocation2 + $0xbd4] sm:$0xf]  ;;  %v5408_v46 = vld [vmem:[#allocation2 + $0xb98] sm:$0xf0] }
 0x1ae   : > { %3650 = vmatpush.bf16.msrb.mxu2 %v5091_v12  ;;  %v6052_v12 = vld [vmem:[#allocation2 + $0xa44] sm:$0xf] }
 0x1af   : > { %3663 = vmatpush.bf16.msrb.mxu3 %v5155_v38  ;;  %v5240_v38 = vld [vmem:[#allocation2 + $0xa48] sm:$0xf0]  ;;  %v6750_v13 = vpop.eup %6236 }
 0x1b0   : > { %3625 = vmatpush.bf16.msrb.mxu0 %v4955_v48  ;;  %v3419_v35 = vpop.f32.mrf.mxu0  ;;  %v5243_v31 = vor.u32 %v6052_v12, %v5240_v38  ;;  %v5307_v48 = vor.u32 %v6068_v39, %v5304_v40  ;;  %vm3788_vm6 = vweird.f32 %v6750_v13  ;;  %v5291_v38 = vor.u32 %v6064_v14, %v5288_v18  ;;  %v6170_v14 = vld [vmem:[#allocation2 + $0xdf4] sm:$0xf]  ;;  %v5712_v18 = vld [vmem:[#allocation2 + $0xdf8] sm:$0xf0] }
 0x1b1   : > { %3638 = vmatpush.bf16.msrb.mxu1 %v5019_v53  ;;  %v6066_v53 = vld [vmem:[#allocation2 + $0xab4] sm:$0xf]  ;;  %v3432_v62 = vpop.f32.mrf.mxu1  ;;  %vm3789_vm8 = vmor %vm3787_vm7, %vm3788_vm6 }
 0x1b2   : > { %3651 = vmatpush.bf16.msrb.mxu2 %v5083_v36  ;;  %v5299_v9 = vor.u32 %v6066_v53, %v5296_v58  ;;  %v5272_v53 = vld [vmem:[#allocation2 + $0xa88] sm:$0xf0] }
 0x1b3   : > { %3664 = vmatpush.bf16.msrb.mxu3 %v5147_v63  ;;  %3626 = vmatmul.bf16.vlgmr.msrb.gmra.mxu0 %v326_v4  ;;  %v5379_v4 = vor.u32 %v6086_v56, %v5376_v26  ;;  %v6082_v63 = vld [vmem:[#allocation2 + $0xb34] sm:$0xf]  ;;  %v5416_v56 = vld [vmem:[#allocation2 + $0xba8] sm:$0xf0] }
 0x1b4   : > { %3670 = vmatpush.bf16.msra.mxu0 %v5267_v59  ;;  %3639 = vmatmul.bf16.vlgmr.msrb.gmra.mxu1 %v327_v20  ;;  %v3783_v20 = vmul.f32 %v6750_v13, %v6739_v30  ;;  %v3433_v59 = vadd.f32 %v3432_v62, %v3419_v35  ;;  %v5419_v40 = vor.u32 %v6096_v50, %v5416_v56  ;;  %v6136_v56 = vld [vmem:[#allocation2 + $0xce4] sm:$0xf] }
 0x1b5   : > { %3683 = vmatpush.bf16.msra.mxu1 %v5331_v28  ;;  %3652 = vmatmul.bf16.vlgmr.msrb.gmra.mxu2 %v328_v5  ;;  %v5443_v5 = vor.u32 %v6102_v57, %v5440_v33  ;;  %v3793_v28 = vand.u32 2147483648, %v6739_v30  ;;  %v5715_v50 = vor.u32 %v6170_v14, %v5712_v18 }
 0x1b6   : > { %3696 = vmatpush.bf16.msra.mxu2 %v5395_v44  ;;  %3665 = vmatmul.bf16.vlgmr.msrb.gmra.mxu3 %v329_v21  ;;  %v6100_v21 = vld [vmem:[#allocation2 + $0xbc4] sm:$0xf]  ;;  %v3784_v24 = vsub.f32 1.0, %v3783_v20  ;;  %v3791_v44 = vand.u32 2147483647, %v6739_v30 }
 0x1b7   : > { %3709 = vmatpush.bf16.msra.mxu3 %v5459_v2  ;;  %v5435_v36 = vor.u32 %v6100_v21, %v5432_v23  ;;  %v6048_v2 = vld [vmem:[#allocation2 + $0xa24] sm:$0xf]  ;;  %v3794_v32 = vor.u32 1.1754944e-38, %v3793_v28  ;;  %v5280_v20 = vld [vmem:[#allocation2 + $0xa98] sm:$0xf0] }
 0x1b8   : > { %3671 = vmatpush.bf16.msra.mxu0 %v5259_v17  ;;  %v3785_v3 = vmul.f32 %v6750_v13, %v3784_v24  ;;  %vm3792_vm9 = vcmp.eq.f32.partialorder %v3791_v44, 8.507059e+37  ;;  %v5227_v12 = vor.u32 %v6048_v2, %v5224_v55  ;;  %v5344_v21 = vld [vmem:[#allocation2 + $0xb18] sm:$0xf0]  ;;  %v6094_v23 = vld [vmem:[#allocation2 + $0xb94] sm:$0xf]  ;;  %v5283_v24 = vor.u32 %v6062_v41, %v5280_v20 }
 0x1b9   : > { %3684 = vmatpush.bf16.msra.mxu1 %v5323_v25  ;;  %v5363_v25 = vor.u32 %v6082_v63, %v5360_v45  ;;  %v3458_v57 = vpop.f32.mrf.mxu3  ;;  %v3434_v30 = vpop.f32.mrf.mxu1  ;;  %v5347_v58 = vor.u32 %v6078_v43, %v5344_v21  ;;  %v5411_v62 = vor.u32 %v6094_v23, %v5408_v46  ;;  %v6092_v63 = vld [vmem:[#allocation2 + $0xb84] sm:$0xf]  ;;  %v6122_v28 = vld [vmem:[#allocation2 + $0xc74] sm:$0xf]  ;;  %v5584_v44 = vld [vmem:[#allocation2 + $0xcf8] sm:$0xf0] }
 0x1ba   : > { %3697 = vmatpush.bf16.msra.mxu2 %v5387_v52  ;;  %v3786_v17 = vadd.f32 %v6750_v13, %v3785_v3  ;;  %v5352_v52 = vld [vmem:[#allocation2 + $0xb28] sm:$0xf0]  ;;  %v5520_v3 = vld [vmem:[#allocation2 + $0xc78] sm:$0xf0]  ;;  %v6154_v2 = vld [vmem:[#allocation2 + $0xd74] sm:$0xf] }
 0x1bb   : > { %3710 = vmatpush.bf16.msra.mxu3 %v5451_v22  ;;  %v3445_v22 = vpop.f32.mrf.mxu2  ;;  %v5648_v55 = vld [vmem:[#allocation2 + $0xd78] sm:$0xf0]  ;;  %v6150_v20 = vld [vmem:[#allocation2 + $0xd54] sm:$0xf] }
 0x1bc   : > { %3672 = vmatpush.bf16.msra.mxu0 %v5251_v34  ;;  %v3446_v26 = vadd.f32 %v3445_v22, %v3433_v59  ;;  %v3790_v33 = vsel %vm3789_vm8, %v6750_v13, %v3786_v17  ;;  %v3421_v34 = vpop.f32.mrf.mxu0  ;;  %v5355_v13 = vor.u32 %v6080_v19, %v5352_v52  ;;  %v5400_v59 = vld [vmem:[#allocation2 + $0xb88] sm:$0xf0]  ;;  %v5587_v19 = vor.u32 %v6138_v6, %v5584_v44  ;;  %v6120_v52 = vld [vmem:[#allocation2 + $0xc64] sm:$0xf]  ;;  %v5568_v41 = vld [vmem:[#allocation2 + $0xcd8] sm:$0xf0] }
 0x1bd   : > { %3685 = vmatpush.bf16.msra.mxu1 %v5315_v37  ;;  %v3795_v37 = vsel %vm3792_vm9, %v3794_v32, %v3790_v33  ;;  %v5512_v22 = vld [vmem:[#allocation2 + $0xc68] sm:$0xf0]  ;;  %v5651_v32 = vor.u32 %v6154_v2, %v5648_v55  ;;  %v6168_v34 = vld [vmem:[#allocation2 + $0xde4] sm:$0xf]  ;;  %v5632_v43 = vld [vmem:[#allocation2 + $0xd58] sm:$0xf0] }
 0x1be   : > { %3698 = vmatpush.bf16.msra.mxu2 %v5379_v4  ;;  %v6046_v4 = vld [vmem:[#allocation2 + $0xa14] sm:$0xf]  ;;  %v6766_v39 = vadd.f32 %v3458_v57, %v3446_v26  ;;  %3812 = vst [vmem:[%s6770_s20] sm:$0xff] %v3795_v37  ;;  %v5576_v26 = vld [vmem:[#allocation2 + $0xce8] sm:$0xf0]  ;;  %v6152_v57 = vld [vmem:[#allocation2 + $0xd64] sm:$0xf] }
 0x1bf   : > { %3711 = vmatpush.bf16.msra.mxu3 %v5443_v5  ;;  %v5216_v5 = vld [vmem:[#allocation2 + $0xa18] sm:$0xf0]  ;;  %v5640_v33 = vld [vmem:[#allocation2 + $0xd68] sm:$0xf0]  ;;  %v6166_v21 = vld [vmem:[#allocation2 + $0xdd4] sm:$0xf] }
 0x1c0   : > { %3673 = vmatpush.bf16.msra.mxu0 %v5243_v31  ;;  %v5219_v35 = vor.u32 %v6046_v4, %v5216_v5  ;;  %v5208_v31 = vld [vmem:[#allocation2 + $0xa08] sm:$0xf0]  ;;  %v6118_v4 = vld [vmem:[#allocation2 + $0xc54] sm:$0xf]  ;;  %v5504_v5 = vld [vmem:[#allocation2 + $0xc58] sm:$0xf0]  ;;  %v5643_v30 = vor.u32 %v6152_v57, %v5640_v33 }
 0x1c1   : > { %3686 = vmatpush.bf16.msra.mxu1 %v5307_v48  ;;  %v6060_v48 = vld [vmem:[#allocation2 + $0xa84] sm:$0xf]  ;;  %v3460_v27 = vpop.f32.mrf.mxu3  ;;  %v5704_v37 = vld [vmem:[#allocation2 + $0xde8] sm:$0xf0]  ;;  %v5696_v23 = vld [vmem:[#allocation2 + $0xdd8] sm:$0xf0]  ;;  %v5507_v46 = vor.u32 %v6118_v4, %v5504_v5 }
 0x1c2   : > { %3699 = vmatpush.bf16.msra.mxu2 %v5371_v29  ;;  %v6076_v29 = vld [vmem:[#allocation2 + $0xb04] sm:$0xf]  ;;  %v6130_v6 = vld [vmem:[#allocation2 + $0xcb4] sm:$0xf]  ;;  %v5552_v44 = vld [vmem:[#allocation2 + $0xcb8] sm:$0xf0] }
 0x1c3   : > { %3712 = vmatpush.bf16.msra.mxu3 %v5435_v36  ;;  %v5336_v36 = vld [vmem:[#allocation2 + $0xb08] sm:$0xf0]  ;;  %v3447_v45 = vpop.f32.mrf.mxu2  ;;  %v6146_v2 = vld [vmem:[#allocation2 + $0xd34] sm:$0xf]  ;;  %v5680_v55 = vld [vmem:[#allocation2 + $0xdb8] sm:$0xf0] }
 0x1c4   : > { %3674 = vmatpush.bf16.msra.mxu0 %v5235_v8  ;;  %v5211_v8 = vor.u32 %v6044_v54, %v5208_v31  ;;  %v5339_v17 = vor.u32 %v6076_v29, %v5336_v36  ;;  %v5635_v31 = vor.u32 %v6150_v20, %v5632_v43  ;;  %v5688_v29 = vld [vmem:[#allocation2 + $0xdc8] sm:$0xf0]  ;;  %v5488_v45 = vld [vmem:[#allocation2 + $0xc38] sm:$0xf0]  ;;  %v6110_v5 = vld [vmem:[#allocation2 + $0xc14] sm:$0xf] }
 0x1c5   : > { %3687 = vmatpush.bf16.msra.mxu1 %v5299_v9  ;;  %v5275_v9 = vor.u32 %v6060_v48, %v5272_v53  ;;  %v5699_v48 = vor.u32 %v6166_v21, %v5696_v23  ;;  %v5560_v53 = vld [vmem:[#allocation2 + $0xcc8] sm:$0xf0]  ;;  %v6126_v20 = vld [vmem:[#allocation2 + $0xc94] sm:$0xf]  ;;  %v5536_v43 = vld [vmem:[#allocation2 + $0xc98] sm:$0xf0] }
 0x1c6   : > { %3700 = vmatpush.bf16.msra.mxu2 %v5363_v25  ;;  %v5403_v25 = vor.u32 %v6092_v63, %v5400_v59  ;;  %v6114_v63 = vld [vmem:[#allocation2 + $0xc34] sm:$0xf]  ;;  %v5672_v57 = vld [vmem:[#allocation2 + $0xda8] sm:$0xf0]  ;;  %v5600_v23 = vld [vmem:[#allocation2 + $0xd18] sm:$0xf0] }
 0x1c7   : > { %3713 = vmatpush.bf16.msra.mxu3 %v5427_v51  ;;  %v5523_v51 = vor.u32 %v6122_v28, %v5520_v3  ;;  %v5491_v18 = vor.u32 %v6114_v63, %v5488_v45  ;;  %v6142_v21 = vld [vmem:[#allocation2 + $0xd14] sm:$0xf] }
 0x1c8   : > { %3675 = vmatpush.bf16.msra.mxu0 %v5227_v12  ;;  %v5515_v12 = vor.u32 %v6120_v52, %v5512_v22  ;;  %v6128_v52 = vld [vmem:[#allocation2 + $0xca4] sm:$0xf]  ;;  %v5544_v22 = vld [vmem:[#allocation2 + $0xca8] sm:$0xf0] }
 0x1c9   : > { %3688 = vmatpush.bf16.msra.mxu1 %v5291_v38  ;;  %v5579_v38 = vor.u32 %v6136_v56, %v5576_v26  ;;  %v5608_v56 = vld [vmem:[#allocation2 + $0xd28] sm:$0xf0]  ;;  %v6160_v26 = vld [vmem:[#allocation2 + $0xda4] sm:$0xf] }
 0x1ca   : > { %3701 = vmatpush.bf16.msra.mxu2 %v5355_v13  ;;  %v5707_v13 = vor.u32 %v6168_v34, %v5704_v37 }
 0x1cb   : > { %3714 = vmatpush.bf16.msra.mxu3 %v5419_v40  ;;  %v6134_v40 = vld [vmem:[#allocation2 + $0xcd4] sm:$0xf] }
 0x1cc   : > { %3676 = vmatpush.bf16.msra.mxu0 %v5219_v35  ;;  %v5571_v54 = vor.u32 %v6134_v40, %v5568_v41  ;;  %v6116_v35 = vld [vmem:[#allocation2 + $0xc44] sm:$0xf]  ;;  %v5675_v41 = vor.u32 %v6160_v26, %v5672_v57 }
 0x1cd   : > { %3689 = vmatpush.bf16.msra.mxu1 %v5283_v24  ;;  %v5496_v24 = vld [vmem:[#allocation2 + $0xc48] sm:$0xf0] }
 0x1ce   : > { %3702 = vmatpush.bf16.msra.mxu2 %v5347_v58  ;;  %v5624_v58 = vld [vmem:[#allocation2 + $0xd48] sm:$0xf0] }
 0x1cf   : > { %3715 = vmatpush.bf16.msra.mxu3 %v5411_v62  ;;  %v6164_v62 = vld [vmem:[#allocation2 + $0xdc4] sm:$0xf] }
 0x1d0   : > { %3677 = vmatpush.bf16.msra.mxu0 %v5211_v8  ;;  %v3471_v36 = vpop.f32.mrf.mxu0  ;;  %v5691_v27 = vor.u32 %v6164_v62, %v5688_v29  ;;  %v5616_v8 = vld [vmem:[#allocation2 + $0xd38] sm:$0xf0]  ;;  %v6140_v62 = vld [vmem:[#allocation2 + $0xd04] sm:$0xf] }
 0x1d1   : > { %3690 = vmatpush.bf16.msra.mxu1 %v5275_v9  ;;  %v3472_v59 = vadd.f32 %v3471_v36, %v6766_v39  ;;  %v3484_v28 = vpop.f32.mrf.mxu1  ;;  %v6162_v9 = vld [vmem:[#allocation2 + $0xdb4] sm:$0xf]  ;;  %v5619_v39 = vor.u32 %v6146_v2, %v5616_v8  ;;  %v5592_v36 = vld [vmem:[#allocation2 + $0xd08] sm:$0xf0] }
 0x1d2   : > { %3703 = vmatpush.bf16.msra.mxu2 %v5339_v17  ;;  %v5555_v17 = vor.u32 %v6130_v6, %v5552_v44 }
 0x1d3   : > { %3716 = vmatpush.bf16.msra.mxu3 %v5403_v25  ;;  %3678 = vmatmul.bf16.vlgmr.msra.gmra.mxu0 %v6662_v15  ;;  %v6132_v15 = vld [vmem:[#allocation2 + $0xcc4] sm:$0xf]  ;;  %v3485_v14 = vadd.f32 %v3484_v28, %v3472_v59  ;;  %v5595_v28 = vor.u32 %v6140_v62, %v5592_v36 }
 0x1d4   : > { %3722 = vmatpush.bf16.msrb.mxu0 %v5523_v51  ;;  %3691 = vmatmul.bf16.vlgmr.msra.gmra.mxu1 %v6666_v16  ;;  %v5499_v16 = vor.u32 %v6116_v35, %v5496_v24  ;;  %v6112_v25 = vld [vmem:[#allocation2 + $0xc24] sm:$0xf]  ;;  %v5480_v51 = vld [vmem:[#allocation2 + $0xc28] sm:$0xf0]  ;;  %v5539_v24 = vor.u32 %v6126_v20, %v5536_v43 }
 0x1d5   : > { %3735 = vmatpush.bf16.msrb.mxu1 %v5587_v19  ;;  %3704 = vmatmul.bf16.vlgmr.msra.gmra.mxu2 %v6664_v42  ;;  %v6148_v42 = vld [vmem:[#allocation2 + $0xd44] sm:$0xf]  ;;  %v5683_v19 = vor.u32 %v6162_v9, %v5680_v55 }
 0x1d6   : > { %3748 = vmatpush.bf16.msrb.mxu2 %v5651_v32  ;;  %3717 = vmatmul.bf16.vlgmr.msra.gmra.mxu3 %v6668_v7  ;;  %v5563_v7 = vor.u32 %v6132_v15, %v5560_v53  ;;  %v5627_v3 = vor.u32 %v6148_v42, %v5624_v58  ;;  %v6144_v32 = vld [vmem:[#allocation2 + $0xd24] sm:$0xf]  ;;  %v5603_v15 = vor.u32 %v6142_v21, %v5600_v23  ;;  %v5528_v58 = vld [vmem:[#allocation2 + $0xc88] sm:$0xf0] }
 0x1d7   : > { %3761 = vmatpush.bf16.msrb.mxu3 %v5715_v50  ;;  %v5611_v40 = vor.u32 %v6144_v32, %v5608_v56  ;;  %v6124_v42 = vld [vmem:[#allocation2 + $0xc84] sm:$0xf] }
 0x1d8   : > { %3723 = vmatpush.bf16.msrb.mxu0 %v5515_v12  ;;  %v3497_v50 = vpop.f32.mrf.mxu2  ;;  %v3473_v37 = vpop.f32.mrf.mxu0  ;;  %v5483_v12 = vor.u32 %v6112_v25, %v5480_v51  ;;  %v5531_v59 = vor.u32 %v6124_v42, %v5528_v58 }
 0x1d9   : > { %3736 = vmatpush.bf16.msrb.mxu1 %v5579_v38  ;;  %v3498_v33 = vadd.f32 %v3497_v50, %v3485_v14  ;;  %v3510_v34 = vpop.f32.mrf.mxu3  ;;  %v5547_v38 = vor.u32 %v6128_v52, %v5544_v22 }
 0x1da   : > { %3749 = vmatpush.bf16.msrb.mxu2 %v5643_v30  ;;  %v5472_v30 = vld [vmem:[#allocation2 + $0xc18] sm:$0xf0] }
 0x1db   : > { %3762 = vmatpush.bf16.msrb.mxu3 %v5707_v13  ;;  %v3511_v4 = vadd.f32 %v3510_v34, %v3498_v33  ;;  %v3486_v13 = vpop.f32.mrf.mxu1  ;;  %v5475_v35 = vor.u32 %v6110_v5, %v5472_v30 }
 0x1dc   : > { %3724 = vmatpush.bf16.msrb.mxu0 %v5507_v46  ;;  %v6158_v46 = vld [vmem:[#allocation2 + $0xd94] sm:$0xf] }
 0x1dd   : > { %3737 = vmatpush.bf16.msrb.mxu1 %v5571_v54  ;;  %v5664_v54 = vld [vmem:[#allocation2 + $0xd98] sm:$0xf0] }
 0x1de   : > { %3750 = vmatpush.bf16.msrb.mxu2 %v5635_v31  ;;  %v6108_v31 = vld [vmem:[#allocation2 + $0xc04] sm:$0xf]  ;;  %v5667_v53 = vor.u32 %v6158_v46, %v5664_v54 }
 0x1df   : > { %3763 = vmatpush.bf16.msrb.mxu3 %v5699_v48  ;;  %v5464_v48 = vld [vmem:[#allocation2 + $0xc08] sm:$0xf0] }
 0x1e0   : > { %3725 = vmatpush.bf16.msrb.mxu0 %v5499_v16  ;;  %v3499_v29 = vpop.f32.mrf.mxu2  ;;  %v6156_v16 = vld [vmem:[#allocation2 + $0xd84] sm:$0xf]  ;;  %v5467_v45 = vor.u32 %v6108_v31, %v5464_v48 }
 0x1e1   : > { %3738 = vmatpush.bf16.msrb.mxu1 %v5563_v7  ;;  %v5656_v7 = vld [vmem:[#allocation2 + $0xd88] sm:$0xf0]  ;;  %v3512_v63 = vpop.f32.mrf.mxu3 }
 0x1e2   : > { %3751 = vmatpush.bf16.msrb.mxu2 %v5627_v3  ;;  %v5659_v3 = vor.u32 %v6156_v16, %v5656_v7 }
 0x1e3   : > { %3764 = vmatpush.bf16.msrb.mxu3 %v5691_v27 }
 0x1e4   : > { %3726 = vmatpush.bf16.msrb.mxu0 %v5491_v18 }
 0x1e5   : > { %3739 = vmatpush.bf16.msrb.mxu1 %v5555_v17 }
 0x1e6   : > { %3752 = vmatpush.bf16.msrb.mxu2 %v5619_v39 }
 0x1e7   : > { %3765 = vmatpush.bf16.msrb.mxu3 %v5683_v19 }
 0x1e8   : > { %3727 = vmatpush.bf16.msrb.mxu0 %v5483_v12 }
 0x1e9   : > { %3740 = vmatpush.bf16.msrb.mxu1 %v5547_v38 }
 0x1ea   : > { %3753 = vmatpush.bf16.msrb.mxu2 %v5611_v40 }
 0x1eb   : > { %3766 = vmatpush.bf16.msrb.mxu3 %v5675_v41 }
 0x1ec   : > { %3728 = vmatpush.bf16.msrb.mxu0 %v5475_v35 }
 0x1ed   : > { %3741 = vmatpush.bf16.msrb.mxu1 %v5539_v24 }
 0x1ee   : > { %3754 = vmatpush.bf16.msrb.mxu2 %v5603_v15 }
 0x1ef   : > { %3767 = vmatpush.bf16.msrb.mxu3 %v5667_v53 }
 0x1f0   : > { %3729 = vmatpush.bf16.msrb.mxu0 %v5467_v45  ;;  %v3523_v27 = vpop.f32.mrf.mxu0 }
 0x1f1   : > { %3742 = vmatpush.bf16.msrb.mxu1 %v5531_v59  ;;  %v3524_v6 = vadd.f32 %v3523_v27, %v3511_v4  ;;  %v3536_v44 = vpop.f32.mrf.mxu1 }
 0x1f2   : > { %3755 = vmatpush.bf16.msrb.mxu2 %v5595_v28 }
 0x1f3   : > { %3768 = vmatpush.bf16.msrb.mxu3 %v5659_v3  ;;  %3730 = vmatmul.bf16.vlgmr.msrb.gmra.mxu0 %v350_v60  ;;  %v3537_v2 = vadd.f32 %v3536_v44, %v3524_v6 }
 0x1f4   : > { %3743 = vmatmul.bf16.vlgmr.msrb.gmra.mxu1 %v351_v10 }
 0x1f5   : > { %3756 = vmatmul.bf16.vlgmr.msrb.gmra.mxu2 %v352_v61 }
 0x1f6   : > { %3769 = vmatmul.bf16.vlgmr.msrb.gmra.mxu3 %v353_v11 }
 0x1f8   : > { %v3549_v8 = vpop.f32.mrf.mxu2  ;;  %v3525_v14 = vpop.f32.mrf.mxu0 }
 0x1f9   : > { %v3550_v9 = vadd.f32 %v3549_v8, %v3537_v2  ;;  %v3562_v55 = vpop.f32.mrf.mxu3  ;;  %v3538_v0 = vpop.f32.mrf.mxu1 }
 0x1fb   : > { %v3563_v18 = vadd.f32 %v3562_v55, %v3550_v9 }
 0x200   : > { %v3551_v60 = vpop.f32.mrf.mxu2 }
 0x201   : > { %v3564_v17 = vpop.f32.mrf.mxu3 }
 0x210   : > { %v3575_v1 = vpop.f32.mrf.mxu0 }
 0x211   : > { %v3576_v10 = vadd.f32 %v3575_v1, %v3563_v18  ;;  %v3588_v25 = vpop.f32.mrf.mxu1 }
 0x213   : > { %v3589_v47 = vadd.f32 %v3588_v25, %v3576_v10 }
 0x218   : > { %v3601_v61 = vpop.f32.mrf.mxu2  ;;  %v3577_v11 = vpop.f32.mrf.mxu0 }
 0x219   : > { %v3602_v51 = vadd.f32 %v3601_v61, %v3589_v47  ;;  %v3614_v49 = vpop.f32.mrf.mxu3  ;;  %v3590_v19 = vpop.f32.mrf.mxu1 }
 0x21b   : > { %v3615_v39 = vadd.f32 %v3614_v49, %v3602_v51 }
 0x220   : > { %v3603_v52 = vpop.f32.mrf.mxu2 }
 0x221   : > { %v3616_v22 = vpop.f32.mrf.mxu3 }
 0x230   : > { %v3627_v32 = vpop.f32.mrf.mxu0 }
 0x231   : > { %v3640_v50 = vpop.f32.mrf.mxu1  ;;  %v3628_v5 = vadd.f32 %v3627_v32, %v3615_v39 }
 0x233   : > { %v3641_v41 = vadd.f32 %v3640_v50, %v3628_v5 }
 0x238   : > { %v3653_v56 = vpop.f32.mrf.mxu2  ;;  %v3629_v57 = vpop.f32.mrf.mxu0 }
 0x239   : > { %v3666_v26 = vpop.f32.mrf.mxu3  ;;  %v3642_v33 = vpop.f32.mrf.mxu1  ;;  %v3654_v20 = vadd.f32 %v3653_v56, %v3641_v41 }
 0x23b   : > { %v3667_v23 = vadd.f32 %v3666_v26, %v3654_v20 }
 0x240   : > { %v3655_v34 = vpop.f32.mrf.mxu2 }
 0x241   : > { %v3668_v37 = vpop.f32.mrf.mxu3 }
 0x250   : > { %v3679_v12 = vpop.f32.mrf.mxu0 }
 0x251   : > { %v3692_v38 = vpop.f32.mrf.mxu1  ;;  %v3680_v46 = vadd.f32 %v3679_v12, %v3667_v23 }
 0x253   : > { %v3693_v54 = vadd.f32 %v3692_v38, %v3680_v46 }
 0x258   : > { %v3705_v4 = vpop.f32.mrf.mxu2  ;;  %v3681_v13 = vpop.f32.mrf.mxu0 }
 0x259   : > { %v3718_v30 = vpop.f32.mrf.mxu3  ;;  %v3694_v40 = vpop.f32.mrf.mxu1  ;;  %v3706_v35 = vadd.f32 %v3705_v4, %v3693_v54 }
 0x25b   : > { %v3719_v24 = vadd.f32 %v3718_v30, %v3706_v35 }
 0x260   : > { %v3707_v43 = vpop.f32.mrf.mxu2 }
 0x261   : > { %v3720_v21 = vpop.f32.mrf.mxu3 }
 0x270   : > { %v3731_v31 = vpop.f32.mrf.mxu0 }
 0x271   : > { %v3744_v48 = vpop.f32.mrf.mxu1  ;;  %v3732_v15 = vadd.f32 %v3731_v31, %v3719_v24 }
 0x273   : > { %v3745_v53 = vadd.f32 %v3744_v48, %v3732_v15 }
 0x278   : > { %v3757_v42 = vpop.f32.mrf.mxu2  ;;  %v3733_v29 = vpop.f32.mrf.mxu0 }
 0x279   : > { %v3770_v58 = vpop.f32.mrf.mxu3  ;;  %v3758_v62 = vadd.f32 %v3757_v42, %v3745_v53  ;;  %v3746_v36 = vpop.f32.mrf.mxu1 }
 0x27b   : > { %v3771_v16 = vadd.f32 %v3770_v58, %v3758_v62 }
 0x27d   : > { %v5717_v7 = vmul.f32 -1.442695, %v3771_v16 }
 0x27f   : > { %6238 = vpow2.f32 %v5717_v7 }
 0x280   : > { %v3759_v63 = vpop.f32.mrf.mxu2 }
 0x281   : > { %v3772_v45 = vpop.f32.mrf.mxu3 }
 0x285   : > { %v6239_v59 = vpop.eup %6238 }
 0x286   : > { %v3781_v28 = vadd.f32 1.0, %v6239_v59 }
 0x288   : > { %6240 = vrcp.f32 %v3781_v28  ;;  %v3808_v44 = vand.u32 2147483648, %v3781_v28  ;;  %v3806_v8 = vand.u32 2147483647, %v3781_v28  ;;  %vm3802_vm11 = vweird.f32 %v3781_v28 }
 0x28a   : > { %v3809_v55 = vor.u32 1.1754944e-38, %v3808_v44  ;;  %vm3807_vm13 = vcmp.eq.f32.partialorder %v3806_v8, 8.507059e+37 }
 0x28e   : > { %v6241_v3 = vpop.eup %6240 }
 0x28f   : > { %v3798_v27 = vmul.f32 %v6241_v3, %v3781_v28  ;;  %vm3803_vm10 = vweird.f32 %v6241_v3 }
 0x290   : > { %vm3804_vm12 = vmor %vm3802_vm11, %vm3803_vm10 }
 0x291   : > { %v3799_v6 = vsub.f32 1.0, %v3798_v27 }
 0x293   : > { %v3800_v2 = vmul.f32 %v6241_v3, %v3799_v6 }
 0x295   : > { %v3801_v9 = vadd.f32 %v6241_v3, %v3800_v2 }
 0x297   : > { %v3805_v14 = vsel %vm3804_vm12, %v6241_v3, %v3801_v9 }
 0x298   : > { %v3810_v18 = vsel %vm3807_vm13, %v3809_v55, %v3805_v14 }
 0x299   : > { %3813 = vst [vmem:[%s6770_s20 + $0x8] sm:$0xff] %v3810_v18 }
 0x29a   : > { %6329 = shalt.err (!%p6326_p10)
}
 0x29b   : > { %6179 = dma.vmem_to_hbm [thread:$0]  (%p6461_p7), %s3829_s21, 256, %s3831_s22, %s3815_s13  }
 0x29c PF: > { %s3842_s5 = sand.u32 1, %s6360_s9   ;;  %p6833_p12 = scmp.ge.s32.totalorder %s6372_s12, 2 }
 0x29d   : > { %s3843_s6 = scalar_lea.sflag [#allocation4], %s3842_s5 }
 0x29e   : > { %p6190_p13 = pnand %p6833_p12, %p6429_p6 }
 0x2a0   : > { %p6191_p0 = pneg %p6190_p13 }
 0x2a2   : > { %6355 = dma.done.wait (%p6191_p0), %s3843_s6, 256  }
 0x2a3   : > { %6357 = vsyncadd (%p6191_p0), %s3843_s6, 4294967040  ;;  %p16_p3 = scmp.ge.s32.totalorder %s6447_s23, 4   ;;  %s6834_s9 = smov %s6364_s10 }
 0x2a4   : > { %s6835_s10 = smov %s6368_s11  ;;  %s6836_s11 = smov %s6457_s28 }
 0x2a5   : > { %s6837_s12 = smov %s6447_s23  ;;  %18 = sbr.rel (!%p16_p3) target bundleno = 6 (0x6), region = 78 }
 0x2aa   :  { %3849 = vsyncpa [#allocation3], 1 }
 0x2ab   :  { %3851 = vsyncpa [#allocation3 + $0x1], 1 }
 0x2ac   :  { %3852 = vsyncpa [#allocation6], 1 }
 0x2ad   :  { %3854 = vsyncpa [#allocation6 + $0x1], 1 }
 0x2ae   :  { %3855 = vsyncpa [#allocation4], 1 }
 0x2af   :  { %3857 = vsyncpa [#allocation4 + $0x1], 1 }

</bundles_post_ra>
